<compile_context>
chip_gen: v5e
topology: v5e:2x2
jax: 0.10.0
libtpu: 0.0.40
codegen_flags: <defaults>
</compile_context>

<pallas_src>
import functools

import jax
import jax.numpy as jnp
from jax.experimental import pallas as pl
from jax.experimental.pallas import tpu as pltpu


_VMEM_LIMIT = 32 * 1024 * 1024  # explicit scoped-VMEM limit; safe on v5e/v6e/v7x


# ----------------------------------------------------------------------------
# Tiling helpers
# ----------------------------------------------------------------------------
def _round_up(x, m):
    return (x + m - 1) // m * m


def _m_tiling(m):
    """(M_pad, tm): row tile (multiple of 8, <= 512) and padded row count."""
    m8 = _round_up(m, 8)
    if m8 <= 512:
        return m8, m8
    for tm in range(512, 255, -8):          # prefer a large divisor -> no padding
        if m8 % tm == 0:
            return m8, tm
    return _round_up(m8, 256), 256          # otherwise pad up to a 256-row grid


def _k_tiling(k):
    """(K_pad, tk): single K block when small, 512-wide K tiles otherwise."""
    k128 = _round_up(k, 128)
    if k128 <= 1024:
        return k128, k128
    return _round_up(k, 512), 512


# ----------------------------------------------------------------------------
# Kernel 1a: single-K   y = [relu](x @ w + b)      (used by the conv layers)
# ----------------------------------------------------------------------------
def _matmul_bias_kernel_1k(x_ref, w_ref, b_ref, o_ref, *, apply_relu):
    y = jnp.dot(x_ref[...], w_ref[...],
                preferred_element_type=jnp.float32) + b_ref[...]
    if apply_relu:
        y = jnp.maximum(y, 0.0)
    o_ref[...] = y.astype(o_ref.dtype)


# ----------------------------------------------------------------------------
# Kernel 1b: K-tiled    y = [relu](x @ w + b)      (large-K fallback)
# ----------------------------------------------------------------------------
def _matmul_bias_kernel_acc(x_ref, w_ref, b_ref, o_ref, acc_ref, *, apply_relu):
    @pl.when(pl.program_id(1) == 0)
    def _():
        acc_ref[...] = jnp.zeros_like(acc_ref)

    acc_ref[...] += jnp.dot(x_ref[...], w_ref[...],
                            preferred_element_type=jnp.float32)

    @pl.when(pl.program_id(1) == pl.num_programs(1) - 1)
    def _():
        y = acc_ref[...] + b_ref[...]
        if apply_relu:
            y = jnp.maximum(y, 0.0)
        o_ref[...] = y.astype(o_ref.dtype)


def pallas_matmul_bias(x, w, b, *, apply_relu, out_dtype=jnp.float32):
    """x: (M, K) float; w: (K_pad, N) bf16 pre-padded; b: (1, N) f32 -> (M, N)."""
    m, k = x.shape
    k_pad, n = w.shape
    _, tk = _k_tiling(k_pad)
    assert k_pad % tk == 0
    m_pad, tm = _m_tiling(m)

    x = x.astype(jnp.bfloat16)
    if (m_pad, k_pad) != (m, k):
        x = jnp.pad(x, ((0, m_pad - m), (0, k_pad - k)))

    if tk == k_pad:
        # Whole K reduction in one block: no accumulator scratch, direct store.
        out = pl.pallas_call(
            functools.partial(_matmul_bias_kernel_1k, apply_relu=apply_relu),
            out_shape=jax.ShapeDtypeStruct((m_pad, n), out_dtype),
            grid_spec=pltpu.PrefetchScalarGridSpec(
                num_scalar_prefetch=0,
                grid=(m_pad // tm,),
                in_specs=[
                    pl.BlockSpec((tm, k_pad), lambda i: (i, 0)),
                    pl.BlockSpec((k_pad, n), lambda i: (0, 0)),
                    pl.BlockSpec((1, n), lambda i: (0, 0)),
                ],
                out_specs=pl.BlockSpec((tm, n), lambda i: (i, 0)),
            ),
            compiler_params=pltpu.CompilerParams(
                dimension_semantics=("parallel",),
                vmem_limit_bytes=_VMEM_LIMIT,
            ),
        )(x, w, b)
    else:
        out = pl.pallas_call(
            functools.partial(_matmul_bias_kernel_acc, apply_relu=apply_relu),
            out_shape=jax.ShapeDtypeStruct((m_pad, n), out_dtype),
            grid_spec=pltpu.PrefetchScalarGridSpec(
                num_scalar_prefetch=0,
                grid=(m_pad // tm, k_pad // tk),
                in_specs=[
                    pl.BlockSpec((tm, tk), lambda i, j: (i, j)),
                    pl.BlockSpec((tk, n), lambda i, j: (j, 0)),
                    pl.BlockSpec((1, n), lambda i, j: (0, 0)),
                ],
                out_specs=pl.BlockSpec((tm, n), lambda i, j: (i, 0)),
                scratch_shapes=[pltpu.VMEM((tm, n), jnp.float32)],
            ),
            compiler_params=pltpu.CompilerParams(
                dimension_semantics=("parallel", "arbitrary"),
                vmem_limit_bytes=_VMEM_LIMIT,
            ),
        )(x, w, b)
    return out[:m]


# ----------------------------------------------------------------------------
# Kernel 2: fused fc1 (+ReLU) + lane-dense V|A head matmul
# ----------------------------------------------------------------------------
def _fc_heads_kernel(x_ref, w1_ref, b1_ref, wh_ref, bh_ref, o_ref, acc_ref):
    @pl.when(pl.program_id(1) == 0)
    def _():
        acc_ref[...] = jnp.zeros_like(acc_ref)

    acc_ref[...] += jnp.dot(x_ref[...], w1_ref[...],
                            preferred_element_type=jnp.float32)

    @pl.when(pl.program_id(1) == pl.num_programs(1) - 1)
    def _():
        h = jnp.maximum(acc_ref[...] + b1_ref[...], 0.0)          # fc1 activation, f32
        heads = jnp.dot(h.astype(wh_ref.dtype), wh_ref[...],
                        preferred_element_type=jnp.float32) + bh_ref[...]
        o_ref[...] = heads.astype(o_ref.dtype)


def pallas_fc_heads(x, w1, b1, wh, bh):
    """x: (M, K); w1: (K_pad, 512) bf16; wh: (512, 128) bf16 -> (M, 128) f32."""
    m, k = x.shape
    k_pad, hdim = w1.shape
    n_out = wh.shape[1]
    _, tk = _k_tiling(k_pad)
    assert k_pad % tk == 0
    m_pad, tm = _m_tiling(m)

    x = x.astype(jnp.bfloat16)
    if (m_pad, k_pad) != (m, k):
        x = jnp.pad(x, ((0, m_pad - m), (0, k_pad - k)))

    out = pl.pallas_call(
        _fc_heads_kernel,
        out_shape=jax.ShapeDtypeStruct((m_pad, n_out), jnp.float32),
        grid_spec=pltpu.PrefetchScalarGridSpec(
            num_scalar_prefetch=0,
            grid=(m_pad // tm, k_pad // tk),
            in_specs=[
                pl.BlockSpec((tm, tk), lambda i, j: (i, j)),
                pl.BlockSpec((tk, hdim), lambda i, j: (j, 0)),
                pl.BlockSpec((1, hdim), lambda i, j: (0, 0)),
                pl.BlockSpec((hdim, n_out), lambda i, j: (0, 0)),
                pl.BlockSpec((1, n_out), lambda i, j: (0, 0)),
            ],
            out_specs=pl.BlockSpec((tm, n_out), lambda i, j: (i, 0)),
            scratch_shapes=[pltpu.VMEM((tm, hdim), jnp.float32)],
        ),
        compiler_params=pltpu.CompilerParams(
            dimension_semantics=("parallel", "arbitrary"),
            vmem_limit_bytes=_VMEM_LIMIT,
        ),
    )(x, w1, b1, wh, bh)
    return out[:m]


# ----------------------------------------------------------------------------
# NHWC im2col glue + conv wrapper
# ----------------------------------------------------------------------------
def _im2col_nhwc(x, kh, kw, stride):
    n, h, w, c = x.shape
    oh = (h - kh) // stride + 1
    ow = (w - kw) // stride + 1
    taps = []
    for i in range(kh):
        for j in range(kw):
            taps.append(x[:, i:i + stride * oh:stride, j:j + stride * ow:stride, :])
    p = jnp.stack(taps, axis=3)                       # (N, OH, OW, KH*KW, C)
    return p.reshape(n * oh * ow, kh * kw * c), oh, ow


def conv2d_relu_nhwc(x, w_flat, b, kh, kw, stride):
    n = x.shape[0]
    patches, oh, ow = _im2col_nhwc(x, kh, kw, stride)
    out = pallas_matmul_bias(patches, w_flat, b, apply_relu=True,
                             out_dtype=jnp.bfloat16)
    return out.reshape(n, oh, ow, w_flat.shape[1])


# ----------------------------------------------------------------------------
# Parameters: PyTorch-layout init + one-time kernel-layout prep
# ----------------------------------------------------------------------------
def conv_spatial_dims(input_dims):
    _, h, w = input_dims
    h1, w1 = (h - 8) // 4 + 1, (w - 8) // 4 + 1
    h2, w2 = (h1 - 4) // 2 + 1, (w1 - 4) // 2 + 1
    h3, w3 = (h2 - 3) // 1 + 1, (w2 - 3) // 1 + 1
    return h3, w3


def init_params(key, input_dims, n_actions):
    """PyTorch-layout params (OIHW convs, (out, in) linears), uniform(+-1/sqrt(fan_in))."""
    c, _, _ = input_dims
    h3, w3 = conv_spatial_dims(input_dims)
    fc_in = 64 * h3 * w3

    def u(k, shape, fan_in):
        bound = 1.0 / float(fan_in) ** 0.5
        return jax.random.uniform(k, shape, jnp.float32, -bound, bound)

    ks = jax.random.split(key, 12)
    return {
        "conv1_w": u(ks[0], (32, c, 8, 8), c * 8 * 8),
        "conv1_b": u(ks[1], (32,), c * 8 * 8),
        "conv2_w": u(ks[2], (64, 32, 4, 4), 32 * 4 * 4),
        "conv2_b": u(ks[3], (64,), 32 * 4 * 4),
        "conv3_w": u(ks[4], (64, 64, 3, 3), 64 * 3 * 3),
        "conv3_b": u(ks[5], (64,), 64 * 3 * 3),
        "fc1_w": u(ks[6], (512, fc_in), fc_in),
        "fc1_b": u(ks[7], (512,), fc_in),
        "V_w": u(ks[8], (1, 512), 512),
        "V_b": u(ks[9], (1,), 512),
        "A_w": u(ks[10], (n_actions, 512), 512),
        "A_b": u(ks[11], (n_actions,), 512),
    }


def prepare_params(params, input_dims):
    """One-time layout prep: flatten/transpose/pad/cast all weights into kernel layout."""
    h3, w3 = conv_spatial_dims(input_dims)
    fc_in = 64 * h3 * w3

    def conv_w(w):
        oc, ci, kh, kw = w.shape
        k = kh * kw * ci
        wf = w.transpose(2, 3, 1, 0).reshape(k, oc)       # (kh,kw,c) order = NHWC im2col
        k_pad, _ = _k_tiling(k)
        if k_pad != k:
            wf = jnp.pad(wf, ((0, k_pad - k), (0, 0)))
        return wf.astype(jnp.bfloat16)

    def row_bias(b):
        return b.reshape(1, -1).astype(jnp.float32)

    # fc1: permute columns from NCHW flatten (c,h,w) to NHWC flatten (h,w,c).
    fc1 = params["fc1_w"].reshape(512, 64, h3, w3).transpose(0, 2, 3, 1)
    fc1 = fc1.reshape(512, fc_in).T                       # (fc_in, 512)
    k_pad, _ = _k_tiling(fc_in)
    if k_pad != fc_in:
        fc1 = jnp.pad(fc1, ((0, k_pad - fc_in), (0, 0)))

    # Fused V|A head: one lane-dense (512, 128) matmul.  V = col 0, A = cols 1..n.
    n_actions = params["A_w"].shape[0]
    head_w = jnp.concatenate([params["V_w"], params["A_w"]], axis=0).T   # (512, 1+n)
    head_w = jnp.pad(head_w, ((0, 0), (0, 128 - (1 + n_actions))))
    head_b = jnp.concatenate([params["V_b"], params["A_b"]])
    head_b = jnp.pad(head_b, (0, 128 - (1 + n_actions))).reshape(1, 128)

    return {
        "c1_w": conv_w(params["conv1_w"]), "c1_b": row_bias(params["conv1_b"]),
        "c2_w": conv_w(params["conv2_w"]), "c2_b": row_bias(params["conv2_b"]),
        "c3_w": conv_w(params["conv3_w"]), "c3_b": row_bias(params["conv3_b"]),
        "fc1_w": fc1.astype(jnp.bfloat16),
        "fc1_b": params["fc1_b"].reshape(1, 512).astype(jnp.float32),
        "head_w": head_w.astype(jnp.bfloat16),
        "head_b": head_b.astype(jnp.float32),
    }


# ----------------------------------------------------------------------------
# Forward pass (matches DuelingDeepQNetwork.forward): returns (V, A)
# ----------------------------------------------------------------------------
@functools.partial(jax.jit, static_argnames="n_actions")
def dueling_forward(prep, state, *, n_actions):
    """state: (N, C, H, W) as in the PyTorch module."""
    x = jnp.transpose(state, (0, 2, 3, 1)).astype(jnp.bfloat16)   # NCHW -> NHWC once
    x = conv2d_relu_nhwc(x, prep["c1_w"], prep["c1_b"], 8, 8, 4)
    x = conv2d_relu_nhwc(x, prep["c2_w"], prep["c2_b"], 4, 4, 2)
    x = conv2d_relu_nhwc(x, prep["c3_w"], prep["c3_b"], 3, 3, 1)
    flat = x.reshape(x.shape[0], -1)       # NHWC flatten (fc1_w was permuted to match)
    heads = pallas_fc_heads(flat, prep["fc1_w"], prep["fc1_b"],
                            prep["head_w"], prep["head_b"])
    V = heads[:, :1]
    A = heads[:, 1:1 + n_actions]
    return V, A


# Pure-JAX f32 reference (PyTorch semantics) for correctness checking.
def reference_forward(params, state):
    def conv(x, w, b, stride):
        y = jax.lax.conv_general_dilated(
            x, w, (stride, stride), "VALID",
            dimension_numbers=("NCHW", "OIHW", "NCHW"),
            precision=jax.lax.Precision.HIGHEST)
        return jax.nn.relu(y + b[None, :, None, None])

    x = state.astype(jnp.float32)
    x = conv(x, params["conv1_w"], params["conv1_b"], 4)
    x = conv(x, params["conv2_w"], params["conv2_b"], 2)
    x = conv(x, params["conv3_w"], params["conv3_b"], 1)
    flat = x.reshape(x.shape[0], -1)
    hp = jax.lax.Precision.HIGHEST
    layer = jax.nn.relu(jnp.dot(flat, params["fc1_w"].T, precision=hp) + params["fc1_b"])
    A = jnp.dot(layer, params["A_w"].T, precision=hp) + params["A_b"]
    V = jnp.dot(layer, params["V_w"].T, precision=hp) + params["V_b"]
    return V, A


if __name__ == "__main__":
    batch = 2
    n_actions = 6
    input_dims = (4, 84, 84)   # Atari-style frame stack; conv stack -> 64*7*7 = 3136

    key = jax.random.PRNGKey(0)
    pkey, xkey = jax.random.split(key)
    params = init_params(pkey, input_dims, n_actions)
    prep = prepare_params(params, input_dims)
    state = jax.random.uniform(xkey, (batch,) + input_dims, jnp.float32)

    V, A = jax.block_until_ready(dueling_forward(prep, state, n_actions=n_actions))
    V_ref, A_ref = jax.block_until_ready(reference_forward(params, state))

    assert V.shape == (batch, 1) and A.shape == (batch, n_actions)
    # bf16 MXU inputs with f32 accumulation vs f32 reference.
    assert jnp.allclose(V, V_ref, rtol=1e-1, atol=3e-3), "V mismatch vs reference"
    assert jnp.allclose(A, A_ref, rtol=1e-1, atol=3e-3), "A mismatch vs reference"

    print("KERNEL_OK")
</pallas_src>

<mosaic_0001>
module attributes {stable_mosaic.version = 11 : i64} {
  func.func @_matmul_bias_kernel_1k(%arg0: i32, %arg1: memref<400x256xbf16, #tpu.memory_space<vmem>>, %arg2: memref<256x32xbf16, #tpu.memory_space<vmem>>, %arg3: memref<1x32xf32, #tpu.memory_space<vmem>>, %arg4: memref<400x32xbf16, #tpu.memory_space<vmem>>) attributes {dimension_semantics = [#tpu.dimension_semantics<parallel>], iteration_bounds = array<i64: 2>, scalar_prefetch = 0 : i64, scratch_operands = 0 : i64, tpu.core_type = #tpu.core_type<tc>, window_params = [{transform_indices = @transform_0, window_bounds = array<i64: 400, 256>}, {pipeline_mode = #tpu.pipeline_mode<synchronous>, transform_indices = @transform_1, window_bounds = array<i64: 256, 32>}, {pipeline_mode = #tpu.pipeline_mode<synchronous>, transform_indices = @transform_2, window_bounds = array<i64: 1, 32>}, {transform_indices = @transform_3, window_bounds = array<i64: 400, 32>}]} {
    %c0 = arith.constant 0 : index
    %c0_0 = arith.constant 0 : index
    %0 = vector.load %arg1[%c0, %c0_0] : memref<400x256xbf16, #tpu.memory_space<vmem>>, vector<400x256xbf16>
    %c0_1 = arith.constant 0 : index
    %c0_2 = arith.constant 0 : index
    %1 = vector.load %arg2[%c0_1, %c0_2] : memref<256x32xbf16, #tpu.memory_space<vmem>>, vector<256x32xbf16>
    %cst = arith.constant dense<0.000000e+00> : vector<400x32xf32>
    %2 = tpu.matmul %0, %1, %cst {dimension_numbers = #tpu.dot_dimension_numbers<[1], [0], [0], [1], [0, 0, 1, 1], [], []>} : vector<400x256xbf16>, vector<256x32xbf16>, vector<400x32xf32> -> vector<400x32xf32>
    %c0_3 = arith.constant 0 : index
    %c0_4 = arith.constant 0 : index
    %3 = vector.load %arg3[%c0_3, %c0_4] : memref<1x32xf32, #tpu.memory_space<vmem>>, vector<1x32xf32>
    %4 = vector.broadcast %3 : vector<1x32xf32> to vector<400x32xf32>
    %5 = arith.addf %2, %4 : vector<400x32xf32>
    %cst_5 = arith.constant 0.000000e+00 : f32
    %6 = vector.broadcast %cst_5 : f32 to vector<400x32xf32>
    %7 = arith.maximumf %5, %6 : vector<400x32xf32>
    %8 = arith.truncf %7 : vector<400x32xf32> to vector<400x32xbf16>
    %c0_6 = arith.constant 0 : index
    %c0_7 = arith.constant 0 : index
    %9 = vector.load %arg4[%c0_6, %c0_7] : memref<400x32xbf16, #tpu.memory_space<vmem>>, vector<400x32xbf16>
    tpu.vector_store %arg4[%c0_6, %c0_7], %8 {strides = array<i32>} : memref<400x32xbf16, #tpu.memory_space<vmem>>, vector<400x32xbf16>,
    return
  }
  func.func @transform_0(%arg0: i32) -> (i32, i32) {
    %c0_i32 = arith.constant 0 : i32
    %c0_i32_0 = arith.constant 0 : i32
    return %arg0, %c0_i32 : i32, i32
  }
  func.func @transform_1(%arg0: i32) -> (i32, i32) {
    %c0_i32 = arith.constant 0 : i32
    %c0_i32_0 = arith.constant 0 : i32
    %c0_i32_1 = arith.constant 0 : i32
    return %c0_i32, %c0_i32_0 : i32, i32
  }
  func.func @transform_2(%arg0: i32) -> (i32, i32) {
    %c0_i32 = arith.constant 0 : i32
    %c0_i32_0 = arith.constant 0 : i32
    %c0_i32_1 = arith.constant 0 : i32
    return %c0_i32, %c0_i32_0 : i32, i32
  }
  func.func @transform_3(%arg0: i32) -> (i32, i32) {
    %c0_i32 = arith.constant 0 : i32
    %c0_i32_0 = arith.constant 0 : i32
    return %arg0, %c0_i32 : i32, i32
  }
}

module attributes {stable_mosaic.version = 11 : i64} {
  func.func @_matmul_bias_kernel_1k(%arg0: i32, %arg1: memref<168x512xbf16, #tpu.memory_space<vmem>>, %arg2: memref<512x64xbf16, #tpu.memory_space<vmem>>, %arg3: memref<1x64xf32, #tpu.memory_space<vmem>>, %arg4: memref<168x64xbf16, #tpu.memory_space<vmem>>) attributes {dimension_semantics = [#tpu.dimension_semantics<parallel>], iteration_bounds = array<i64: 1>, scalar_prefetch = 0 : i64, scratch_operands = 0 : i64, tpu.core_type = #tpu.core_type<tc>, window_params = [{transform_indices = @transform_0, window_bounds = array<i64: 168, 512>}, {pipeline_mode = #tpu.pipeline_mode<synchronous>, transform_indices = @transform_1, window_bounds = array<i64: 512, 64>}, {pipeline_mode = #tpu.pipeline_mode<synchronous>, transform_indices = @transform_2, window_bounds = array<i64: 1, 64>}, {transform_indices = @transform_3, window_bounds = array<i64: 168, 64>}]} {
    %c0 = arith.constant 0 : index
    %c0_0 = arith.constant 0 : index
    %0 = vector.load %arg1[%c0, %c0_0] : memref<168x512xbf16, #tpu.memory_space<vmem>>, vector<168x512xbf16>
    %c0_1 = arith.constant 0 : index
    %c0_2 = arith.constant 0 : index
    %1 = vector.load %arg2[%c0_1, %c0_2] : memref<512x64xbf16, #tpu.memory_space<vmem>>, vector<512x64xbf16>
    %cst = arith.constant dense<0.000000e+00> : vector<168x64xf32>
    %2 = tpu.matmul %0, %1, %cst {dimension_numbers = #tpu.dot_dimension_numbers<[1], [0], [0], [1], [0, 0, 1, 1], [], []>} : vector<168x512xbf16>, vector<512x64xbf16>, vector<168x64xf32> -> vector<168x64xf32>
    %c0_3 = arith.constant 0 : index
    %c0_4 = arith.constant 0 : index
    %3 = vector.load %arg3[%c0_3, %c0_4] : memref<1x64xf32, #tpu.memory_space<vmem>>, vector<1x64xf32>
    %4 = vector.broadcast %3 : vector<1x64xf32> to vector<168x64xf32>
    %5 = arith.addf %2, %4 : vector<168x64xf32>
    %cst_5 = arith.constant 0.000000e+00 : f32
    %6 = vector.broadcast %cst_5 : f32 to vector<168x64xf32>
    %7 = arith.maximumf %5, %6 : vector<168x64xf32>
    %8 = arith.truncf %7 : vector<168x64xf32> to vector<168x64xbf16>
    %c0_6 = arith.constant 0 : index
    %c0_7 = arith.constant 0 : index
    %9 = vector.load %arg4[%c0_6, %c0_7] : memref<168x64xbf16, #tpu.memory_space<vmem>>, vector<168x64xbf16>
    tpu.vector_store %arg4[%c0_6, %c0_7], %8 {strides = array<i32>} : memref<168x64xbf16, #tpu.memory_space<vmem>>, vector<168x64xbf16>,
    return
  }
  func.func @transform_0(%arg0: i32) -> (i32, i32) {
    %c0_i32 = arith.constant 0 : i32
    %c0_i32_0 = arith.constant 0 : i32
    return %arg0, %c0_i32 : i32, i32
  }
  func.func @transform_1(%arg0: i32) -> (i32, i32) {
    %c0_i32 = arith.constant 0 : i32
    %c0_i32_0 = arith.constant 0 : i32
    %c0_i32_1 = arith.constant 0 : i32
    return %c0_i32, %c0_i32_0 : i32, i32
  }
  func.func @transform_2(%arg0: i32) -> (i32, i32) {
    %c0_i32 = arith.constant 0 : i32
    %c0_i32_0 = arith.constant 0 : i32
    %c0_i32_1 = arith.constant 0 : i32
    return %c0_i32, %c0_i32_0 : i32, i32
  }
  func.func @transform_3(%arg0: i32) -> (i32, i32) {
    %c0_i32 = arith.constant 0 : i32
    %c0_i32_0 = arith.constant 0 : i32
    return %arg0, %c0_i32 : i32, i32
  }
}

module attributes {stable_mosaic.version = 11 : i64} {
  func.func @_matmul_bias_kernel_1k(%arg0: i32, %arg1: memref<104x640xbf16, #tpu.memory_space<vmem>>, %arg2: memref<640x64xbf16, #tpu.memory_space<vmem>>, %arg3: memref<1x64xf32, #tpu.memory_space<vmem>>, %arg4: memref<104x64xbf16, #tpu.memory_space<vmem>>) attributes {dimension_semantics = [#tpu.dimension_semantics<parallel>], iteration_bounds = array<i64: 1>, scalar_prefetch = 0 : i64, scratch_operands = 0 : i64, tpu.core_type = #tpu.core_type<tc>, window_params = [{transform_indices = @transform_0, window_bounds = array<i64: 104, 640>}, {pipeline_mode = #tpu.pipeline_mode<synchronous>, transform_indices = @transform_1, window_bounds = array<i64: 640, 64>}, {pipeline_mode = #tpu.pipeline_mode<synchronous>, transform_indices = @transform_2, window_bounds = array<i64: 1, 64>}, {transform_indices = @transform_3, window_bounds = array<i64: 104, 64>}]} {
    %c0 = arith.constant 0 : index
    %c0_0 = arith.constant 0 : index
    %0 = vector.load %arg1[%c0, %c0_0] : memref<104x640xbf16, #tpu.memory_space<vmem>>, vector<104x640xbf16>
    %c0_1 = arith.constant 0 : index
    %c0_2 = arith.constant 0 : index
    %1 = vector.load %arg2[%c0_1, %c0_2] : memref<640x64xbf16, #tpu.memory_space<vmem>>, vector<640x64xbf16>
    %cst = arith.constant dense<0.000000e+00> : vector<104x64xf32>
    %2 = tpu.matmul %0, %1, %cst {dimension_numbers = #tpu.dot_dimension_numbers<[1], [0], [0], [1], [0, 0, 1, 1], [], []>} : vector<104x640xbf16>, vector<640x64xbf16>, vector<104x64xf32> -> vector<104x64xf32>
    %c0_3 = arith.constant 0 : index
    %c0_4 = arith.constant 0 : index
    %3 = vector.load %arg3[%c0_3, %c0_4] : memref<1x64xf32, #tpu.memory_space<vmem>>, vector<1x64xf32>
    %4 = vector.broadcast %3 : vector<1x64xf32> to vector<104x64xf32>
    %5 = arith.addf %2, %4 : vector<104x64xf32>
    %cst_5 = arith.constant 0.000000e+00 : f32
    %6 = vector.broadcast %cst_5 : f32 to vector<104x64xf32>
    %7 = arith.maximumf %5, %6 : vector<104x64xf32>
    %8 = arith.truncf %7 : vector<104x64xf32> to vector<104x64xbf16>
    %c0_6 = arith.constant 0 : index
    %c0_7 = arith.constant 0 : index
    %9 = vector.load %arg4[%c0_6, %c0_7] : memref<104x64xbf16, #tpu.memory_space<vmem>>, vector<104x64xbf16>
    tpu.vector_store %arg4[%c0_6, %c0_7], %8 {strides = array<i32>} : memref<104x64xbf16, #tpu.memory_space<vmem>>, vector<104x64xbf16>,
    return
  }
  func.func @transform_0(%arg0: i32) -> (i32, i32) {
    %c0_i32 = arith.constant 0 : i32
    %c0_i32_0 = arith.constant 0 : i32
    return %arg0, %c0_i32 : i32, i32
  }
  func.func @transform_1(%arg0: i32) -> (i32, i32) {
    %c0_i32 = arith.constant 0 : i32
    %c0_i32_0 = arith.constant 0 : i32
    %c0_i32_1 = arith.constant 0 : i32
    return %c0_i32, %c0_i32_0 : i32, i32
  }
  func.func @transform_2(%arg0: i32) -> (i32, i32) {
    %c0_i32 = arith.constant 0 : i32
    %c0_i32_0 = arith.constant 0 : i32
    %c0_i32_1 = arith.constant 0 : i32
    return %c0_i32, %c0_i32_0 : i32, i32
  }
  func.func @transform_3(%arg0: i32) -> (i32, i32) {
    %c0_i32 = arith.constant 0 : i32
    %c0_i32_0 = arith.constant 0 : i32
    return %arg0, %c0_i32 : i32, i32
  }
}

module attributes {stable_mosaic.version = 11 : i64} {
  func.func @_fc_heads_kernel(%arg0: i32, %arg1: i32, %arg2: memref<8x512xbf16, #tpu.memory_space<vmem>>, %arg3: memref<512x512xbf16, #tpu.memory_space<vmem>>, %arg4: memref<1x512xf32, #tpu.memory_space<vmem>>, %arg5: memref<512x128xbf16, #tpu.memory_space<vmem>>, %arg6: memref<1x128xf32, #tpu.memory_space<vmem>>, %arg7: memref<8x128xf32, #tpu.memory_space<vmem>>, %arg8: memref<8x512xf32, #tpu.memory_space<vmem>>) attributes {dimension_semantics = [#tpu.dimension_semantics<parallel>, #tpu.dimension_semantics<arbitrary>], iteration_bounds = array<i64: 1, 7>, scalar_prefetch = 0 : i64, scratch_operands = 1 : i64, tpu.core_type = #tpu.core_type<tc>, window_params = [{transform_indices = @transform_0, window_bounds = array<i64: 8, 512>}, {transform_indices = @transform_1, window_bounds = array<i64: 512, 512>}, {pipeline_mode = #tpu.pipeline_mode<synchronous>, transform_indices = @transform_2, window_bounds = array<i64: 1, 512>}, {pipeline_mode = #tpu.pipeline_mode<synchronous>, transform_indices = @transform_3, window_bounds = array<i64: 512, 128>}, {pipeline_mode = #tpu.pipeline_mode<synchronous>, transform_indices = @transform_4, window_bounds = array<i64: 1, 128>}, {transform_indices = @transform_5, window_bounds = array<i64: 8, 128>}]} {
    %c0_i32 = arith.constant 0 : i32
    %0 = arith.cmpi eq, %arg1, %c0_i32 : i32
    %1 = arith.extui %0 : i1 to i32
    %c0_i32_0 = arith.constant 0 : i32
    %2 = arith.cmpi ne, %1, %c0_i32_0 : i32
    scf.if %2 {
      %cst_9 = arith.constant 0.000000e+00 : f32
      %12 = vector.broadcast %cst_9 : f32 to vector<8x512xf32>
      %c0_10 = arith.constant 0 : index
      %c0_11 = arith.constant 0 : index
      %13 = vector.load %arg8[%c0_10, %c0_11] : memref<8x512xf32, #tpu.memory_space<vmem>>, vector<8x512xf32>
      tpu.vector_store %arg8[%c0_10, %c0_11], %12 {strides = array<i32>} : memref<8x512xf32, #tpu.memory_space<vmem>>, vector<8x512xf32>,
    } else {
    }
    %c0 = arith.constant 0 : index
    %c0_1 = arith.constant 0 : index
    %3 = vector.load %arg8[%c0, %c0_1] : memref<8x512xf32, #tpu.memory_space<vmem>>, vector<8x512xf32>
    %c0_2 = arith.constant 0 : index
    %c0_3 = arith.constant 0 : index
    %4 = vector.load %arg2[%c0_2, %c0_3] : memref<8x512xbf16, #tpu.memory_space<vmem>>, vector<8x512xbf16>
    %c0_4 = arith.constant 0 : index
    %c0_5 = arith.constant 0 : index
    %5 = vector.load %arg3[%c0_4, %c0_5] : memref<512x512xbf16, #tpu.memory_space<vmem>>, vector<512x512xbf16>
    %cst = arith.constant dense<0.000000e+00> : vector<8x512xf32>
    %6 = tpu.matmul %4, %5, %cst {dimension_numbers = #tpu.dot_dimension_numbers<[1], [0], [0], [1], [0, 0, 1, 1], [], []>} : vector<8x512xbf16>, vector<512x512xbf16>, vector<8x512xf32> -> vector<8x512xf32>
    %7 = arith.addf %3, %6 : vector<8x512xf32>
    %c0_6 = arith.constant 0 : index
    %c0_7 = arith.constant 0 : index
    %8 = vector.load %arg8[%c0_6, %c0_7] : memref<8x512xf32, #tpu.memory_space<vmem>>, vector<8x512xf32>
    tpu.vector_store %arg8[%c0_6, %c0_7], %7 {strides = array<i32>} : memref<8x512xf32, #tpu.memory_space<vmem>>, vector<8x512xf32>,
    %c6_i32 = arith.constant 6 : i32
    %9 = arith.cmpi eq, %arg1, %c6_i32 : i32
    %10 = arith.extui %9 : i1 to i32
    %c0_i32_8 = arith.constant 0 : i32
    %11 = arith.cmpi ne, %10, %c0_i32_8 : i32
    scf.if %11 {
      %c0_9 = arith.constant 0 : index
      %c0_10 = arith.constant 0 : index
      %12 = vector.load %arg8[%c0_9, %c0_10] : memref<8x512xf32, #tpu.memory_space<vmem>>, vector<8x512xf32>
      %c0_11 = arith.constant 0 : index
      %c0_12 = arith.constant 0 : index
      %13 = vector.load %arg4[%c0_11, %c0_12] : memref<1x512xf32, #tpu.memory_space<vmem>>, vector<1x512xf32>
      %14 = vector.broadcast %13 : vector<1x512xf32> to vector<8x512xf32>
      %15 = arith.addf %12, %14 : vector<8x512xf32>
      %cst_13 = arith.constant 0.000000e+00 : f32
      %16 = vector.broadcast %cst_13 : f32 to vector<8x512xf32>
      %17 = arith.maximumf %15, %16 : vector<8x512xf32>
      %18 = arith.truncf %17 : vector<8x512xf32> to vector<8x512xbf16>
      %c0_14 = arith.constant 0 : index
      %c0_15 = arith.constant 0 : index
      %19 = vector.load %arg5[%c0_14, %c0_15] : memref<512x128xbf16, #tpu.memory_space<vmem>>, vector<512x128xbf16>
      %cst_16 = arith.constant dense<0.000000e+00> : vector<8x128xf32>
      %20 = tpu.matmul %18, %19, %cst_16 {dimension_numbers = #tpu.dot_dimension_numbers<[1], [0], [0], [1], [0, 0, 1, 1], [], []>} : vector<8x512xbf16>, vector<512x128xbf16>, vector<8x128xf32> -> vector<8x128xf32>
      %c0_17 = arith.constant 0 : index
      %c0_18 = arith.constant 0 : index
      %21 = vector.load %arg6[%c0_17, %c0_18] : memref<1x128xf32, #tpu.memory_space<vmem>>, vector<1x128xf32>
      %22 = vector.broadcast %21 : vector<1x128xf32> to vector<8x128xf32>
      %23 = arith.addf %20, %22 : vector<8x128xf32>
      %c0_19 = arith.constant 0 : index
      %c0_20 = arith.constant 0 : index
      %24 = vector.load %arg7[%c0_19, %c0_20] : memref<8x128xf32, #tpu.memory_space<vmem>>, vector<8x128xf32>
      tpu.vector_store %arg7[%c0_19, %c0_20], %23 {strides = array<i32>} : memref<8x128xf32, #tpu.memory_space<vmem>>, vector<8x128xf32>,
    } else {
    }
    return
  }
  func.func @transform_0(%arg0: i32, %arg1: i32) -> (i32, i32) {
    %c0_i32 = arith.constant 0 : i32
    return %arg0, %arg1 : i32, i32
  }
  func.func @transform_1(%arg0: i32, %arg1: i32) -> (i32, i32) {
    %c0_i32 = arith.constant 0 : i32
    %c0_i32_0 = arith.constant 0 : i32
    return %arg1, %c0_i32 : i32, i32
  }
  func.func @transform_2(%arg0: i32, %arg1: i32) -> (i32, i32) {
    %c0_i32 = arith.constant 0 : i32
    %c0_i32_0 = arith.constant 0 : i32
    %c0_i32_1 = arith.constant 0 : i32
    return %c0_i32, %c0_i32_0 : i32, i32
  }
  func.func @transform_3(%arg0: i32, %arg1: i32) -> (i32, i32) {
    %c0_i32 = arith.constant 0 : i32
    %c0_i32_0 = arith.constant 0 : i32
    %c0_i32_1 = arith.constant 0 : i32
    return %c0_i32, %c0_i32_0 : i32, i32
  }
  func.func @transform_4(%arg0: i32, %arg1: i32) -> (i32, i32) {
    %c0_i32 = arith.constant 0 : i32
    %c0_i32_0 = arith.constant 0 : i32
    %c0_i32_1 = arith.constant 0 : i32
    return %c0_i32, %c0_i32_0 : i32, i32
  }
  func.func @transform_5(%arg0: i32, %arg1: i32) -> (i32, i32) {
    %c0_i32 = arith.constant 0 : i32
    %c0_i32_0 = arith.constant 0 : i32
    return %arg0, %c0_i32 : i32, i32
  }
}

</mosaic_0001>

<bundles_post_ra>
// kernel: dueling_forward.4
= control target key start
LH: loop header
LB: loop body
LE: loop exit
PB: predicated region body
PF: predicated region fallthrough
CT: control target
= control target key end

     0   :  { %s1478_s12 = smov 0   ;;  %s1812_s0 = inlined_call_operand.vmem [shape: bf16[800,256], index: 0, kind: input, shape index: {}]   ;;  %s1813_s1 = inlined_call_operand.vmem [shape: bf16[256,32], index: 1, kind: input, shape index: {}]   ;;  %s1814_s2 = inlined_call_operand.vmem [shape: f32[1,32], index: 2, kind: input, shape index: {}]   ;;  %s1815_s3 = inlined_call_operand.vmem [shape: bf16[800,32], index: 3, kind: output, shape index: {}]  }
   0x1 LB: > { %s1084_s13 = sadd.s32 4294967295, %s1456_s12   ;;  %p1088_p0 = scmp.ge.s32.totalorder %s1456_s12, 1  ;;  %s1456_s12 = sphi %s1478_s12, %s13_s12  }
   0x2   : > { %p139_p1 = scmp.lt.s32.totalorder %s1456_s12, 3 }
   0x4   : > { %p140_p2 = pnand %p1088_p0, %p139_p1 }
   0x5   : > { %s164_s26 = smul.u32 (!%p140_p2), 50, %s1084_s13 }
   0x6   : > { %143 = sbr.rel (%p140_p2) target bundleno = 384 (0x180), region = 32 }
   0x7   : > { %p165_p3 = scmp.lt.s32.totalorder (!%p140_p2), %s164_s26, 99 }
   0xb   : > { %v1416_v0 = vld [vmem:[%s1813_s1 + $0x38] sm:$0xff]  ;;  %v1415_v2 = vld [vmem:[%s1813_s1 + $0x30] sm:$0xff]  ;;  %v1414_v4 = vld [vmem:[%s1813_s1 + $0x28] sm:$0xff]  ;;  %s1817_s26 = smov (!%p165_p3, %s164_s26), 99  ;;  %vm977_vm0 = vcmask 257024  }
   0xc   : > { %v1424_v1 = vld [vmem:[%s1813_s1 + $0x78] sm:$0xff]  ;;  %609 = vmatpush.bf16.msra.mxu0 %v1416_v0  ;;  %1425 = vmatpush.bf16.msra.mxu2 %v1416_v0  ;;  %v1423_v3 = vld [vmem:[%s1813_s1 + $0x70] sm:$0xff]  ;;  %v1422_v5 = vld [vmem:[%s1813_s1 + $0x68] sm:$0xff]  ;;  %s1358_s13 = sshll.u32 %s1817_s26, 3  ;;  %s1091_s28 = sshll.u32 %s1817_s26, 2 }
   0xd   : > { %743 = vmatpush.bf16.msra.mxu1 %v1424_v1  ;;  %1433 = vmatpush.bf16.msra.mxu3 %v1424_v1  ;;  %v1413_v6 = vld [vmem:[%s1813_s1 + $0x20] sm:$0xff]  ;;  %v1412_v8 = vld [vmem:[%s1813_s1 + $0x18] sm:$0xff]  ;;  %v1411_v10 = vld [vmem:[%s1813_s1 + $0x10] sm:$0xff]  ;;  %s1531_s18 = scalar_lea.vmem %s1812_s0, %s1358_s13  ;;  %s1624_s4 = scalar_lea.vmem %s1815_s3, %s1091_s28 }
   0xe   : > { %v1421_v7 = vld [vmem:[%s1813_s1 + $0x60] sm:$0xff]  ;;  %v1420_v9 = vld [vmem:[%s1813_s1 + $0x58] sm:$0xff]  ;;  %v1419_v11 = vld [vmem:[%s1813_s1 + $0x50] sm:$0xff] }
   0xf   : > { %v1410_v12 = vld [vmem:[%s1813_s1 + $0x8] sm:$0xff]  ;;  %v1409_v14 = vld [vmem:[%s1813_s1] sm:$0xff]  ;;  %v1385_v22 = vld [vmem:[%s1531_s18 + $0xd4] sm:$0xf] }
  0x10   : > { %610 = vmatpush.bf16.msra.mxu0 %v1415_v2  ;;  %1426 = vmatpush.bf16.msra.mxu2 %v1415_v2  ;;  %v1418_v13 = vld [vmem:[%s1813_s1 + $0x48] sm:$0xff]  ;;  %v1417_v15 = vld [vmem:[%s1813_s1 + $0x40] sm:$0xff]  ;;  %v1200_v23 = vld [vmem:[%s1531_s18 + $0xd8] sm:$0xf0] }
  0x11   : > { %744 = vmatpush.bf16.msra.mxu1 %v1423_v3  ;;  %1434 = vmatpush.bf16.msra.mxu3 %v1423_v3  ;;  %v1094_v16 = vld [vmem:[%s1531_s18] sm:$0xf]  ;;  %v1360_v17 = vld [vmem:[%s1531_s18 + $0x4] sm:$0xf0]  ;;  %v1359_v20 = vld [vmem:[%s1531_s18 + $0x4] sm:$0xf]  ;;  %v1203_v27 = vor.u32 %v1385_v22, %v1200_v23 }
  0x12   : > { %v1190_v18 = vld [vmem:[%s1531_s18 + $0xc0] sm:$0xf]  ;;  %v1384_v19 = vld [vmem:[%s1531_s18 + $0xc4] sm:$0xf0]  ;;  %v1096_v21 = vld [vmem:[%s1531_s18 + $0x8] sm:$0xf0]  ;;  %v1095_v24 = vor.u32 %v1360_v17, %v1094_v16 }
  0x13   : > { %v1191_v25 = vor.u32 %v1384_v19, %v1190_v18  ;;  %v1099_v26 = vor.u32 %v1359_v20, %v1096_v21  ;;  %v1102_v28 = vld [vmem:[%s1531_s18 + $0x10] sm:$0xf]  ;;  %v1362_v29 = vld [vmem:[%s1531_s18 + $0x14] sm:$0xf0]  ;;  %v1361_v32 = vld [vmem:[%s1531_s18 + $0x14] sm:$0xf] }
  0x14   : > { %611 = vmatpush.bf16.msra.mxu0 %v1414_v4  ;;  %1427 = vmatpush.bf16.msra.mxu2 %v1414_v4  ;;  %v1198_v30 = vld [vmem:[%s1531_s18 + $0xd0] sm:$0xf]  ;;  %v1386_v31 = vld [vmem:[%s1531_s18 + $0xd4] sm:$0xf0]  ;;  %v1104_v33 = vld [vmem:[%s1531_s18 + $0x18] sm:$0xf0]  ;;  %v1103_v36 = vor.u32 %v1362_v29, %v1102_v28 }
  0x15   : > { %745 = vmatpush.bf16.msra.mxu1 %v1422_v5  ;;  %1435 = vmatpush.bf16.msra.mxu3 %v1422_v5  ;;  %v1387_v34 = vld [vmem:[%s1531_s18 + $0xe4] sm:$0xf]  ;;  %v1208_v35 = vld [vmem:[%s1531_s18 + $0xe8] sm:$0xf0]  ;;  %v1199_v37 = vor.u32 %v1386_v31, %v1198_v30  ;;  %v1107_v38 = vor.u32 %v1361_v32, %v1104_v33  ;;  %v1110_v40 = vld [vmem:[%s1531_s18 + $0x20] sm:$0xf] }
  0x16   : > { %v1211_v39 = vor.u32 %v1387_v34, %v1208_v35  ;;  %v1364_v41 = vld [vmem:[%s1531_s18 + $0x24] sm:$0xf0]  ;;  %v1206_v42 = vld [vmem:[%s1531_s18 + $0xe0] sm:$0xf]  ;;  %v1363_v44 = vld [vmem:[%s1531_s18 + $0x24] sm:$0xf] }
  0x17   : > { %v1388_v43 = vld [vmem:[%s1531_s18 + $0xe4] sm:$0xf0]  ;;  %v1112_v45 = vld [vmem:[%s1531_s18 + $0x28] sm:$0xf0]  ;;  %v1389_v46 = vld [vmem:[%s1531_s18 + $0xf4] sm:$0xf]  ;;  %v1111_v48 = vor.u32 %v1364_v41, %v1110_v40 }
  0x18   : > { %612 = vmatpush.bf16.msra.mxu0 %v1413_v6  ;;  %1428 = vmatpush.bf16.msra.mxu2 %v1413_v6  ;;  %v1216_v47 = vld [vmem:[%s1531_s18 + $0xf8] sm:$0xf0]  ;;  %v1207_v49 = vor.u32 %v1388_v43, %v1206_v42  ;;  %v1115_v50 = vor.u32 %v1363_v44, %v1112_v45  ;;  %v1118_v52 = vld [vmem:[%s1531_s18 + $0x30] sm:$0xf]  ;;  %v1366_v53 = vld [vmem:[%s1531_s18 + $0x34] sm:$0xf0] }
  0x19   : > { %746 = vmatpush.bf16.msra.mxu1 %v1421_v7  ;;  %1436 = vmatpush.bf16.msra.mxu3 %v1421_v7  ;;  %v1219_v51 = vor.u32 %v1389_v46, %v1216_v47  ;;  %v1214_v54 = vld [vmem:[%s1531_s18 + $0xf0] sm:$0xf]  ;;  %v1390_v55 = vld [vmem:[%s1531_s18 + $0xf4] sm:$0xf0]  ;;  %v1365_v56 = vld [vmem:[%s1531_s18 + $0x34] sm:$0xf]  ;;  %v1119_v60 = vor.u32 %v1366_v53, %v1118_v52 }
  0x1a   : > { %v1120_v57 = vld [vmem:[%s1531_s18 + $0x38] sm:$0xf0]  ;;  %v1391_v58 = vld [vmem:[%s1531_s18 + $0x104] sm:$0xf]  ;;  %v1224_v59 = vld [vmem:[%s1531_s18 + $0x108] sm:$0xf0]  ;;  %v1215_v61 = vor.u32 %v1390_v55, %v1214_v54 }
  0x1b   : > { %v1123_v62 = vor.u32 %v1365_v56, %v1120_v57  ;;  %v1227_v63 = vor.u32 %v1391_v58, %v1224_v59  ;;  %v1126_v0 = vld [vmem:[%s1531_s18 + $0x40] sm:$0xf]  ;;  %v1368_v1 = vld [vmem:[%s1531_s18 + $0x44] sm:$0xf0]  ;;  %v1367_v4 = vld [vmem:[%s1531_s18 + $0x44] sm:$0xf] }
  0x1c   : > { %613 = vmatpush.bf16.msra.mxu0 %v1412_v8  ;;  %1429 = vmatpush.bf16.msra.mxu2 %v1412_v8  ;;  %v1222_v2 = vld [vmem:[%s1531_s18 + $0x100] sm:$0xf]  ;;  %v1392_v3 = vld [vmem:[%s1531_s18 + $0x104] sm:$0xf0]  ;;  %v1128_v5 = vld [vmem:[%s1531_s18 + $0x48] sm:$0xf0]  ;;  %v1127_v8 = vor.u32 %v1368_v1, %v1126_v0 }
  0x1d   : > { %747 = vmatpush.bf16.msra.mxu1 %v1420_v9  ;;  %1437 = vmatpush.bf16.msra.mxu3 %v1420_v9  ;;  %v1393_v6 = vld [vmem:[%s1531_s18 + $0x114] sm:$0xf]  ;;  %v1232_v7 = vld [vmem:[%s1531_s18 + $0x118] sm:$0xf0]  ;;  %v1223_v9 = vor.u32 %v1392_v3, %v1222_v2  ;;  %v1395_v18 = vld [vmem:[%s1531_s18 + $0x124] sm:$0xf] }
  0x1e   : > { %v1369_v16 = vld [vmem:[%s1531_s18 + $0x54] sm:$0xf]  ;;  %v1136_v17 = vld [vmem:[%s1531_s18 + $0x58] sm:$0xf0]  ;;  %v1240_v19 = vld [vmem:[%s1531_s18 + $0x128] sm:$0xf0] }
  0x1f   : > { %v1139_v22 = vor.u32 %v1369_v16, %v1136_v17  ;;  %v1243_v23 = vor.u32 %v1395_v18, %v1240_v19  ;;  %v1371_v28 = vld [vmem:[%s1531_s18 + $0x64] sm:$0xf]  ;;  %v1144_v29 = vld [vmem:[%s1531_s18 + $0x68] sm:$0xf0]  ;;  %v1397_v30 = vld [vmem:[%s1531_s18 + $0x134] sm:$0xf] }
  0x20   : > { %614 = vmatpush.bf16.msra.mxu0 %v1411_v10  ;;  %1430 = vmatpush.bf16.msra.mxu2 %v1411_v10  ;;  %v1131_v10 = vor.u32 %v1367_v4, %v1128_v5  ;;  %v1248_v31 = vld [vmem:[%s1531_s18 + $0x138] sm:$0xf0]  ;;  %v1147_v34 = vor.u32 %v1371_v28, %v1144_v29  ;;  %v1373_v40 = vld [vmem:[%s1531_s18 + $0x74] sm:$0xf]  ;;  %v1399_v42 = vld [vmem:[%s1531_s18 + $0x144] sm:$0xf] }
  0x21   : > { %748 = vmatpush.bf16.msra.mxu1 %v1419_v11  ;;  %1438 = vmatpush.bf16.msra.mxu3 %v1419_v11  ;;  %v1235_v11 = vor.u32 %v1393_v6, %v1232_v7  ;;  %v1251_v35 = vor.u32 %v1397_v30, %v1248_v31  ;;  %v1152_v41 = vld [vmem:[%s1531_s18 + $0x78] sm:$0xf0]  ;;  %v1256_v43 = vld [vmem:[%s1531_s18 + $0x148] sm:$0xf0]  ;;  %v1400_v52 = vld [vmem:[%s1531_s18 + $0x144] sm:$0xf0] }
  0x22   : > { %v1155_v46 = vor.u32 %v1373_v40, %v1152_v41  ;;  %v1259_v47 = vor.u32 %v1399_v42, %v1256_v43  ;;  %v1375_v53 = vld [vmem:[%s1531_s18 + $0x84] sm:$0xf]  ;;  %v1160_v54 = vld [vmem:[%s1531_s18 + $0x88] sm:$0xf0]  ;;  %v1401_v55 = vld [vmem:[%s1531_s18 + $0x154] sm:$0xf] }
  0x23   : > { %v1264_v56 = vld [vmem:[%s1531_s18 + $0x158] sm:$0xf0]  ;;  %v1403_v16 = vld [vmem:[%s1531_s18 + $0x164] sm:$0xf]  ;;  %v1272_v17 = vld [vmem:[%s1531_s18 + $0x168] sm:$0xf0] }
  0x24   : > { %615 = vmatpush.bf16.msra.mxu0 %v1410_v12  ;;  %1431 = vmatpush.bf16.msra.mxu2 %v1410_v12  ;;  %v1134_v12 = vld [vmem:[%s1531_s18 + $0x50] sm:$0xf]  ;;  %v1380_v41 = vld [vmem:[%s1531_s18 + $0xa4] sm:$0xf0]  ;;  %v1270_v42 = vld [vmem:[%s1531_s18 + $0x160] sm:$0xf] }
  0x25   : > { %749 = vmatpush.bf16.msra.mxu1 %v1418_v13  ;;  %1439 = vmatpush.bf16.msra.mxu3 %v1418_v13  ;;  %v1370_v13 = vld [vmem:[%s1531_s18 + $0x54] sm:$0xf0]  ;;  %v1404_v43 = vld [vmem:[%s1531_s18 + $0x164] sm:$0xf0] }
  0x26   : > { %v1135_v20 = vor.u32 %v1370_v13, %v1134_v12  ;;  %v1402_v12 = vld [vmem:[%s1531_s18 + $0x154] sm:$0xf0]  ;;  %v1377_v13 = vld [vmem:[%s1531_s18 + $0x94] sm:$0xf] }
  0x28   : > { %616 = vmatpush.bf16.msra.mxu0 %v1409_v14  ;;  %1432 = vmatpush.bf16.msra.mxu2 %v1409_v14  ;;  %v1230_v14 = vld [vmem:[%s1531_s18 + $0x110] sm:$0xf] }
  0x29   : > { %750 = vmatpush.bf16.msra.mxu1 %v1417_v15  ;;  %1440 = vmatpush.bf16.msra.mxu3 %v1417_v15  ;;  %v1394_v15 = vld [vmem:[%s1531_s18 + $0x114] sm:$0xf0] }
  0x2a   : > { %v1231_v21 = vor.u32 %v1394_v15, %v1230_v14  ;;  %v1168_v14 = vld [vmem:[%s1531_s18 + $0x98] sm:$0xf0] }
  0x2b   : > { %617 = vmatmul.bf16.vlgmr.msra.gmra.mxu0 %v1095_v24  ;;  %677 = vmatmul.bf16.vlgmr.msra.gmra.mxu2 %v1191_v25  ;;  %v1142_v24 = vld [vmem:[%s1531_s18 + $0x60] sm:$0xf]  ;;  %v1372_v25 = vld [vmem:[%s1531_s18 + $0x64] sm:$0xf0] }
  0x2c   : > { %751 = vmatmul.bf16.vlgmr.msra.gmra.mxu1 %v1099_v26  ;;  %816 = vmatmul.bf16.vlgmr.msra.gmra.mxu3 %v1203_v27  ;;  %v1238_v26 = vld [vmem:[%s1531_s18 + $0x120] sm:$0xf]  ;;  %v1396_v27 = vld [vmem:[%s1531_s18 + $0x124] sm:$0xf0]  ;;  %v1143_v32 = vor.u32 %v1372_v25, %v1142_v24  ;;  %v1171_v24 = vor.u32 %v1377_v13, %v1168_v14  ;;  %v1275_v25 = vor.u32 %v1403_v16, %v1272_v17  ;;  %v1278_v16 = vld [vmem:[%s1531_s18 + $0x170] sm:$0xf] }
  0x2d   : > { %v1239_v33 = vor.u32 %v1396_v27, %v1238_v26  ;;  %v1406_v17 = vld [vmem:[%s1531_s18 + $0x174] sm:$0xf0] }
  0x3b   : > { %622 = vmatmul.bf16.gmra.mxu0 %v1103_v36  ;;  %682 = vmatmul.bf16.gmra.mxu2 %v1199_v37  ;;  %v1150_v36 = vld [vmem:[%s1531_s18 + $0x70] sm:$0xf]  ;;  %v1374_v37 = vld [vmem:[%s1531_s18 + $0x74] sm:$0xf0] }
  0x3c   : > { %756 = vmatmul.bf16.gmra.mxu1 %v1107_v38  ;;  %821 = vmatmul.bf16.gmra.mxu3 %v1211_v39  ;;  %v1246_v38 = vld [vmem:[%s1531_s18 + $0x130] sm:$0xf]  ;;  %v1398_v39 = vld [vmem:[%s1531_s18 + $0x134] sm:$0xf0]  ;;  %v1151_v44 = vor.u32 %v1374_v37, %v1150_v36 }
  0x3d   : > { %v1247_v45 = vor.u32 %v1398_v39, %v1246_v38  ;;  %v1174_v38 = vld [vmem:[%s1531_s18 + $0xa0] sm:$0xf] }
  0x4b   : > { %627 = vmatmul.bf16.gmra.mxu0 %v1111_v48  ;;  %687 = vmatmul.bf16.gmra.mxu2 %v1207_v49  ;;  %v1609_v48 = vld [vmem:[%s1814_s2] ss:$0 sm:$0xff] }
  0x4c   : > { %761 = vmatmul.bf16.gmra.mxu1 %v1115_v50  ;;  %826 = vmatmul.bf16.gmra.mxu3 %v1219_v51  ;;  %v1158_v49 = vld [vmem:[%s1531_s18 + $0x80] sm:$0xf]  ;;  %v1376_v50 = vld [vmem:[%s1531_s18 + $0x84] sm:$0xf0] }
  0x4d   : > { %v1254_v51 = vld [vmem:[%s1531_s18 + $0x140] sm:$0xf]  ;;  %v1159_v57 = vor.u32 %v1376_v50, %v1158_v49  ;;  %v1405_v49 = vld [vmem:[%s1531_s18 + $0x174] sm:$0xf]  ;;  %v1280_v50 = vld [vmem:[%s1531_s18 + $0x178] sm:$0xf0] }
  0x4e   : > { %v1255_v58 = vor.u32 %v1400_v52, %v1254_v51 }
  0x5b   : > { %632 = vmatmul.bf16.gmra.mxu0 %v1119_v60  ;;  %692 = vmatmul.bf16.gmra.mxu2 %v1215_v61  ;;  %v1163_v60 = vor.u32 %v1375_v53, %v1160_v54  ;;  %v1267_v61 = vor.u32 %v1401_v55, %v1264_v56  ;;  %v1175_v54 = vor.u32 %v1380_v41, %v1174_v38 }
  0x5c   : > { %766 = vmatmul.bf16.gmra.mxu1 %v1123_v62  ;;  %831 = vmatmul.bf16.gmra.mxu3 %v1227_v63  ;;  %v1271_v55 = vor.u32 %v1404_v43, %v1270_v42 }
  0x6b   : > { %637 = vmatmul.bf16.gmra.mxu0 %v1127_v8  ;;  %697 = vmatmul.bf16.gmra.mxu2 %v1223_v9  ;;  %v1166_v9 = vld [vmem:[%s1531_s18 + $0x90] sm:$0xf] }
  0x6c   : > { %771 = vmatmul.bf16.gmra.mxu1 %v1131_v10  ;;  %836 = vmatmul.bf16.gmra.mxu3 %v1235_v11  ;;  %v1378_v10 = vld [vmem:[%s1531_s18 + $0x94] sm:$0xf0]  ;;  %v1262_v11 = vld [vmem:[%s1531_s18 + $0x150] sm:$0xf] }
  0x7b   : > { %642 = vmatmul.bf16.gmra.mxu0 %v1135_v20  ;;  %702 = vmatmul.bf16.gmra.mxu2 %v1231_v21  ;;  %v1167_v20 = vor.u32 %v1378_v10, %v1166_v9  ;;  %v1263_v21 = vor.u32 %v1402_v12, %v1262_v11  ;;  %v1182_v12 = vld [vmem:[%s1531_s18 + $0xb0] sm:$0xf] }
  0x7c   : > { %776 = vmatmul.bf16.gmra.mxu1 %v1139_v22  ;;  %841 = vmatmul.bf16.gmra.mxu3 %v1243_v23 }
  0x8b   : > { %647 = vmatmul.bf16.gmra.mxu0 %v1143_v32  ;;  %707 = vmatmul.bf16.gmra.mxu2 %v1239_v33 }
  0x8c   : > { %781 = vmatmul.bf16.gmra.mxu1 %v1147_v34  ;;  %846 = vmatmul.bf16.gmra.mxu3 %v1251_v35 }
  0x9b   : > { %652 = vmatmul.bf16.gmra.mxu0 %v1151_v44  ;;  %712 = vmatmul.bf16.gmra.mxu2 %v1247_v45  ;;  %v1379_v44 = vld [vmem:[%s1531_s18 + $0xa4] sm:$0xf]  ;;  %v1176_v45 = vld [vmem:[%s1531_s18 + $0xa8] sm:$0xf0] }
  0x9c   : > { %786 = vmatmul.bf16.gmra.mxu1 %v1155_v46  ;;  %851 = vmatmul.bf16.gmra.mxu3 %v1259_v47 }
  0xa8   : > { %v618_v59 = vpop.f32.mrf.mxu0 }
  0xa9   : > { %v619_v62 = vadd.f32 %v1609_v48, %v618_v59  ;;  %v752_v63 = vpop.f32.mrf.mxu1  ;;  %v1283_v59 = vor.u32 %v1405_v49, %v1280_v50 }
  0xab   : > { %v753_v0 = vadd.f32 %v752_v63, %v619_v62  ;;  %657 = vmatmul.bf16.gmra.mxu0 %v1159_v57  ;;  %717 = vmatmul.bf16.gmra.mxu2 %v1255_v58  ;;  %v1179_v58 = vor.u32 %v1379_v44, %v1176_v45 }
  0xac   : > { %791 = vmatmul.bf16.gmra.mxu1 %v1163_v60  ;;  %856 = vmatmul.bf16.gmra.mxu3 %v1267_v61 }
  0xad   : > { %v877_v1 = vmax.f32 %v753_v0, 0.0 }
  0xae   : > { %v1626_v2 = vpop.f32.mrf.mxu2 }
  0xaf   : > { %v927_v3 = vpack.c.bf16 %v877_v1, %v877_v1  ;;  %v817_v4 = vpop.f32.mrf.mxu3 }
  0xb0   : > { %v620_v5 = vpop.f32.mrf.mxu0 }
  0xb1   : > { %978 = vst.msk [vmem:[%s1624_s4] sm:$0xf] %vm977_vm0, %v927_v3  ;;  %v621_v6 = vadd.f32 %v1609_v48, %v620_v5  ;;  %v754_v7 = vpop.f32.mrf.mxu1 }
  0xb3   : > { %v755_v8 = vadd.f32 %v754_v7, %v621_v6 }
  0xb5   : > { %v878_v15 = vmax.f32 %v755_v8, 0.0 }
  0xb6   : > { %v1639_v18 = vpop.f32.mrf.mxu2 }
  0xb7   : > { %v928_v19 = vpack.c.bf16 %v878_v15, %v878_v15  ;;  %v819_v22 = vpop.f32.mrf.mxu3  ;;  %v1382_v15 = vld [vmem:[%s1531_s18 + $0xb4] sm:$0xf0] }
  0xb8   : > { %v623_v23 = vpop.f32.mrf.mxu0 }
  0xb9   : > { %979 = vst.msk [vmem:[%s1624_s4 + $0x4] sm:$0xf] %vm977_vm0, %v928_v19  ;;  %v624_v26 = vadd.f32 %v1609_v48, %v623_v23  ;;  %v757_v27 = vpop.f32.mrf.mxu1  ;;  %v1381_v19 = vld [vmem:[%s1531_s18 + $0xb4] sm:$0xf]  ;;  %v1407_v23 = vld [vmem:[%s1531_s18 + $0x184] sm:$0xf] }
  0xbb   : > { %v758_v28 = vadd.f32 %v757_v27, %v624_v26  ;;  %662 = vmatmul.bf16.gmra.mxu0 %v1167_v20  ;;  %722 = vmatmul.bf16.gmra.mxu2 %v1263_v21  ;;  %v1184_v20 = vld [vmem:[%s1531_s18 + $0xb8] sm:$0xf0] }
  0xbc   : > { %796 = vmatmul.bf16.gmra.mxu1 %v1171_v24  ;;  %861 = vmatmul.bf16.gmra.mxu3 %v1275_v25  ;;  %v1288_v24 = vld [vmem:[%s1531_s18 + $0x188] sm:$0xf0] }
  0xbd   : > { %v879_v29 = vmax.f32 %v758_v28, 0.0  ;;  %v1183_v28 = vor.u32 %v1382_v15, %v1182_v12 }
  0xbe   : > { %v683_v30 = vpop.f32.mrf.mxu2 }
  0xbf   : > { %v929_v31 = vpack.c.bf16 %v879_v29, %v879_v29  ;;  %v684_v32 = vadd.f32 %v1609_v48, %v683_v30  ;;  %v822_v33 = vpop.f32.mrf.mxu3  ;;  %v1279_v29 = vor.u32 %v1406_v17, %v1278_v16 }
  0xc0   : > { %v625_v34 = vpop.f32.mrf.mxu0 }
  0xc1   : > { %980 = vst.msk [vmem:[%s1624_s4 + $0x8] sm:$0xf] %vm977_vm0, %v929_v31  ;;  %v818_v35 = vadd.f32 %v817_v4, %v684_v32  ;;  %v626_v36 = vadd.f32 %v1609_v48, %v625_v34  ;;  %v759_v37 = vpop.f32.mrf.mxu1  ;;  %v1187_v32 = vor.u32 %v1381_v19, %v1184_v20 }
  0xc3   : > { %v903_v39 = vmax.f32 %v818_v35, 0.0  ;;  %v760_v40 = vadd.f32 %v759_v37, %v626_v36 }
  0xc5   : > { %v953_v46 = vpack.c.bf16 %v903_v39, %v903_v39  ;;  %v880_v47 = vmax.f32 %v760_v40, 0.0 }
  0xc6   : > { %v685_v51 = vpop.f32.mrf.mxu2 }
  0xc7   : > { %1004 = vst.msk [vmem:[%s1624_s4 + $0x68] sm:$0xf] %vm977_vm0, %v953_v46  ;;  %v930_v52 = vpack.c.bf16 %v880_v47, %v880_v47  ;;  %v686_v53 = vadd.f32 %v1609_v48, %v685_v51  ;;  %v824_v56 = vpop.f32.mrf.mxu3 }
  0xc8   : > { %v628_v57 = vpop.f32.mrf.mxu0 }
  0xc9   : > { %981 = vst.msk [vmem:[%s1624_s4 + $0xc] sm:$0xf] %vm977_vm0, %v930_v52  ;;  %v820_v60 = vadd.f32 %v819_v22, %v686_v53  ;;  %v629_v61 = vadd.f32 %v1609_v48, %v628_v57  ;;  %v762_v62 = vpop.f32.mrf.mxu1  ;;  %v1286_v52 = vld [vmem:[%s1531_s18 + $0x180] sm:$0xf]  ;;  %v1408_v53 = vld [vmem:[%s1531_s18 + $0x184] sm:$0xf0] }
  0xca   : > { %v1192_v57 = vld [vmem:[%s1531_s18 + $0xc8] sm:$0xf0] }
  0xcb   : > { %v904_v63 = vmax.f32 %v820_v60, 0.0  ;;  %v763_v0 = vadd.f32 %v762_v62, %v629_v61  ;;  %667 = vmatmul.bf16.gmra.mxu0 %v1175_v54  ;;  %727 = vmatmul.bf16.gmra.mxu2 %v1271_v55  ;;  %v1287_v61 = vor.u32 %v1408_v53, %v1286_v52 }
  0xcc   : > { %801 = vmatmul.bf16.gmra.mxu1 %v1179_v58  ;;  %866 = vmatmul.bf16.gmra.mxu3 %v1283_v59 }
  0xcd   : > { %v954_v1 = vpack.c.bf16 %v904_v63, %v904_v63  ;;  %v881_v3 = vmax.f32 %v763_v0, 0.0 }
  0xce   : > { %v688_v4 = vpop.f32.mrf.mxu2 }
  0xcf   : > { %1005 = vst.msk [vmem:[%s1624_s4 + $0x6c] sm:$0xf] %vm977_vm0, %v954_v1  ;;  %v931_v5 = vpack.c.bf16 %v881_v3, %v881_v3  ;;  %v689_v6 = vadd.f32 %v1609_v48, %v688_v4  ;;  %v827_v7 = vpop.f32.mrf.mxu3 }
  0xd0   : > { %v630_v8 = vpop.f32.mrf.mxu0 }
  0xd1   : > { %982 = vst.msk [vmem:[%s1624_s4 + $0x10] sm:$0xf] %vm977_vm0, %v931_v5  ;;  %v823_v9 = vadd.f32 %v822_v33, %v689_v6  ;;  %v631_v10 = vadd.f32 %v1609_v48, %v630_v8  ;;  %v764_v11 = vpop.f32.mrf.mxu1  ;;  %v1291_v33 = vor.u32 %v1407_v23, %v1288_v24 }
  0xd3   : > { %v905_v13 = vmax.f32 %v823_v9, 0.0  ;;  %v765_v14 = vadd.f32 %v764_v11, %v631_v10 }
  0xd5   : > { %v955_v21 = vpack.c.bf16 %v905_v13, %v905_v13  ;;  %v882_v22 = vmax.f32 %v765_v14, 0.0 }
  0xd6   : > { %v690_v25 = vpop.f32.mrf.mxu2 }
  0xd7   : > { %1006 = vst.msk [vmem:[%s1624_s4 + $0x70] sm:$0xf] %vm977_vm0, %v955_v21  ;;  %v932_v26 = vpack.c.bf16 %v882_v22, %v882_v22  ;;  %v691_v27 = vadd.f32 %v1609_v48, %v690_v25  ;;  %v829_v30 = vpop.f32.mrf.mxu3 }
  0xd8   : > { %v633_v31 = vpop.f32.mrf.mxu0 }
  0xd9   : > { %983 = vst.msk [vmem:[%s1624_s4 + $0x14] sm:$0xf] %vm977_vm0, %v932_v26  ;;  %v825_v34 = vadd.f32 %v824_v56, %v691_v27  ;;  %v634_v35 = vadd.f32 %v1609_v48, %v633_v31  ;;  %v767_v36 = vpop.f32.mrf.mxu1  ;;  %v1383_v56 = vld [vmem:[%s1531_s18 + $0xc4] sm:$0xf] }
  0xda   : > { %v1195_v0 = vor.u32 %v1383_v56, %v1192_v57 }
  0xdb   : > { %v906_v37 = vmax.f32 %v825_v34, 0.0  ;;  %v768_v38 = vadd.f32 %v767_v36, %v634_v35  ;;  %672 = vmatmul.bf16.gmra.mxu0 %v1183_v28  ;;  %732 = vmatmul.bf16.gmra.mxu2 %v1279_v29 }
  0xdc   : > { %806 = vmatmul.bf16.gmra.mxu1 %v1187_v32  ;;  %871 = vmatmul.bf16.gmra.mxu3 %v1291_v33 }
  0xdd   : > { %v956_v39 = vpack.c.bf16 %v906_v37, %v906_v37  ;;  %v883_v40 = vmax.f32 %v768_v38, 0.0 }
  0xde   : > { %v693_v41 = vpop.f32.mrf.mxu2 }
  0xdf   : > { %1007 = vst.msk [vmem:[%s1624_s4 + $0x74] sm:$0xf] %vm977_vm0, %v956_v39  ;;  %v933_v42 = vpack.c.bf16 %v883_v40, %v883_v40  ;;  %v694_v43 = vadd.f32 %v1609_v48, %v693_v41  ;;  %v832_v44 = vpop.f32.mrf.mxu3 }
  0xe0   : > { %v635_v45 = vpop.f32.mrf.mxu0 }
  0xe1   : > { %984 = vst.msk [vmem:[%s1624_s4 + $0x18] sm:$0xf] %vm977_vm0, %v933_v42  ;;  %v828_v46 = vadd.f32 %v827_v7, %v694_v43  ;;  %v636_v47 = vadd.f32 %v1609_v48, %v635_v45  ;;  %v769_v49 = vpop.f32.mrf.mxu1 }
  0xe3   : > { %v907_v50 = vmax.f32 %v828_v46, 0.0  ;;  %v770_v51 = vadd.f32 %v769_v49, %v636_v47 }
  0xe5   : > { %v957_v54 = vpack.c.bf16 %v907_v50, %v907_v50  ;;  %v884_v55 = vmax.f32 %v770_v51, 0.0 }
  0xe6   : > { %v695_v58 = vpop.f32.mrf.mxu2 }
  0xe7   : > { %1008 = vst.msk [vmem:[%s1624_s4 + $0x78] sm:$0xf] %vm977_vm0, %v957_v54  ;;  %v934_v59 = vpack.c.bf16 %v884_v55, %v884_v55  ;;  %v696_v60 = vadd.f32 %v1609_v48, %v695_v58  ;;  %v834_v62 = vpop.f32.mrf.mxu3 }
  0xe8   : > { %v638_v63 = vpop.f32.mrf.mxu0 }
  0xe9   : > { %985 = vst.msk [vmem:[%s1624_s4 + $0x1c] sm:$0xf] %vm977_vm0, %v934_v59  ;;  %v830_v1 = vadd.f32 %v829_v30, %v696_v60  ;;  %v639_v3 = vadd.f32 %v1609_v48, %v638_v63  ;;  %v772_v4 = vpop.f32.mrf.mxu1 }
  0xeb   : > { %v908_v5 = vmax.f32 %v830_v1, 0.0  ;;  %v773_v6 = vadd.f32 %v772_v4, %v639_v3  ;;  %737 = vmatmul.bf16.gmra.mxu2 %v1287_v61 }
  0xec   : > { %811 = vmatmul.bf16.gmra.mxu1 %v1195_v0 }
  0xed   : > { %v958_v7 = vpack.c.bf16 %v908_v5, %v908_v5  ;;  %v885_v8 = vmax.f32 %v773_v6, 0.0 }
  0xee   : > { %v698_v9 = vpop.f32.mrf.mxu2 }
  0xef   : > { %1009 = vst.msk [vmem:[%s1624_s4 + $0x7c] sm:$0xf] %vm977_vm0, %v958_v7  ;;  %v935_v10 = vpack.c.bf16 %v885_v8, %v885_v8  ;;  %v699_v11 = vadd.f32 %v1609_v48, %v698_v9  ;;  %v837_v12 = vpop.f32.mrf.mxu3 }
  0xf0   : > { %v640_v13 = vpop.f32.mrf.mxu0 }
  0xf1   : > { %986 = vst.msk [vmem:[%s1624_s4 + $0x20] sm:$0xf] %vm977_vm0, %v935_v10  ;;  %v833_v14 = vadd.f32 %v832_v44, %v699_v11  ;;  %v641_v15 = vadd.f32 %v1609_v48, %v640_v13  ;;  %v774_v16 = vpop.f32.mrf.mxu1 }
  0xf3   : > { %v909_v17 = vmax.f32 %v833_v14, 0.0  ;;  %v775_v19 = vadd.f32 %v774_v16, %v641_v15 }
  0xf5   : > { %v959_v20 = vpack.c.bf16 %v909_v17, %v909_v17  ;;  %v886_v21 = vmax.f32 %v775_v19, 0.0 }
  0xf6   : > { %v700_v22 = vpop.f32.mrf.mxu2 }
  0xf7   : > { %1010 = vst.msk [vmem:[%s1624_s4 + $0x80] sm:$0xf] %vm977_vm0, %v959_v20  ;;  %v936_v23 = vpack.c.bf16 %v886_v21, %v886_v21  ;;  %v701_v24 = vadd.f32 %v1609_v48, %v700_v22  ;;  %v839_v25 = vpop.f32.mrf.mxu3 }
  0xf8   : > { %v643_v26 = vpop.f32.mrf.mxu0 }
  0xf9   : > { %987 = vst.msk [vmem:[%s1624_s4 + $0x24] sm:$0xf] %vm977_vm0, %v936_v23  ;;  %v835_v27 = vadd.f32 %v834_v62, %v701_v24  ;;  %v644_v28 = vadd.f32 %v1609_v48, %v643_v26  ;;  %v777_v29 = vpop.f32.mrf.mxu1 }
  0xfb   : > { %v910_v30 = vmax.f32 %v835_v27, 0.0  ;;  %v778_v31 = vadd.f32 %v777_v29, %v644_v28 }
  0xfd   : > { %v960_v32 = vpack.c.bf16 %v910_v30, %v910_v30  ;;  %v887_v33 = vmax.f32 %v778_v31, 0.0 }
  0xfe   : > { %v703_v34 = vpop.f32.mrf.mxu2 }
  0xff   : > { %1011 = vst.msk [vmem:[%s1624_s4 + $0x84] sm:$0xf] %vm977_vm0, %v960_v32  ;;  %v937_v35 = vpack.c.bf16 %v887_v33, %v887_v33  ;;  %v704_v36 = vadd.f32 %v1609_v48, %v703_v34  ;;  %v842_v37 = vpop.f32.mrf.mxu3 }
 0x100   : > { %v645_v38 = vpop.f32.mrf.mxu0 }
 0x101   : > { %988 = vst.msk [vmem:[%s1624_s4 + $0x28] sm:$0xf] %vm977_vm0, %v937_v35  ;;  %v838_v39 = vadd.f32 %v837_v12, %v704_v36  ;;  %v646_v40 = vadd.f32 %v1609_v48, %v645_v38  ;;  %v779_v41 = vpop.f32.mrf.mxu1 }
 0x103   : > { %v911_v42 = vmax.f32 %v838_v39, 0.0  ;;  %v780_v43 = vadd.f32 %v779_v41, %v646_v40 }
 0x105   : > { %v961_v44 = vpack.c.bf16 %v911_v42, %v911_v42  ;;  %v888_v45 = vmax.f32 %v780_v43, 0.0 }
 0x106   : > { %v705_v46 = vpop.f32.mrf.mxu2 }
 0x107   : > { %1012 = vst.msk [vmem:[%s1624_s4 + $0x88] sm:$0xf] %vm977_vm0, %v961_v44  ;;  %v938_v47 = vpack.c.bf16 %v888_v45, %v888_v45  ;;  %v706_v49 = vadd.f32 %v1609_v48, %v705_v46  ;;  %v844_v50 = vpop.f32.mrf.mxu3 }
 0x108   : > { %v648_v51 = vpop.f32.mrf.mxu0 }
 0x109   : > { %989 = vst.msk [vmem:[%s1624_s4 + $0x2c] sm:$0xf] %vm977_vm0, %v938_v47  ;;  %v840_v52 = vadd.f32 %v839_v25, %v706_v49  ;;  %v649_v53 = vadd.f32 %v1609_v48, %v648_v51  ;;  %v782_v54 = vpop.f32.mrf.mxu1 }
 0x10b   : > { %v912_v55 = vmax.f32 %v840_v52, 0.0  ;;  %v783_v56 = vadd.f32 %v782_v54, %v649_v53 }
 0x10d   : > { %v962_v57 = vpack.c.bf16 %v912_v55, %v912_v55  ;;  %v889_v58 = vmax.f32 %v783_v56, 0.0 }
 0x10e   : > { %v708_v59 = vpop.f32.mrf.mxu2 }
 0x10f   : > { %1013 = vst.msk [vmem:[%s1624_s4 + $0x8c] sm:$0xf] %vm977_vm0, %v962_v57  ;;  %v939_v60 = vpack.c.bf16 %v889_v58, %v889_v58  ;;  %v709_v61 = vadd.f32 %v1609_v48, %v708_v59  ;;  %v847_v62 = vpop.f32.mrf.mxu3 }
 0x110   : > { %v650_v63 = vpop.f32.mrf.mxu0 }
 0x111   : > { %990 = vst.msk [vmem:[%s1624_s4 + $0x30] sm:$0xf] %vm977_vm0, %v939_v60  ;;  %v843_v0 = vadd.f32 %v842_v37, %v709_v61  ;;  %v651_v1 = vadd.f32 %v1609_v48, %v650_v63  ;;  %v784_v3 = vpop.f32.mrf.mxu1 }
 0x113   : > { %v913_v4 = vmax.f32 %v843_v0, 0.0  ;;  %v785_v5 = vadd.f32 %v784_v3, %v651_v1 }
 0x115   : > { %v963_v6 = vpack.c.bf16 %v913_v4, %v913_v4  ;;  %v890_v7 = vmax.f32 %v785_v5, 0.0 }
 0x116   : > { %v710_v8 = vpop.f32.mrf.mxu2 }
 0x117   : > { %1014 = vst.msk [vmem:[%s1624_s4 + $0x90] sm:$0xf] %vm977_vm0, %v963_v6  ;;  %v940_v9 = vpack.c.bf16 %v890_v7, %v890_v7  ;;  %v711_v10 = vadd.f32 %v1609_v48, %v710_v8  ;;  %v849_v11 = vpop.f32.mrf.mxu3 }
 0x118   : > { %v653_v12 = vpop.f32.mrf.mxu0 }
 0x119   : > { %991 = vst.msk [vmem:[%s1624_s4 + $0x34] sm:$0xf] %vm977_vm0, %v940_v9  ;;  %v845_v13 = vadd.f32 %v844_v50, %v711_v10  ;;  %v654_v14 = vadd.f32 %v1609_v48, %v653_v12  ;;  %v787_v15 = vpop.f32.mrf.mxu1 }
 0x11b   : > { %v914_v16 = vmax.f32 %v845_v13, 0.0  ;;  %v788_v17 = vadd.f32 %v787_v15, %v654_v14 }
 0x11d   : > { %v964_v19 = vpack.c.bf16 %v914_v16, %v914_v16  ;;  %v891_v20 = vmax.f32 %v788_v17, 0.0 }
 0x11e   : > { %v713_v21 = vpop.f32.mrf.mxu2 }
 0x11f   : > { %1015 = vst.msk [vmem:[%s1624_s4 + $0x94] sm:$0xf] %vm977_vm0, %v964_v19  ;;  %v941_v22 = vpack.c.bf16 %v891_v20, %v891_v20  ;;  %v714_v23 = vadd.f32 %v1609_v48, %v713_v21  ;;  %v852_v24 = vpop.f32.mrf.mxu3 }
 0x120   : > { %v655_v25 = vpop.f32.mrf.mxu0 }
 0x121   : > { %992 = vst.msk [vmem:[%s1624_s4 + $0x38] sm:$0xf] %vm977_vm0, %v941_v22  ;;  %v848_v26 = vadd.f32 %v847_v62, %v714_v23  ;;  %v656_v27 = vadd.f32 %v1609_v48, %v655_v25  ;;  %v789_v28 = vpop.f32.mrf.mxu1 }
 0x123   : > { %v915_v29 = vmax.f32 %v848_v26, 0.0  ;;  %v790_v30 = vadd.f32 %v789_v28, %v656_v27 }
 0x125   : > { %v965_v31 = vpack.c.bf16 %v915_v29, %v915_v29  ;;  %v892_v32 = vmax.f32 %v790_v30, 0.0 }
 0x126   : > { %v715_v33 = vpop.f32.mrf.mxu2 }
 0x127   : > { %1016 = vst.msk [vmem:[%s1624_s4 + $0x98] sm:$0xf] %vm977_vm0, %v965_v31  ;;  %v942_v34 = vpack.c.bf16 %v892_v32, %v892_v32  ;;  %v716_v35 = vadd.f32 %v1609_v48, %v715_v33  ;;  %v854_v37 = vpop.f32.mrf.mxu3 }
 0x128   : > { %v658_v36 = vpop.f32.mrf.mxu0 }
 0x129   : > { %993 = vst.msk [vmem:[%s1624_s4 + $0x3c] sm:$0xf] %vm977_vm0, %v942_v34  ;;  %v850_v38 = vadd.f32 %v849_v11, %v716_v35  ;;  %v659_v39 = vadd.f32 %v1609_v48, %v658_v36  ;;  %v792_v40 = vpop.f32.mrf.mxu1 }
 0x12b   : > { %v916_v41 = vmax.f32 %v850_v38, 0.0  ;;  %v793_v42 = vadd.f32 %v792_v40, %v659_v39 }
 0x12d   : > { %v966_v43 = vpack.c.bf16 %v916_v41, %v916_v41  ;;  %v893_v44 = vmax.f32 %v793_v42, 0.0 }
 0x12e   : > { %v718_v45 = vpop.f32.mrf.mxu2 }
 0x12f   : > { %1017 = vst.msk [vmem:[%s1624_s4 + $0x9c] sm:$0xf] %vm977_vm0, %v966_v43  ;;  %v943_v46 = vpack.c.bf16 %v893_v44, %v893_v44  ;;  %v719_v47 = vadd.f32 %v1609_v48, %v718_v45  ;;  %v857_v53 = vpop.f32.mrf.mxu3 }
 0x130   : > { %v660_v49 = vpop.f32.mrf.mxu0 }
 0x131   : > { %994 = vst.msk [vmem:[%s1624_s4 + $0x40] sm:$0xf] %vm977_vm0, %v943_v46  ;;  %v853_v50 = vadd.f32 %v852_v24, %v719_v47  ;;  %v661_v51 = vadd.f32 %v1609_v48, %v660_v49  ;;  %v794_v52 = vpop.f32.mrf.mxu1 }
 0x133   : > { %v917_v54 = vmax.f32 %v853_v50, 0.0  ;;  %v795_v55 = vadd.f32 %v794_v52, %v661_v51 }
 0x135   : > { %v967_v56 = vpack.c.bf16 %v917_v54, %v917_v54  ;;  %v894_v57 = vmax.f32 %v795_v55, 0.0 }
 0x136   : > { %v720_v58 = vpop.f32.mrf.mxu2 }
 0x137   : > { %1018 = vst.msk [vmem:[%s1624_s4 + $0xa0] sm:$0xf] %vm977_vm0, %v967_v56  ;;  %v944_v59 = vpack.c.bf16 %v894_v57, %v894_v57  ;;  %v721_v60 = vadd.f32 %v1609_v48, %v720_v58  ;;  %v859_v4 = vpop.f32.mrf.mxu3 }
 0x138   : > { %v663_v61 = vpop.f32.mrf.mxu0 }
 0x139   : > { %995 = vst.msk [vmem:[%s1624_s4 + $0x44] sm:$0xf] %vm977_vm0, %v944_v59  ;;  %v855_v62 = vadd.f32 %v854_v37, %v721_v60  ;;  %v664_v63 = vadd.f32 %v1609_v48, %v663_v61  ;;  %v797_v0 = vpop.f32.mrf.mxu1 }
 0x13b   : > { %v918_v1 = vmax.f32 %v855_v62, 0.0  ;;  %v798_v3 = vadd.f32 %v797_v0, %v664_v63 }
 0x13d   : > { %v968_v5 = vpack.c.bf16 %v918_v1, %v918_v1  ;;  %v895_v6 = vmax.f32 %v798_v3, 0.0 }
 0x13e   : > { %v723_v7 = vpop.f32.mrf.mxu2 }
 0x13f   : > { %1019 = vst.msk [vmem:[%s1624_s4 + $0xa4] sm:$0xf] %vm977_vm0, %v968_v5  ;;  %v945_v8 = vpack.c.bf16 %v895_v6, %v895_v6  ;;  %v724_v9 = vadd.f32 %v1609_v48, %v723_v7  ;;  %v862_v20 = vpop.f32.mrf.mxu3 }
 0x140   : > { %v665_v10 = vpop.f32.mrf.mxu0 }
 0x141   : > { %996 = vst.msk [vmem:[%s1624_s4 + $0x48] sm:$0xf] %vm977_vm0, %v945_v8  ;;  %v858_v11 = vadd.f32 %v857_v53, %v724_v9  ;;  %v666_v12 = vadd.f32 %v1609_v48, %v665_v10  ;;  %v799_v13 = vpop.f32.mrf.mxu1  ;;  %v679_v8 = vadd.f32 %v1609_v48, %v1626_v2  ;;  %v681_v2 = vadd.f32 %v1609_v48, %v1639_v18 }
 0x143   : > { %v919_v14 = vmax.f32 %v858_v11, 0.0  ;;  %v800_v15 = vadd.f32 %v799_v13, %v666_v12 }
 0x145   : > { %v969_v16 = vpack.c.bf16 %v919_v14, %v919_v14  ;;  %v896_v17 = vmax.f32 %v800_v15, 0.0 }
 0x146   : > { %v725_v19 = vpop.f32.mrf.mxu2 }
 0x147   : > { %1020 = vst.msk [vmem:[%s1624_s4 + $0xa8] sm:$0xf] %vm977_vm0, %v969_v16  ;;  %v946_v21 = vpack.c.bf16 %v896_v17, %v896_v17  ;;  %v726_v22 = vadd.f32 %v1609_v48, %v725_v19  ;;  %v864_v35 = vpop.f32.mrf.mxu3 }
 0x148   : > { %v668_v23 = vpop.f32.mrf.mxu0 }
 0x149   : > { %997 = vst.msk [vmem:[%s1624_s4 + $0x4c] sm:$0xf] %vm977_vm0, %v946_v21  ;;  %v860_v24 = vadd.f32 %v859_v4, %v726_v22  ;;  %v669_v25 = vadd.f32 %v1609_v48, %v668_v23  ;;  %v802_v26 = vpop.f32.mrf.mxu1 }
 0x14b   : > { %v920_v27 = vmax.f32 %v860_v24, 0.0  ;;  %v803_v28 = vadd.f32 %v802_v26, %v669_v25 }
 0x14d   : > { %v970_v29 = vpack.c.bf16 %v920_v27, %v920_v27  ;;  %v897_v30 = vmax.f32 %v803_v28, 0.0 }
 0x14e   : > { %v728_v31 = vpop.f32.mrf.mxu2 }
 0x14f   : > { %1021 = vst.msk [vmem:[%s1624_s4 + $0xac] sm:$0xf] %vm977_vm0, %v970_v29  ;;  %v947_v32 = vpack.c.bf16 %v897_v30, %v897_v30  ;;  %v729_v33 = vadd.f32 %v1609_v48, %v728_v31  ;;  %v867_v51 = vpop.f32.mrf.mxu3 }
 0x150   : > { %v670_v34 = vpop.f32.mrf.mxu0 }
 0x151   : > { %998 = vst.msk [vmem:[%s1624_s4 + $0x50] sm:$0xf] %vm977_vm0, %v947_v32  ;;  %v863_v36 = vadd.f32 %v862_v20, %v729_v33  ;;  %v671_v37 = vadd.f32 %v1609_v48, %v670_v34  ;;  %v804_v38 = vpop.f32.mrf.mxu1 }
 0x153   : > { %v921_v39 = vmax.f32 %v863_v36, 0.0  ;;  %v805_v40 = vadd.f32 %v804_v38, %v671_v37 }
 0x155   : > { %v971_v41 = vpack.c.bf16 %v921_v39, %v921_v39  ;;  %v898_v42 = vmax.f32 %v805_v40, 0.0 }
 0x156   : > { %v730_v43 = vpop.f32.mrf.mxu2 }
 0x157   : > { %1022 = vst.msk [vmem:[%s1624_s4 + $0xb0] sm:$0xf] %vm977_vm0, %v971_v41  ;;  %v948_v44 = vpack.c.bf16 %v898_v42, %v898_v42  ;;  %v731_v45 = vadd.f32 %v1609_v48, %v730_v43  ;;  %v869_v1 = vpop.f32.mrf.mxu3 }
 0x158   : > { %v673_v46 = vpop.f32.mrf.mxu0 }
 0x159   : > { %999 = vst.msk [vmem:[%s1624_s4 + $0x54] sm:$0xf] %vm977_vm0, %v948_v44  ;;  %v865_v47 = vadd.f32 %v864_v35, %v731_v45  ;;  %v674_v49 = vadd.f32 %v1609_v48, %v673_v46  ;;  %v807_v50 = vpop.f32.mrf.mxu1 }
 0x15b   : > { %v922_v52 = vmax.f32 %v865_v47, 0.0  ;;  %v808_v53 = vadd.f32 %v807_v50, %v674_v49 }
 0x15d   : > { %v972_v54 = vpack.c.bf16 %v922_v52, %v922_v52  ;;  %v899_v55 = vmax.f32 %v808_v53, 0.0 }
 0x15e   : > { %v733_v56 = vpop.f32.mrf.mxu2 }
 0x15f   : > { %1023 = vst.msk [vmem:[%s1624_s4 + $0xb4] sm:$0xf] %vm977_vm0, %v972_v54  ;;  %v949_v57 = vpack.c.bf16 %v899_v55, %v899_v55  ;;  %v734_v58 = vadd.f32 %v1609_v48, %v733_v56  ;;  %v872_v16 = vpop.f32.mrf.mxu3 }
 0x160   : > { %v675_v59 = vpop.f32.mrf.mxu0 }
 0x161   : > { %1000 = vst.msk [vmem:[%s1624_s4 + $0x58] sm:$0xf] %vm977_vm0, %v949_v57  ;;  %v868_v60 = vadd.f32 %v867_v51, %v734_v58  ;;  %v676_v61 = vadd.f32 %v1609_v48, %v675_v59  ;;  %v809_v62 = vpop.f32.mrf.mxu1 }
 0x163   : > { %v923_v63 = vmax.f32 %v868_v60, 0.0  ;;  %v810_v0 = vadd.f32 %v809_v62, %v676_v61 }
 0x165   : > { %v973_v3 = vpack.c.bf16 %v923_v63, %v923_v63  ;;  %v900_v4 = vmax.f32 %v810_v0, 0.0 }
 0x166   : > { %v735_v5 = vpop.f32.mrf.mxu2 }
 0x167   : > { %1024 = vst.msk [vmem:[%s1624_s4 + $0xb8] sm:$0xf] %vm977_vm0, %v973_v3  ;;  %v950_v6 = vpack.c.bf16 %v900_v4, %v900_v4  ;;  %v736_v7 = vadd.f32 %v1609_v48, %v735_v5  ;;  %v874_v29 = vpop.f32.mrf.mxu3 }
 0x169   : > { %1001 = vst.msk [vmem:[%s1624_s4 + $0x5c] sm:$0xf] %vm977_vm0, %v950_v6  ;;  %v870_v9 = vadd.f32 %v869_v1, %v736_v7  ;;  %v812_v10 = vpop.f32.mrf.mxu1 }
 0x16a   : > { %v813_v11 = vadd.f32 %v812_v10, %v679_v8 }
 0x16b   : > { %v924_v12 = vmax.f32 %v870_v9, 0.0 }
 0x16c   : > { %v901_v13 = vmax.f32 %v813_v11, 0.0 }
 0x16d   : > { %v974_v14 = vpack.c.bf16 %v924_v12, %v924_v12 }
 0x16e   : > { %v951_v15 = vpack.c.bf16 %v901_v13, %v901_v13  ;;  %v738_v17 = vpop.f32.mrf.mxu2 }
 0x16f   : > { %1025 = vst.msk [vmem:[%s1624_s4 + $0xbc] sm:$0xf] %vm977_vm0, %v974_v14  ;;  %v739_v19 = vadd.f32 %v1609_v48, %v738_v17 }
 0x170   : > { %1002 = vst.msk [vmem:[%s1624_s4 + $0x60] sm:$0xf] %vm977_vm0, %v951_v15 }
 0x171   : > { %v873_v20 = vadd.f32 %v872_v16, %v739_v19  ;;  %v814_v21 = vpop.f32.mrf.mxu1 }
 0x172   : > { %v815_v22 = vadd.f32 %v814_v21, %v681_v2 }
 0x173   : > { %v925_v23 = vmax.f32 %v873_v20, 0.0 }
 0x174   : > { %v902_v24 = vmax.f32 %v815_v22, 0.0 }
 0x175   : > { %v975_v25 = vpack.c.bf16 %v925_v23, %v925_v23 }
 0x176   : > { %v952_v26 = vpack.c.bf16 %v902_v24, %v902_v24  ;;  %v740_v27 = vpop.f32.mrf.mxu2 }
 0x177   : > { %1026 = vst.msk [vmem:[%s1624_s4 + $0xc0] sm:$0xf] %vm977_vm0, %v975_v25  ;;  %v741_v28 = vadd.f32 %v1609_v48, %v740_v27 }
 0x178   : > { %1003 = vst.msk [vmem:[%s1624_s4 + $0x64] sm:$0xf] %vm977_vm0, %v952_v26 }
 0x179   : > { %v875_v30 = vadd.f32 %v874_v29, %v741_v28 }
 0x17b   : > { %v926_v18 = vmax.f32 %v875_v30, 0.0 }
 0x17d   : > { %v976_v31 = vpack.c.bf16 %v926_v18, %v926_v18 }
 0x17f   : > { %1027 = vst.msk [vmem:[%s1624_s4 + $0xc4] sm:$0xf] %vm977_vm0, %v976_v31 }
 0x180 PF: > { %s13_s12 = sadd.s32 1, %s1456_s12  }
 0x181   : > { %p10_p4 = scmp.ge.s32.totalorder %s13_s12, 4  }
 0x183   :  { %12 = sbr.rel (!%p10_p4) target bundleno = 1 (0x1), region = 62 }

// kernel: dueling_forward.5
= control target key start
LH: loop header
LB: loop body
LE: loop exit
PB: predicated region body
PF: predicated region fallthrough
CT: control target
= control target key end

     0   :  { %vm824_vm0 = vcmask 519168   ;;  %s1683_s1 = inlined_call_operand.vmem [shape: bf16[512,64], index: 1, kind: input, shape index: {}]   ;;  %s1684_s2 = inlined_call_operand.vmem [shape: f32[1,64], index: 2, kind: input, shape index: {}]   ;;  %s1685_s0 = inlined_call_operand.vmem [shape: bf16[168,512], index: 0, kind: input, shape index: {}]   ;;  %s1686_s3 = inlined_call_operand.vmem [shape: bf16[168,64], index: 3, kind: output, shape index: {}]  }
   0x1   :  { %v1185_v0 = vld [vmem:[%s1683_s1 + $0x38] sm:$0xff]  ;;  %v1184_v4 = vld [vmem:[%s1683_s1 + $0x30] sm:$0xff]  ;;  %v1183_v8 = vld [vmem:[%s1683_s1 + $0x28] sm:$0xff] }
   0x2   :  { %v1193_v1 = vld [vmem:[%s1683_s1 + $0x78] sm:$0xff]  ;;  %530 = vmatpush.bf16.msra.mxu0 %v1185_v0  ;;  %v1192_v5 = vld [vmem:[%s1683_s1 + $0x70] sm:$0xff]  ;;  %v1191_v9 = vld [vmem:[%s1683_s1 + $0x68] sm:$0xff] }
   0x3   :  { %v1201_v2 = vld [vmem:[%s1683_s1 + $0xb8] sm:$0xff]  ;;  %593 = vmatpush.bf16.msra.mxu1 %v1193_v1  ;;  %v1200_v6 = vld [vmem:[%s1683_s1 + $0xb0] sm:$0xff]  ;;  %v1199_v10 = vld [vmem:[%s1683_s1 + $0xa8] sm:$0xff] }
   0x4   :  { %v1209_v3 = vld [vmem:[%s1683_s1 + $0xf8] sm:$0xff]  ;;  %656 = vmatpush.bf16.msra.mxu2 %v1201_v2  ;;  %v1208_v7 = vld [vmem:[%s1683_s1 + $0xf0] sm:$0xff]  ;;  %v1207_v11 = vld [vmem:[%s1683_s1 + $0xe8] sm:$0xff] }
   0x5   :  { %719 = vmatpush.bf16.msra.mxu3 %v1209_v3  ;;  %v1182_v12 = vld [vmem:[%s1683_s1 + $0x20] sm:$0xff]  ;;  %v1181_v16 = vld [vmem:[%s1683_s1 + $0x18] sm:$0xff]  ;;  %v1180_v20 = vld [vmem:[%s1683_s1 + $0x10] sm:$0xff] }
   0x6   :  { %531 = vmatpush.bf16.msra.mxu0 %v1184_v4  ;;  %v1190_v13 = vld [vmem:[%s1683_s1 + $0x60] sm:$0xff]  ;;  %v1189_v17 = vld [vmem:[%s1683_s1 + $0x58] sm:$0xff]  ;;  %v1188_v21 = vld [vmem:[%s1683_s1 + $0x50] sm:$0xff] }
   0x7   :  { %594 = vmatpush.bf16.msra.mxu1 %v1192_v5  ;;  %v1198_v14 = vld [vmem:[%s1683_s1 + $0xa0] sm:$0xff]  ;;  %v1197_v18 = vld [vmem:[%s1683_s1 + $0x98] sm:$0xff]  ;;  %v1196_v22 = vld [vmem:[%s1683_s1 + $0x90] sm:$0xff] }
   0x8   :  { %657 = vmatpush.bf16.msra.mxu2 %v1200_v6  ;;  %v1206_v15 = vld [vmem:[%s1683_s1 + $0xe0] sm:$0xff]  ;;  %v1205_v19 = vld [vmem:[%s1683_s1 + $0xd8] sm:$0xff]  ;;  %v1204_v23 = vld [vmem:[%s1683_s1 + $0xd0] sm:$0xff] }
   0x9   :  { %720 = vmatpush.bf16.msra.mxu3 %v1208_v7  ;;  %v1179_v24 = vld [vmem:[%s1683_s1 + $0x8] sm:$0xff]  ;;  %v1178_v28 = vld [vmem:[%s1683_s1] sm:$0xff]  ;;  %v1140_v33 = vld [vmem:[%s1685_s0 + $0xc] sm:$0xf0] }
   0xa   :  { %532 = vmatpush.bf16.msra.mxu0 %v1183_v8  ;;  %v1187_v25 = vld [vmem:[%s1683_s1 + $0x48] sm:$0xff]  ;;  %v1186_v29 = vld [vmem:[%s1683_s1 + $0x40] sm:$0xff]  ;;  %v854_v35 = vld [vmem:[%s1685_s0 + $0x10] sm:$0xf0] }
   0xb   :  { %595 = vmatpush.bf16.msra.mxu1 %v1191_v9  ;;  %v1195_v26 = vld [vmem:[%s1683_s1 + $0x88] sm:$0xff]  ;;  %v1194_v30 = vld [vmem:[%s1683_s1 + $0x80] sm:$0xff]  ;;  %v1141_v37 = vld [vmem:[%s1685_s0 + $0x14] sm:$0xf0] }
   0xc   :  { %658 = vmatpush.bf16.msra.mxu2 %v1199_v10  ;;  %v1203_v27 = vld [vmem:[%s1683_s1 + $0xc8] sm:$0xff]  ;;  %v1202_v31 = vld [vmem:[%s1683_s1 + $0xc0] sm:$0xff]  ;;  %v862_v39 = vld [vmem:[%s1685_s0 + $0x18] sm:$0xf0] }
   0xd   :  { %721 = vmatpush.bf16.msra.mxu3 %v1207_v11  ;;  %v852_v32 = vld [vmem:[%s1685_s0] sm:$0xf]  ;;  %v1138_v34 = vld [vmem:[%s1685_s0 + $0x4] sm:$0xf]  ;;  %v860_v36 = vld [vmem:[%s1685_s0 + $0x8] sm:$0xf] }
   0xe   :  { %533 = vmatpush.bf16.msra.mxu0 %v1182_v12  ;;  %v1139_v38 = vld [vmem:[%s1685_s0 + $0xc] sm:$0xf]  ;;  %v853_v40 = vor.u32 %v1140_v33, %v852_v32  ;;  %v857_v41 = vor.u32 %v1138_v34, %v854_v35  ;;  %v861_v42 = vor.u32 %v1141_v37, %v860_v36  ;;  %v868_v44 = vld [vmem:[%s1685_s0 + $0x20] sm:$0xf]  ;;  %v1144_v45 = vld [vmem:[%s1685_s0 + $0x2c] sm:$0xf0] }
   0xf   :  { %596 = vmatpush.bf16.msra.mxu1 %v1190_v13  ;;  %v865_v43 = vor.u32 %v1139_v38, %v862_v39  ;;  %v1142_v46 = vld [vmem:[%s1685_s0 + $0x24] sm:$0xf]  ;;  %v870_v47 = vld [vmem:[%s1685_s0 + $0x30] sm:$0xf0]  ;;  %v876_v48 = vld [vmem:[%s1685_s0 + $0x28] sm:$0xf]  ;;  %v869_v52 = vor.u32 %v1144_v45, %v868_v44 }
  0x10   :  { %659 = vmatpush.bf16.msra.mxu2 %v1198_v14  ;;  %v1145_v49 = vld [vmem:[%s1685_s0 + $0x34] sm:$0xf0]  ;;  %v1143_v50 = vld [vmem:[%s1685_s0 + $0x2c] sm:$0xf]  ;;  %v878_v51 = vld [vmem:[%s1685_s0 + $0x38] sm:$0xf0]  ;;  %v873_v53 = vor.u32 %v1142_v46, %v870_v47 }
  0x11   :  { %722 = vmatpush.bf16.msra.mxu3 %v1206_v15  ;;  %v877_v54 = vor.u32 %v1145_v49, %v876_v48  ;;  %v881_v55 = vor.u32 %v1143_v50, %v878_v51  ;;  %v884_v56 = vld [vmem:[%s1685_s0 + $0x40] sm:$0xf]  ;;  %v1148_v57 = vld [vmem:[%s1685_s0 + $0x4c] sm:$0xf0]  ;;  %v1146_v58 = vld [vmem:[%s1685_s0 + $0x44] sm:$0xf] }
  0x12   :  { %534 = vmatpush.bf16.msra.mxu0 %v1181_v16  ;;  %v886_v59 = vld [vmem:[%s1685_s0 + $0x50] sm:$0xf0]  ;;  %v892_v60 = vld [vmem:[%s1685_s0 + $0x48] sm:$0xf]  ;;  %v1149_v61 = vld [vmem:[%s1685_s0 + $0x54] sm:$0xf0]  ;;  %v885_v0 = vor.u32 %v1148_v57, %v884_v56 }
  0x13   :  { %597 = vmatpush.bf16.msra.mxu1 %v1189_v17  ;;  %v1147_v62 = vld [vmem:[%s1685_s0 + $0x4c] sm:$0xf]  ;;  %v894_v63 = vld [vmem:[%s1685_s0 + $0x58] sm:$0xf0]  ;;  %v889_v1 = vor.u32 %v1146_v58, %v886_v59  ;;  %v893_v2 = vor.u32 %v1149_v61, %v892_v60  ;;  %v900_v4 = vld [vmem:[%s1685_s0 + $0x60] sm:$0xf] }
  0x14   :  { %660 = vmatpush.bf16.msra.mxu2 %v1197_v18  ;;  %v897_v3 = vor.u32 %v1147_v62, %v894_v63  ;;  %v1152_v5 = vld [vmem:[%s1685_s0 + $0x6c] sm:$0xf0]  ;;  %v1150_v6 = vld [vmem:[%s1685_s0 + $0x64] sm:$0xf]  ;;  %v902_v7 = vld [vmem:[%s1685_s0 + $0x70] sm:$0xf0] }
  0x15   :  { %723 = vmatpush.bf16.msra.mxu3 %v1205_v19  ;;  %v908_v8 = vld [vmem:[%s1685_s0 + $0x68] sm:$0xf]  ;;  %v1153_v9 = vld [vmem:[%s1685_s0 + $0x74] sm:$0xf0]  ;;  %v1151_v10 = vld [vmem:[%s1685_s0 + $0x6c] sm:$0xf]  ;;  %v901_v12 = vor.u32 %v1152_v5, %v900_v4  ;;  %v905_v13 = vor.u32 %v1150_v6, %v902_v7 }
  0x16   :  { %535 = vmatpush.bf16.msra.mxu0 %v1180_v20  ;;  %v910_v11 = vld [vmem:[%s1685_s0 + $0x78] sm:$0xf0]  ;;  %v909_v14 = vor.u32 %v1153_v9, %v908_v8  ;;  %v916_v16 = vld [vmem:[%s1685_s0 + $0x80] sm:$0xf]  ;;  %v1156_v17 = vld [vmem:[%s1685_s0 + $0x8c] sm:$0xf0] }
  0x17   :  { %598 = vmatpush.bf16.msra.mxu1 %v1188_v21  ;;  %v913_v15 = vor.u32 %v1151_v10, %v910_v11  ;;  %v1154_v18 = vld [vmem:[%s1685_s0 + $0x84] sm:$0xf]  ;;  %v918_v19 = vld [vmem:[%s1685_s0 + $0x90] sm:$0xf0]  ;;  %v924_v20 = vld [vmem:[%s1685_s0 + $0x88] sm:$0xf] }
  0x18   :  { %661 = vmatpush.bf16.msra.mxu2 %v1196_v22  ;;  %v1157_v21 = vld [vmem:[%s1685_s0 + $0x94] sm:$0xf0]  ;;  %v1155_v22 = vld [vmem:[%s1685_s0 + $0x8c] sm:$0xf]  ;;  %v940_v32 = vld [vmem:[%s1685_s0 + $0xa8] sm:$0xf] }
  0x19   :  { %724 = vmatpush.bf16.msra.mxu3 %v1204_v23  ;;  %v926_v23 = vld [vmem:[%s1685_s0 + $0x98] sm:$0xf0]  ;;  %v1161_v33 = vld [vmem:[%s1685_s0 + $0xb4] sm:$0xf0]  ;;  %v1159_v34 = vld [vmem:[%s1685_s0 + $0xac] sm:$0xf] }
  0x1a   :  { %536 = vmatpush.bf16.msra.mxu0 %v1179_v24  ;;  %v917_v24 = vor.u32 %v1156_v17, %v916_v16  ;;  %v942_v35 = vld [vmem:[%s1685_s0 + $0xb8] sm:$0xf0]  ;;  %v941_v38 = vor.u32 %v1161_v33, %v940_v32  ;;  %v956_v44 = vld [vmem:[%s1685_s0 + $0xc8] sm:$0xf]  ;;  %v1165_v45 = vld [vmem:[%s1685_s0 + $0xd4] sm:$0xf0] }
  0x1b   :  { %599 = vmatpush.bf16.msra.mxu1 %v1187_v25  ;;  %v921_v25 = vor.u32 %v1154_v18, %v918_v19  ;;  %v945_v39 = vor.u32 %v1159_v34, %v942_v35  ;;  %v1163_v46 = vld [vmem:[%s1685_s0 + $0xcc] sm:$0xf]  ;;  %v958_v47 = vld [vmem:[%s1685_s0 + $0xd8] sm:$0xf0]  ;;  %v957_v50 = vor.u32 %v1165_v45, %v956_v44  ;;  %v972_v56 = vld [vmem:[%s1685_s0 + $0xe8] sm:$0xf] }
  0x1c   :  { %662 = vmatpush.bf16.msra.mxu2 %v1195_v26  ;;  %v925_v26 = vor.u32 %v1157_v21, %v924_v20  ;;  %v961_v51 = vor.u32 %v1163_v46, %v958_v47  ;;  %v1169_v57 = vld [vmem:[%s1685_s0 + $0xf4] sm:$0xf0]  ;;  %v1167_v58 = vld [vmem:[%s1685_s0 + $0xec] sm:$0xf]  ;;  %v974_v59 = vld [vmem:[%s1685_s0 + $0xf8] sm:$0xf0] }
  0x1d   :  { %725 = vmatpush.bf16.msra.mxu3 %v1203_v27  ;;  %v929_v27 = vor.u32 %v1155_v22, %v926_v23  ;;  %v973_v62 = vor.u32 %v1169_v57, %v972_v56  ;;  %v977_v63 = vor.u32 %v1167_v58, %v974_v59  ;;  %v982_v4 = vld [vmem:[%s1685_s0 + $0x110] sm:$0xf0]  ;;  %v988_v5 = vld [vmem:[%s1685_s0 + $0x108] sm:$0xf]  ;;  %v1173_v6 = vld [vmem:[%s1685_s0 + $0x114] sm:$0xf0] }
  0x1e   :  { %537 = vmatpush.bf16.msra.mxu0 %v1178_v28  ;;  %v932_v28 = vld [vmem:[%s1685_s0 + $0xa0] sm:$0xf]  ;;  %v1171_v7 = vld [vmem:[%s1685_s0 + $0x10c] sm:$0xf]  ;;  %v990_v8 = vld [vmem:[%s1685_s0 + $0x118] sm:$0xf0] }
  0x1f   :  { %600 = vmatpush.bf16.msra.mxu1 %v1186_v29  ;;  %v1160_v29 = vld [vmem:[%s1685_s0 + $0xac] sm:$0xf0]  ;;  %v1006_v32 = vld [vmem:[%s1685_s0 + $0x138] sm:$0xf0] }
  0x20   :  { %663 = vmatpush.bf16.msra.mxu2 %v1194_v30  ;;  %v1158_v30 = vld [vmem:[%s1685_s0 + $0xa4] sm:$0xf]  ;;  %v933_v36 = vor.u32 %v1160_v29, %v932_v28  ;;  %v998_v28 = vld [vmem:[%s1685_s0 + $0x130] sm:$0xf0]  ;;  %v1004_v29 = vld [vmem:[%s1685_s0 + $0x128] sm:$0xf] }
  0x21   :  { %726 = vmatpush.bf16.msra.mxu3 %v1202_v31  ;;  %538 = vmatmul.bf16.vlgmr.msra.gmra.mxu0 %v853_v40  ;;  %v934_v31 = vld [vmem:[%s1685_s0 + $0xb0] sm:$0xf0]  ;;  %v948_v40 = vld [vmem:[%s1685_s0 + $0xc0] sm:$0xf] }
  0x22   :  { %601 = vmatmul.bf16.vlgmr.msra.gmra.mxu1 %v857_v41  ;;  %v937_v37 = vor.u32 %v1158_v30, %v934_v31  ;;  %v1164_v41 = vld [vmem:[%s1685_s0 + $0xcc] sm:$0xf0]  ;;  %v1177_v30 = vld [vmem:[%s1685_s0 + $0x134] sm:$0xf0]  ;;  %v1175_v31 = vld [vmem:[%s1685_s0 + $0x12c] sm:$0xf] }
  0x23   :  { %664 = vmatmul.bf16.vlgmr.msra.gmra.mxu2 %v861_v42  ;;  %v1162_v42 = vld [vmem:[%s1685_s0 + $0xc4] sm:$0xf]  ;;  %v949_v48 = vor.u32 %v1164_v41, %v948_v40 }
  0x24   :  { %727 = vmatmul.bf16.vlgmr.msra.gmra.mxu3 %v865_v43  ;;  %v950_v43 = vld [vmem:[%s1685_s0 + $0xd0] sm:$0xf0] }
  0x25   :  { %v953_v49 = vor.u32 %v1162_v42, %v950_v43  ;;  %v1005_v42 = vor.u32 %v1177_v30, %v1004_v29  ;;  %v1009_v43 = vor.u32 %v1175_v31, %v1006_v32 }
  0x31   :  { %543 = vmatmul.bf16.gmra.mxu0 %v869_v52  ;;  %v964_v52 = vld [vmem:[%s1685_s0 + $0xe0] sm:$0xf] }
  0x32   :  { %606 = vmatmul.bf16.gmra.mxu1 %v873_v53  ;;  %v1168_v53 = vld [vmem:[%s1685_s0 + $0xec] sm:$0xf0] }
  0x33   :  { %669 = vmatmul.bf16.gmra.mxu2 %v877_v54  ;;  %v1166_v54 = vld [vmem:[%s1685_s0 + $0xe4] sm:$0xf]  ;;  %v965_v60 = vor.u32 %v1168_v53, %v964_v52 }
  0x34   :  { %732 = vmatmul.bf16.gmra.mxu3 %v881_v55  ;;  %v966_v55 = vld [vmem:[%s1685_s0 + $0xf0] sm:$0xf0] }
  0x35   :  { %v969_v61 = vor.u32 %v1166_v54, %v966_v55  ;;  %v54_v54 = vld [vmem:[%s1685_s0 + $0x140] sm:$0xff]  ;;  %v55_v55 = vld [vmem:[%s1685_s0 + $0x148] sm:$0xff] }
  0x36   :  { %v246_v58 = vunpack.c.l.b16 %v54_v54  ;;  %v247_v59 = vunpack.c.h.b16 %v54_v54 }
  0x41   :  { %548 = vmatmul.bf16.gmra.mxu0 %v885_v0  ;;  %v1522_v0 = vld [vmem:[%s1684_s2] ss:$0 sm:$0xff] }
  0x42   :  { %611 = vmatmul.bf16.gmra.mxu1 %v889_v1  ;;  %v980_v1 = vld [vmem:[%s1685_s0 + $0x100] sm:$0xf] }
  0x43   :  { %674 = vmatmul.bf16.gmra.mxu2 %v893_v2  ;;  %v1172_v2 = vld [vmem:[%s1685_s0 + $0x10c] sm:$0xf0] }
  0x44   :  { %737 = vmatmul.bf16.gmra.mxu3 %v897_v3  ;;  %v1170_v3 = vld [vmem:[%s1685_s0 + $0x104] sm:$0xf]  ;;  %v981_v9 = vor.u32 %v1172_v2, %v980_v1 }
  0x45   :  { %v985_v10 = vor.u32 %v1170_v3, %v982_v4  ;;  %v290_v4 = vpack.c.b16 %v246_v58, %v246_v58 }
  0x51   :  { %553 = vmatmul.bf16.gmra.mxu0 %v901_v12 }
  0x52   :  { %616 = vmatmul.bf16.gmra.mxu1 %v905_v13  ;;  %v989_v13 = vor.u32 %v1173_v6, %v988_v5  ;;  %v291_v5 = vpack.c.b16 %v247_v59, %v247_v59 }
  0x53   :  { %679 = vmatmul.bf16.gmra.mxu2 %v909_v14  ;;  %v993_v14 = vor.u32 %v1171_v7, %v990_v8 }
  0x54   :  { %742 = vmatmul.bf16.gmra.mxu3 %v913_v15 }
  0x61   :  { %558 = vmatmul.bf16.gmra.mxu0 %v917_v24  ;;  %v996_v24 = vld [vmem:[%s1685_s0 + $0x120] sm:$0xf] }
  0x62   :  { %621 = vmatmul.bf16.gmra.mxu1 %v921_v25  ;;  %v1176_v25 = vld [vmem:[%s1685_s0 + $0x12c] sm:$0xf0] }
  0x63   :  { %684 = vmatmul.bf16.gmra.mxu2 %v925_v26  ;;  %v1174_v26 = vld [vmem:[%s1685_s0 + $0x124] sm:$0xf] }
  0x64   :  { %747 = vmatmul.bf16.gmra.mxu3 %v929_v27 }
  0x71   :  { %563 = vmatmul.bf16.gmra.mxu0 %v933_v36 }
  0x72   :  { %626 = vmatmul.bf16.gmra.mxu1 %v937_v37  ;;  %v997_v37 = vor.u32 %v1176_v25, %v996_v24 }
  0x73   :  { %689 = vmatmul.bf16.gmra.mxu2 %v941_v38  ;;  %v1001_v38 = vor.u32 %v1174_v26, %v998_v28 }
  0x74   :  { %752 = vmatmul.bf16.gmra.mxu3 %v945_v39 }
  0x81   :  { %568 = vmatmul.bf16.gmra.mxu0 %v949_v48 }
  0x82   :  { %631 = vmatmul.bf16.gmra.mxu1 %v953_v49 }
  0x83   :  { %694 = vmatmul.bf16.gmra.mxu2 %v957_v50 }
  0x84   :  { %757 = vmatmul.bf16.gmra.mxu3 %v961_v51 }
  0x91   :  { %573 = vmatmul.bf16.gmra.mxu0 %v965_v60 }
  0x92   :  { %636 = vmatmul.bf16.gmra.mxu1 %v969_v61  ;;  %v248_v61 = vunpack.c.l.b16 %v55_v55 }
  0x93   :  { %699 = vmatmul.bf16.gmra.mxu2 %v973_v62  ;;  %v249_v62 = vunpack.c.h.b16 %v55_v55 }
  0x94   :  { %762 = vmatmul.bf16.gmra.mxu3 %v977_v63 }
  0x9e   :  { %v539_v11 = vpop.f32.mrf.mxu0 }
  0x9f   :  { %v602_v12 = vpop.f32.mrf.mxu1  ;;  %v540_v15 = vadd.f32 %v1522_v0, %v539_v11 }
  0xa1   :  { %578 = vmatmul.bf16.gmra.mxu0 %v981_v9  ;;  %v603_v16 = vadd.f32 %v602_v12, %v540_v15  ;;  %v292_v9 = vpack.c.b16 %v248_v61, %v248_v61 }
  0xa2   :  { %641 = vmatmul.bf16.gmra.mxu1 %v985_v10  ;;  %v293_v10 = vpack.c.b16 %v249_v62, %v249_v62 }
  0xa3   :  { %704 = vmatmul.bf16.gmra.mxu2 %v989_v13 }
  0xa4   :  { %767 = vmatmul.bf16.gmra.mxu3 %v993_v14 }
  0xa6   :  { %v665_v17 = vpop.f32.mrf.mxu2  ;;  %v541_v20 = vpop.f32.mrf.mxu0 }
  0xa7   :  { %v728_v18 = vpop.f32.mrf.mxu3  ;;  %v666_v19 = vadd.f32 %v665_v17, %v603_v16  ;;  %v604_v21 = vpop.f32.mrf.mxu1  ;;  %v542_v23 = vadd.f32 %v1522_v0, %v541_v20 }
  0xa9   :  { %v729_v22 = vadd.f32 %v728_v18, %v666_v19  ;;  %v605_v34 = vadd.f32 %v604_v21, %v542_v23 }
  0xab   :  { %v782_v27 = vmax.f32 %v729_v22, 0.0 }
  0xad   :  { %v803_v33 = vpack.c.bf16 %v782_v27, %v782_v27 }
  0xae   :  { %v667_v35 = vpop.f32.mrf.mxu2  ;;  %v544_v40 = vpop.f32.mrf.mxu0 }
  0xaf   :  { %v730_v36 = vpop.f32.mrf.mxu3  ;;  %825 = vst.msk [vmem:[%s1686_s3] sm:$0xf] %vm824_vm0, %v803_v33  ;;  %v668_v39 = vadd.f32 %v667_v35, %v605_v34  ;;  %v607_v41 = vpop.f32.mrf.mxu1  ;;  %v545_v44 = vadd.f32 %v1522_v0, %v544_v40 }
  0xb1   :  { %v731_v45 = vadd.f32 %v730_v36, %v668_v39  ;;  %583 = vmatmul.bf16.gmra.mxu0 %v997_v37  ;;  %v608_v47 = vadd.f32 %v607_v41, %v545_v44 }
  0xb2   :  { %646 = vmatmul.bf16.gmra.mxu1 %v1001_v38 }
  0xb3   :  { %v783_v46 = vmax.f32 %v731_v45, 0.0  ;;  %709 = vmatmul.bf16.gmra.mxu2 %v1005_v42 }
  0xb4   :  { %772 = vmatmul.bf16.gmra.mxu3 %v1009_v43 }
  0xb5   :  { %v804_v48 = vpack.c.bf16 %v783_v46, %v783_v46 }
  0xb6   :  { %v670_v49 = vpop.f32.mrf.mxu2  ;;  %v546_v52 = vpop.f32.mrf.mxu0 }
  0xb7   :  { %v733_v50 = vpop.f32.mrf.mxu3  ;;  %826 = vst.msk [vmem:[%s1686_s3 + $0x4] sm:$0xf] %vm824_vm0, %v804_v48  ;;  %v671_v51 = vadd.f32 %v670_v49, %v608_v47  ;;  %v609_v53 = vpop.f32.mrf.mxu1  ;;  %v547_v57 = vadd.f32 %v1522_v0, %v546_v52 }
  0xb9   :  { %v734_v56 = vadd.f32 %v733_v50, %v671_v51  ;;  %v610_v1 = vadd.f32 %v609_v53, %v547_v57 }
  0xbb   :  { %v784_v60 = vmax.f32 %v734_v56, 0.0 }
  0xbd   :  { %v805_v63 = vpack.c.bf16 %v784_v60, %v784_v60 }
  0xbe   :  { %v672_v2 = vpop.f32.mrf.mxu2  ;;  %v549_v7 = vpop.f32.mrf.mxu0 }
  0xbf   :  { %v735_v3 = vpop.f32.mrf.mxu3  ;;  %827 = vst.msk [vmem:[%s1686_s3 + $0x8] sm:$0xf] %vm824_vm0, %v805_v63  ;;  %v673_v6 = vadd.f32 %v672_v2, %v610_v1  ;;  %v612_v8 = vpop.f32.mrf.mxu1  ;;  %v550_v11 = vadd.f32 %v1522_v0, %v549_v7 }
  0xc1   :  { %v736_v12 = vadd.f32 %v735_v3, %v673_v6  ;;  %588 = vmatmul.bf16.gmra.mxu0 %v290_v4  ;;  %v613_v14 = vadd.f32 %v612_v8, %v550_v11 }
  0xc2   :  { %651 = vmatmul.bf16.gmra.mxu1 %v291_v5 }
  0xc3   :  { %v785_v13 = vmax.f32 %v736_v12, 0.0  ;;  %714 = vmatmul.bf16.gmra.mxu2 %v292_v9 }
  0xc4   :  { %777 = vmatmul.bf16.gmra.mxu3 %v293_v10 }
  0xc5   :  { %v806_v15 = vpack.c.bf16 %v785_v13, %v785_v13 }
  0xc6   :  { %v675_v16 = vpop.f32.mrf.mxu2  ;;  %v551_v19 = vpop.f32.mrf.mxu0 }
  0xc7   :  { %v738_v17 = vpop.f32.mrf.mxu3  ;;  %828 = vst.msk [vmem:[%s1686_s3 + $0xc] sm:$0xf] %vm824_vm0, %v806_v15  ;;  %v676_v18 = vadd.f32 %v675_v16, %v613_v14  ;;  %v614_v20 = vpop.f32.mrf.mxu1  ;;  %v552_v22 = vadd.f32 %v1522_v0, %v551_v19 }
  0xc9   :  { %v739_v21 = vadd.f32 %v738_v17, %v676_v18  ;;  %v615_v25 = vadd.f32 %v614_v20, %v552_v22 }
  0xcb   :  { %v786_v23 = vmax.f32 %v739_v21, 0.0 }
  0xcd   :  { %v807_v24 = vpack.c.bf16 %v786_v23, %v786_v23 }
  0xce   :  { %v677_v26 = vpop.f32.mrf.mxu2  ;;  %v554_v29 = vpop.f32.mrf.mxu0 }
  0xcf   :  { %v740_v27 = vpop.f32.mrf.mxu3  ;;  %829 = vst.msk [vmem:[%s1686_s3 + $0x10] sm:$0xf] %vm824_vm0, %v807_v24  ;;  %v678_v28 = vadd.f32 %v677_v26, %v615_v25  ;;  %v617_v30 = vpop.f32.mrf.mxu1  ;;  %v555_v31 = vadd.f32 %v1522_v0, %v554_v29 }
  0xd1   :  { %v741_v32 = vadd.f32 %v740_v27, %v678_v28  ;;  %v618_v34 = vadd.f32 %v617_v30, %v555_v31 }
  0xd3   :  { %v787_v33 = vmax.f32 %v741_v32, 0.0 }
  0xd5   :  { %v808_v35 = vpack.c.bf16 %v787_v33, %v787_v33 }
  0xd6   :  { %v680_v36 = vpop.f32.mrf.mxu2  ;;  %v556_v39 = vpop.f32.mrf.mxu0 }
  0xd7   :  { %v743_v37 = vpop.f32.mrf.mxu3  ;;  %830 = vst.msk [vmem:[%s1686_s3 + $0x14] sm:$0xf] %vm824_vm0, %v808_v35  ;;  %v681_v38 = vadd.f32 %v680_v36, %v618_v34  ;;  %v619_v40 = vpop.f32.mrf.mxu1  ;;  %v557_v42 = vadd.f32 %v1522_v0, %v556_v39 }
  0xd9   :  { %v744_v41 = vadd.f32 %v743_v37, %v681_v38  ;;  %v620_v45 = vadd.f32 %v619_v40, %v557_v42 }
  0xdb   :  { %v788_v43 = vmax.f32 %v744_v41, 0.0 }
  0xdd   :  { %v809_v44 = vpack.c.bf16 %v788_v43, %v788_v43 }
  0xde   :  { %v682_v46 = vpop.f32.mrf.mxu2  ;;  %v559_v49 = vpop.f32.mrf.mxu0 }
  0xdf   :  { %v745_v47 = vpop.f32.mrf.mxu3  ;;  %831 = vst.msk [vmem:[%s1686_s3 + $0x18] sm:$0xf] %vm824_vm0, %v809_v44  ;;  %v683_v48 = vadd.f32 %v682_v46, %v620_v45  ;;  %v622_v50 = vpop.f32.mrf.mxu1  ;;  %v560_v51 = vadd.f32 %v1522_v0, %v559_v49 }
  0xe1   :  { %v746_v52 = vadd.f32 %v745_v47, %v683_v48  ;;  %v623_v54 = vadd.f32 %v622_v50, %v560_v51 }
  0xe3   :  { %v789_v53 = vmax.f32 %v746_v52, 0.0 }
  0xe5   :  { %v810_v55 = vpack.c.bf16 %v789_v53, %v789_v53 }
  0xe6   :  { %v685_v56 = vpop.f32.mrf.mxu2  ;;  %v561_v59 = vpop.f32.mrf.mxu0 }
  0xe7   :  { %v748_v57 = vpop.f32.mrf.mxu3  ;;  %832 = vst.msk [vmem:[%s1686_s3 + $0x1c] sm:$0xf] %vm824_vm0, %v810_v55  ;;  %v686_v58 = vadd.f32 %v685_v56, %v623_v54  ;;  %v624_v60 = vpop.f32.mrf.mxu1  ;;  %v562_v62 = vadd.f32 %v1522_v0, %v561_v59 }
  0xe9   :  { %v749_v61 = vadd.f32 %v748_v57, %v686_v58  ;;  %v625_v2 = vadd.f32 %v624_v60, %v562_v62 }
  0xeb   :  { %v790_v63 = vmax.f32 %v749_v61, 0.0 }
  0xed   :  { %v811_v1 = vpack.c.bf16 %v790_v63, %v790_v63 }
  0xee   :  { %v687_v3 = vpop.f32.mrf.mxu2  ;;  %v564_v6 = vpop.f32.mrf.mxu0 }
  0xef   :  { %v750_v4 = vpop.f32.mrf.mxu3  ;;  %833 = vst.msk [vmem:[%s1686_s3 + $0x20] sm:$0xf] %vm824_vm0, %v811_v1  ;;  %v688_v5 = vadd.f32 %v687_v3, %v625_v2  ;;  %v627_v7 = vpop.f32.mrf.mxu1  ;;  %v565_v8 = vadd.f32 %v1522_v0, %v564_v6 }
  0xf1   :  { %v751_v9 = vadd.f32 %v750_v4, %v688_v5  ;;  %v628_v11 = vadd.f32 %v627_v7, %v565_v8 }
  0xf3   :  { %v791_v10 = vmax.f32 %v751_v9, 0.0 }
  0xf5   :  { %v812_v12 = vpack.c.bf16 %v791_v10, %v791_v10 }
  0xf6   :  { %v690_v13 = vpop.f32.mrf.mxu2  ;;  %v566_v16 = vpop.f32.mrf.mxu0 }
  0xf7   :  { %v753_v14 = vpop.f32.mrf.mxu3  ;;  %834 = vst.msk [vmem:[%s1686_s3 + $0x24] sm:$0xf] %vm824_vm0, %v812_v12  ;;  %v691_v15 = vadd.f32 %v690_v13, %v628_v11  ;;  %v629_v17 = vpop.f32.mrf.mxu1  ;;  %v567_v19 = vadd.f32 %v1522_v0, %v566_v16 }
  0xf9   :  { %v754_v18 = vadd.f32 %v753_v14, %v691_v15  ;;  %v630_v22 = vadd.f32 %v629_v17, %v567_v19 }
  0xfb   :  { %v792_v20 = vmax.f32 %v754_v18, 0.0 }
  0xfd   :  { %v813_v21 = vpack.c.bf16 %v792_v20, %v792_v20 }
  0xfe   :  { %v692_v23 = vpop.f32.mrf.mxu2  ;;  %v569_v26 = vpop.f32.mrf.mxu0 }
  0xff   :  { %v755_v24 = vpop.f32.mrf.mxu3  ;;  %835 = vst.msk [vmem:[%s1686_s3 + $0x28] sm:$0xf] %vm824_vm0, %v813_v21  ;;  %v693_v25 = vadd.f32 %v692_v23, %v630_v22  ;;  %v632_v27 = vpop.f32.mrf.mxu1  ;;  %v570_v28 = vadd.f32 %v1522_v0, %v569_v26 }
 0x101   :  { %v756_v29 = vadd.f32 %v755_v24, %v693_v25  ;;  %v633_v31 = vadd.f32 %v632_v27, %v570_v28 }
 0x103   :  { %v793_v30 = vmax.f32 %v756_v29, 0.0 }
 0x105   :  { %v814_v32 = vpack.c.bf16 %v793_v30, %v793_v30 }
 0x106   :  { %v695_v33 = vpop.f32.mrf.mxu2  ;;  %v571_v36 = vpop.f32.mrf.mxu0 }
 0x107   :  { %v758_v34 = vpop.f32.mrf.mxu3  ;;  %836 = vst.msk [vmem:[%s1686_s3 + $0x2c] sm:$0xf] %vm824_vm0, %v814_v32  ;;  %v696_v35 = vadd.f32 %v695_v33, %v633_v31  ;;  %v634_v37 = vpop.f32.mrf.mxu1  ;;  %v572_v39 = vadd.f32 %v1522_v0, %v571_v36 }
 0x109   :  { %v759_v38 = vadd.f32 %v758_v34, %v696_v35  ;;  %v635_v42 = vadd.f32 %v634_v37, %v572_v39 }
 0x10b   :  { %v794_v40 = vmax.f32 %v759_v38, 0.0 }
 0x10d   :  { %v815_v41 = vpack.c.bf16 %v794_v40, %v794_v40 }
 0x10e   :  { %v697_v43 = vpop.f32.mrf.mxu2  ;;  %v574_v46 = vpop.f32.mrf.mxu0 }
 0x10f   :  { %v760_v44 = vpop.f32.mrf.mxu3  ;;  %837 = vst.msk [vmem:[%s1686_s3 + $0x30] sm:$0xf] %vm824_vm0, %v815_v41  ;;  %v698_v45 = vadd.f32 %v697_v43, %v635_v42  ;;  %v637_v47 = vpop.f32.mrf.mxu1  ;;  %v575_v48 = vadd.f32 %v1522_v0, %v574_v46 }
 0x111   :  { %v761_v49 = vadd.f32 %v760_v44, %v698_v45  ;;  %v638_v51 = vadd.f32 %v637_v47, %v575_v48 }
 0x113   :  { %v795_v50 = vmax.f32 %v761_v49, 0.0 }
 0x115   :  { %v816_v52 = vpack.c.bf16 %v795_v50, %v795_v50 }
 0x116   :  { %v700_v53 = vpop.f32.mrf.mxu2  ;;  %v576_v56 = vpop.f32.mrf.mxu0 }
 0x117   :  { %v763_v54 = vpop.f32.mrf.mxu3  ;;  %838 = vst.msk [vmem:[%s1686_s3 + $0x34] sm:$0xf] %vm824_vm0, %v816_v52  ;;  %v701_v55 = vadd.f32 %v700_v53, %v638_v51  ;;  %v639_v57 = vpop.f32.mrf.mxu1  ;;  %v577_v59 = vadd.f32 %v1522_v0, %v576_v56 }
 0x119   :  { %v764_v58 = vadd.f32 %v763_v54, %v701_v55  ;;  %v640_v62 = vadd.f32 %v639_v57, %v577_v59 }
 0x11b   :  { %v796_v60 = vmax.f32 %v764_v58, 0.0 }
 0x11d   :  { %v817_v61 = vpack.c.bf16 %v796_v60, %v796_v60 }
 0x11e   :  { %v702_v63 = vpop.f32.mrf.mxu2  ;;  %v579_v3 = vpop.f32.mrf.mxu0 }
 0x11f   :  { %v765_v1 = vpop.f32.mrf.mxu3  ;;  %839 = vst.msk [vmem:[%s1686_s3 + $0x38] sm:$0xf] %vm824_vm0, %v817_v61  ;;  %v703_v2 = vadd.f32 %v702_v63, %v640_v62  ;;  %v642_v4 = vpop.f32.mrf.mxu1  ;;  %v580_v5 = vadd.f32 %v1522_v0, %v579_v3 }
 0x121   :  { %v766_v6 = vadd.f32 %v765_v1, %v703_v2  ;;  %v643_v8 = vadd.f32 %v642_v4, %v580_v5 }
 0x123   :  { %v797_v7 = vmax.f32 %v766_v6, 0.0 }
 0x125   :  { %v818_v9 = vpack.c.bf16 %v797_v7, %v797_v7 }
 0x126   :  { %v705_v10 = vpop.f32.mrf.mxu2  ;;  %v581_v13 = vpop.f32.mrf.mxu0 }
 0x127   :  { %v768_v11 = vpop.f32.mrf.mxu3  ;;  %840 = vst.msk [vmem:[%s1686_s3 + $0x3c] sm:$0xf] %vm824_vm0, %v818_v9  ;;  %v706_v12 = vadd.f32 %v705_v10, %v643_v8  ;;  %v644_v14 = vpop.f32.mrf.mxu1  ;;  %v582_v16 = vadd.f32 %v1522_v0, %v581_v13 }
 0x129   :  { %v769_v15 = vadd.f32 %v768_v11, %v706_v12  ;;  %v645_v19 = vadd.f32 %v644_v14, %v582_v16 }
 0x12b   :  { %v798_v17 = vmax.f32 %v769_v15, 0.0 }
 0x12d   :  { %v819_v18 = vpack.c.bf16 %v798_v17, %v798_v17 }
 0x12e   :  { %v707_v20 = vpop.f32.mrf.mxu2  ;;  %v584_v23 = vpop.f32.mrf.mxu0 }
 0x12f   :  { %v770_v21 = vpop.f32.mrf.mxu3  ;;  %841 = vst.msk [vmem:[%s1686_s3 + $0x40] sm:$0xf] %vm824_vm0, %v819_v18  ;;  %v708_v22 = vadd.f32 %v707_v20, %v645_v19  ;;  %v647_v24 = vpop.f32.mrf.mxu1  ;;  %v585_v25 = vadd.f32 %v1522_v0, %v584_v23 }
 0x131   :  { %v771_v26 = vadd.f32 %v770_v21, %v708_v22  ;;  %v648_v28 = vadd.f32 %v647_v24, %v585_v25 }
 0x133   :  { %v799_v27 = vmax.f32 %v771_v26, 0.0 }
 0x135   :  { %v820_v29 = vpack.c.bf16 %v799_v27, %v799_v27 }
 0x136   :  { %v710_v30 = vpop.f32.mrf.mxu2  ;;  %v586_v33 = vpop.f32.mrf.mxu0 }
 0x137   :  { %v773_v31 = vpop.f32.mrf.mxu3  ;;  %842 = vst.msk [vmem:[%s1686_s3 + $0x44] sm:$0xf] %vm824_vm0, %v820_v29  ;;  %v711_v32 = vadd.f32 %v710_v30, %v648_v28  ;;  %v649_v34 = vpop.f32.mrf.mxu1  ;;  %v587_v36 = vadd.f32 %v1522_v0, %v586_v33 }
 0x139   :  { %v774_v35 = vadd.f32 %v773_v31, %v711_v32  ;;  %v650_v39 = vadd.f32 %v649_v34, %v587_v36 }
 0x13b   :  { %v800_v37 = vmax.f32 %v774_v35, 0.0 }
 0x13d   :  { %v821_v38 = vpack.c.bf16 %v800_v37, %v800_v37 }
 0x13e   :  { %v712_v40 = vpop.f32.mrf.mxu2  ;;  %v589_v43 = vpop.f32.mrf.mxu0 }
 0x13f   :  { %v775_v41 = vpop.f32.mrf.mxu3  ;;  %843 = vst.msk [vmem:[%s1686_s3 + $0x48] sm:$0xf] %vm824_vm0, %v821_v38  ;;  %v713_v42 = vadd.f32 %v712_v40, %v650_v39  ;;  %v652_v44 = vpop.f32.mrf.mxu1  ;;  %v590_v45 = vadd.f32 %v1522_v0, %v589_v43 }
 0x141   :  { %v776_v46 = vadd.f32 %v775_v41, %v713_v42  ;;  %v653_v48 = vadd.f32 %v652_v44, %v590_v45 }
 0x143   :  { %v801_v47 = vmax.f32 %v776_v46, 0.0 }
 0x145   :  { %v822_v49 = vpack.c.bf16 %v801_v47, %v801_v47 }
 0x146   :  { %v715_v50 = vpop.f32.mrf.mxu2  ;;  %v591_v53 = vpop.f32.mrf.mxu0 }
 0x147   :  { %v778_v51 = vpop.f32.mrf.mxu3  ;;  %844 = vst.msk [vmem:[%s1686_s3 + $0x4c] sm:$0xf] %vm824_vm0, %v822_v49  ;;  %v716_v52 = vadd.f32 %v715_v50, %v653_v48  ;;  %v654_v54 = vpop.f32.mrf.mxu1 }
 0x149   :  { %v779_v55 = vadd.f32 %v778_v51, %v716_v52 }
 0x14b   :  { %v802_v56 = vmax.f32 %v779_v55, 0.0 }
 0x14d   :  { %v823_v57 = vpack.c.bf16 %v802_v56, %v802_v56 }
 0x14e   :  { %v717_v58 = vpop.f32.mrf.mxu2 }
 0x14f   :  { %v780_v59 = vpop.f32.mrf.mxu3  ;;  %845 = vst.msk [vmem:[%s1686_s3 + $0x50] sm:$0xf] %vm824_vm0, %v823_v57 }

// kernel: dueling_forward.6
= control target key start
LH: loop header
LB: loop body
LE: loop exit
PB: predicated region body
PF: predicated region fallthrough
CT: control target
= control target key end

     0   :  { %vm792_vm0 = vcmask 519168   ;;  %s1615_s1 = inlined_call_operand.vmem [shape: bf16[640,64], index: 1, kind: input, shape index: {}]   ;;  %s1616_s2 = inlined_call_operand.vmem [shape: f32[1,64], index: 2, kind: input, shape index: {}]   ;;  %s1617_s0 = inlined_call_operand.vmem [shape: bf16[104,640], index: 0, kind: input, shape index: {}]   ;;  %s1618_s3 = inlined_call_operand.vmem [shape: bf16[104,64], index: 3, kind: output, shape index: {}]  }
   0x1   :  { %v1127_v0 = vld [vmem:[%s1615_s1 + $0x38] sm:$0xff]  ;;  %v1126_v1 = vld [vmem:[%s1615_s1 + $0x30] sm:$0xff]  ;;  %v1125_v2 = vld [vmem:[%s1615_s1 + $0x28] sm:$0xff] }
   0x2   :  { %1160 = vmatpush.bf16.msra.mxu1 %v1127_v0  ;;  %1161 = vmatpush.bf16.msra.mxu2 %v1127_v0  ;;  %v1124_v3 = vld [vmem:[%s1615_s1 + $0x20] sm:$0xff]  ;;  %v1123_v4 = vld [vmem:[%s1615_s1 + $0x18] sm:$0xff]  ;;  %v1122_v5 = vld [vmem:[%s1615_s1 + $0x10] sm:$0xff] }
   0x3   :  { %1162 = vmatpush.bf16.msra.mxu3 %v1127_v0  ;;  %551 = vmatpush.bf16.msra.mxu0 %v1127_v0  ;;  %v1121_v6 = vld [vmem:[%s1615_s1 + $0x8] sm:$0xff]  ;;  %v1229_v7 = vld [vmem:[%s1617_s0 + $0xf0] sm:$0xff]  ;;  %v1120_v8 = vld [vmem:[%s1615_s1] sm:$0xff] }
   0x4   :  { %v852_v9 = vld [vmem:[%s1617_s0 + $0x50] sm:$0xf]  ;;  %v1102_v10 = vld [vmem:[%s1617_s0 + $0x60] sm:$0xf0]  ;;  %v892_v11 = vld [vmem:[%s1617_s0 + $0xa0] sm:$0xf]  ;;  %v236_v15 = vunpack.c.l.b16 %v1229_v7 }
   0x5   :  { %v1112_v12 = vld [vmem:[%s1617_s0 + $0xb0] sm:$0xf0]  ;;  %v812_v13 = vld [vmem:[%s1617_s0] sm:$0xf]  ;;  %v1151_v16 = vld [vmem:[%s1615_s1 + $0xf8] sm:$0xff]  ;;  %v853_v18 = vor.u32 %v1102_v10, %v852_v9 }
   0x6   :  { %1163 = vmatpush.bf16.msra.mxu1 %v1126_v1  ;;  %1164 = vmatpush.bf16.msra.mxu2 %v1126_v1  ;;  %v1092_v14 = vld [vmem:[%s1617_s0 + $0x10] sm:$0xf0]  ;;  %v1143_v17 = vld [vmem:[%s1615_s1 + $0xb8] sm:$0xff]  ;;  %v893_v19 = vor.u32 %v1112_v12, %v892_v11  ;;  %v271_v23 = vpack.c.b16 %v236_v15, %v236_v15  ;;  %v1149_v28 = vld [vmem:[%s1615_s1 + $0xe8] sm:$0xff] }
   0x7   :  { %1165 = vmatpush.bf16.msra.mxu3 %v1126_v1  ;;  %552 = vmatpush.bf16.msra.mxu0 %v1126_v1  ;;  %v813_v20 = vor.u32 %v1092_v14, %v812_v13  ;;  %v1135_v21 = vld [vmem:[%s1615_s1 + $0x78] sm:$0xff]  ;;  %v1150_v24 = vld [vmem:[%s1615_s1 + $0xf0] sm:$0xff]  ;;  %v1141_v29 = vld [vmem:[%s1615_s1 + $0xa8] sm:$0xff] }
   0x8   :  { %v1159_v22 = vld [vmem:[%s1615_s1 + $0x138] sm:$0xff]  ;;  %v1142_v25 = vld [vmem:[%s1615_s1 + $0xb0] sm:$0xff]  ;;  %v1133_v30 = vld [vmem:[%s1615_s1 + $0x68] sm:$0xff] }
   0x9   :  { %v1134_v26 = vld [vmem:[%s1615_s1 + $0x70] sm:$0xff]  ;;  %v1157_v31 = vld [vmem:[%s1615_s1 + $0x128] sm:$0xff]  ;;  %v1148_v32 = vld [vmem:[%s1615_s1 + $0xe0] sm:$0xff] }
   0xa   :  { %1166 = vmatpush.bf16.msra.mxu1 %v1125_v2  ;;  %1167 = vmatpush.bf16.msra.mxu2 %v1125_v2  ;;  %v1158_v27 = vld [vmem:[%s1615_s1 + $0x130] sm:$0xff]  ;;  %v1140_v33 = vld [vmem:[%s1615_s1 + $0xa0] sm:$0xff]  ;;  %v872_v35 = vld [vmem:[%s1617_s0 + $0x78] sm:$0xf] }
   0xb   :  { %1168 = vmatpush.bf16.msra.mxu3 %v1125_v2  ;;  %553 = vmatpush.bf16.msra.mxu0 %v1125_v2  ;;  %v1132_v34 = vld [vmem:[%s1615_s1 + $0x60] sm:$0xff]  ;;  %v1107_v36 = vld [vmem:[%s1617_s0 + $0x88] sm:$0xf0]  ;;  %v912_v37 = vld [vmem:[%s1617_s0 + $0xc8] sm:$0xf] }
   0xc   :  { %v1117_v38 = vld [vmem:[%s1617_s0 + $0xd8] sm:$0xf0]  ;;  %v1156_v39 = vld [vmem:[%s1615_s1 + $0x120] sm:$0xff]  ;;  %v832_v40 = vld [vmem:[%s1617_s0 + $0x28] sm:$0xf]  ;;  %v873_v44 = vor.u32 %v1107_v36, %v872_v35 }
   0xd   :  { %v1097_v41 = vld [vmem:[%s1617_s0 + $0x38] sm:$0xf0]  ;;  %v913_v45 = vor.u32 %v1117_v38, %v912_v37  ;;  %v1146_v49 = vld [vmem:[%s1615_s1 + $0xd0] sm:$0xff]  ;;  %v1145_v53 = vld [vmem:[%s1615_s1 + $0xc8] sm:$0xff] }
   0xe   :  { %1169 = vmatpush.bf16.msra.mxu1 %v1124_v3  ;;  %1170 = vmatpush.bf16.msra.mxu2 %v1124_v3  ;;  %v1147_v42 = vld [vmem:[%s1615_s1 + $0xd8] sm:$0xff]  ;;  %v833_v46 = vor.u32 %v1097_v41, %v832_v40  ;;  %v1138_v50 = vld [vmem:[%s1615_s1 + $0x90] sm:$0xff]  ;;  %v1137_v54 = vld [vmem:[%s1615_s1 + $0x88] sm:$0xff] }
   0xf   :  { %1171 = vmatpush.bf16.msra.mxu3 %v1124_v3  ;;  %554 = vmatpush.bf16.msra.mxu0 %v1124_v3  ;;  %v1139_v43 = vld [vmem:[%s1615_s1 + $0x98] sm:$0xff]  ;;  %v1130_v51 = vld [vmem:[%s1615_s1 + $0x50] sm:$0xff]  ;;  %v1129_v55 = vld [vmem:[%s1615_s1 + $0x48] sm:$0xff] }
  0x10   :  { %v1131_v47 = vld [vmem:[%s1615_s1 + $0x58] sm:$0xff]  ;;  %v1154_v52 = vld [vmem:[%s1615_s1 + $0x110] sm:$0xff]  ;;  %v1144_v56 = vld [vmem:[%s1615_s1 + $0xc0] sm:$0xff] }
  0x11   :  { %v1155_v48 = vld [vmem:[%s1615_s1 + $0x118] sm:$0xff]  ;;  %v1153_v57 = vld [vmem:[%s1615_s1 + $0x108] sm:$0xff]  ;;  %v1136_v58 = vld [vmem:[%s1615_s1 + $0x80] sm:$0xff] }
  0x12   :  { %1172 = vmatpush.bf16.msra.mxu1 %v1123_v4  ;;  %1173 = vmatpush.bf16.msra.mxu2 %v1123_v4  ;;  %v1091_v59 = vld [vmem:[%s1617_s0 + $0xc] sm:$0xf]  ;;  %v822_v60 = vld [vmem:[%s1617_s0 + $0x1c] sm:$0xf0]  ;;  %v1090_v62 = vld [vmem:[%s1617_s0 + $0x4] sm:$0xf] }
  0x13   :  { %1174 = vmatpush.bf16.msra.mxu3 %v1123_v4  ;;  %555 = vmatpush.bf16.msra.mxu0 %v1123_v4  ;;  %v1128_v61 = vld [vmem:[%s1615_s1 + $0x40] sm:$0xff]  ;;  %v814_v63 = vld [vmem:[%s1617_s0 + $0x14] sm:$0xf0]  ;;  %v820_v0 = vld [vmem:[%s1617_s0 + $0x8] sm:$0xf]  ;;  %v825_v2 = vor.u32 %v1091_v59, %v822_v60 }
  0x14   :  { %v1093_v1 = vld [vmem:[%s1617_s0 + $0x18] sm:$0xf0]  ;;  %v1152_v3 = vld [vmem:[%s1615_s1 + $0x100] sm:$0xff]  ;;  %v828_v4 = vld [vmem:[%s1617_s0 + $0x10] sm:$0xf] }
  0x15   :  { %v1096_v10 = vld [vmem:[%s1617_s0 + $0x34] sm:$0xf]  ;;  %v842_v11 = vld [vmem:[%s1617_s0 + $0x44] sm:$0xf0]  ;;  %v1095_v12 = vld [vmem:[%s1617_s0 + $0x2c] sm:$0xf] }
  0x16   :  { %1175 = vmatpush.bf16.msra.mxu1 %v1122_v5  ;;  %1176 = vmatpush.bf16.msra.mxu2 %v1122_v5  ;;  %v834_v13 = vld [vmem:[%s1617_s0 + $0x3c] sm:$0xf0]  ;;  %v840_v14 = vld [vmem:[%s1617_s0 + $0x30] sm:$0xf]  ;;  %v1098_v15 = vld [vmem:[%s1617_s0 + $0x40] sm:$0xf0] }
  0x17   :  { %1177 = vmatpush.bf16.msra.mxu3 %v1122_v5  ;;  %556 = vmatpush.bf16.msra.mxu0 %v1122_v5  ;;  %v1094_v5 = vld [vmem:[%s1617_s0 + $0x20] sm:$0xf0]  ;;  %v882_v35 = vld [vmem:[%s1617_s0 + $0x94] sm:$0xf0]  ;;  %v1105_v36 = vld [vmem:[%s1617_s0 + $0x7c] sm:$0xf] }
  0x18   :  { %v829_v9 = vor.u32 %v1094_v5, %v828_v4  ;;  %v874_v37 = vld [vmem:[%s1617_s0 + $0x8c] sm:$0xf0]  ;;  %v880_v38 = vld [vmem:[%s1617_s0 + $0x80] sm:$0xf]  ;;  %v888_v41 = vld [vmem:[%s1617_s0 + $0x88] sm:$0xf] }
  0x19   :  { %v922_v59 = vld [vmem:[%s1617_s0 + $0xe4] sm:$0xf0]  ;;  %v1115_v60 = vld [vmem:[%s1617_s0 + $0xcc] sm:$0xf] }
  0x1a   :  { %1178 = vmatpush.bf16.msra.mxu1 %v1121_v6  ;;  %1179 = vmatpush.bf16.msra.mxu2 %v1121_v6 }
  0x1b   :  { %1180 = vmatpush.bf16.msra.mxu3 %v1121_v6  ;;  %557 = vmatpush.bf16.msra.mxu0 %v1121_v6  ;;  %v817_v6 = vor.u32 %v1090_v62, %v814_v63  ;;  %v920_v62 = vld [vmem:[%s1617_s0 + $0xd0] sm:$0xf]  ;;  %v1118_v63 = vld [vmem:[%s1617_s0 + $0xe0] sm:$0xf0] }
  0x1c   :  { %v921_v4 = vor.u32 %v1118_v63, %v920_v62 }
  0x1e   :  { %1181 = vmatpush.bf16.msra.mxu1 %v1120_v8  ;;  %1182 = vmatpush.bf16.msra.mxu2 %v1120_v8 }
  0x1f   :  { %1183 = vmatpush.bf16.msra.mxu3 %v1120_v8  ;;  %558 = vmatpush.bf16.msra.mxu0 %v1120_v8  ;;  %v821_v8 = vor.u32 %v1093_v1, %v820_v0  ;;  %v928_v1 = vld [vmem:[%s1617_s0 + $0xd8] sm:$0xf] }
  0x21   :  { %569 = vmatmul.bf16.vlgmr.msra.gmra.mxu1 %v853_v18  ;;  %579 = vmatmul.bf16.vlgmr.msra.gmra.mxu2 %v893_v19  ;;  %v1099_v18 = vld [vmem:[%s1617_s0 + $0x48] sm:$0xf0]  ;;  %v837_v19 = vor.u32 %v1095_v12, %v834_v13 }
  0x22   :  { %637 = vmatpush.bf16.msrb.mxu2 %v1143_v17  ;;  %559 = vmatmul.bf16.vlgmr.msra.gmra.mxu0 %v813_v20  ;;  %v848_v17 = vld [vmem:[%s1617_s0 + $0x38] sm:$0xf]  ;;  %v841_v20 = vor.u32 %v1098_v15, %v840_v14 }
  0x23   :  { %680 = vmatpush.bf16.msrb.mxu3 %v1151_v16  ;;  %594 = vmatpush.bf16.msrb.mxu1 %v1135_v21  ;;  %v845_v16 = vor.u32 %v1096_v10, %v842_v11  ;;  %v849_v21 = vor.u32 %v1099_v18, %v848_v17  ;;  %v237_v10 = vunpack.c.h.b16 %v1229_v7 }
  0x24   :  { %723 = vmatpush.bf16.msrb.mxu0 %v1159_v22  ;;  %589 = vmatmul.bf16.vlgmr.msra.gmra.mxu3 %v271_v23  ;;  %v1101_v22 = vld [vmem:[%s1617_s0 + $0x5c] sm:$0xf]  ;;  %v862_v23 = vld [vmem:[%s1617_s0 + $0x6c] sm:$0xf0] }
  0x25   :  { %v272_v14 = vpack.c.b16 %v237_v10, %v237_v10 }
  0x26   :  { %638 = vmatpush.bf16.msrb.mxu2 %v1142_v25  ;;  %v854_v25 = vld [vmem:[%s1617_s0 + $0x64] sm:$0xf0] }
  0x27   :  { %681 = vmatpush.bf16.msrb.mxu3 %v1150_v24  ;;  %595 = vmatpush.bf16.msrb.mxu1 %v1134_v26  ;;  %v1100_v24 = vld [vmem:[%s1617_s0 + $0x54] sm:$0xf]  ;;  %v860_v26 = vld [vmem:[%s1617_s0 + $0x58] sm:$0xf] }
  0x28   :  { %724 = vmatpush.bf16.msrb.mxu0 %v1158_v27  ;;  %v1103_v27 = vld [vmem:[%s1617_s0 + $0x68] sm:$0xf0] }
  0x2a   :  { %639 = vmatpush.bf16.msrb.mxu2 %v1141_v29  ;;  %v868_v29 = vld [vmem:[%s1617_s0 + $0x60] sm:$0xf] }
  0x2b   :  { %682 = vmatpush.bf16.msrb.mxu3 %v1149_v28  ;;  %596 = vmatpush.bf16.msrb.mxu1 %v1133_v30  ;;  %v865_v28 = vor.u32 %v1101_v22, %v862_v23  ;;  %v1104_v30 = vld [vmem:[%s1617_s0 + $0x70] sm:$0xf0] }
  0x2c   :  { %725 = vmatpush.bf16.msrb.mxu0 %v1157_v31  ;;  %v857_v31 = vor.u32 %v1100_v24, %v854_v25 }
  0x2e   :  { %640 = vmatpush.bf16.msrb.mxu2 %v1140_v33  ;;  %v869_v33 = vor.u32 %v1104_v30, %v868_v29 }
  0x2f   :  { %683 = vmatpush.bf16.msrb.mxu3 %v1148_v32  ;;  %597 = vmatpush.bf16.msrb.mxu1 %v1132_v34  ;;  %v861_v32 = vor.u32 %v1103_v27, %v860_v26  ;;  %v1106_v34 = vld [vmem:[%s1617_s0 + $0x84] sm:$0xf] }
  0x30   :  { %726 = vmatpush.bf16.msrb.mxu0 %v1156_v39  ;;  %v1108_v39 = vld [vmem:[%s1617_s0 + $0x90] sm:$0xf0]  ;;  %v885_v40 = vor.u32 %v1106_v34, %v882_v35 }
  0x31   :  { %574 = vmatmul.bf16.gmra.mxu1 %v873_v44  ;;  %584 = vmatmul.bf16.gmra.mxu2 %v913_v45  ;;  %v881_v44 = vor.u32 %v1108_v39, %v880_v38 }
  0x32   :  { %641 = vmatpush.bf16.msrb.mxu2 %v1139_v43  ;;  %564 = vmatmul.bf16.gmra.mxu0 %v833_v46  ;;  %v877_v43 = vor.u32 %v1105_v36, %v874_v37  ;;  %v1111_v46 = vld [vmem:[%s1617_s0 + $0xac] sm:$0xf] }
  0x33   :  { %684 = vmatpush.bf16.msrb.mxu3 %v1147_v42  ;;  %598 = vmatpush.bf16.msrb.mxu1 %v1131_v47  ;;  %v1109_v42 = vld [vmem:[%s1617_s0 + $0x98] sm:$0xf0]  ;;  %v902_v47 = vld [vmem:[%s1617_s0 + $0xbc] sm:$0xf0] }
  0x34   :  { %727 = vmatpush.bf16.msrb.mxu0 %v1155_v48  ;;  %v889_v45 = vor.u32 %v1109_v42, %v888_v41  ;;  %v1110_v48 = vld [vmem:[%s1617_s0 + $0xa4] sm:$0xf] }
  0x36   :  { %642 = vmatpush.bf16.msrb.mxu2 %v1138_v50  ;;  %v900_v50 = vld [vmem:[%s1617_s0 + $0xa8] sm:$0xf] }
  0x37   :  { %685 = vmatpush.bf16.msrb.mxu3 %v1146_v49  ;;  %599 = vmatpush.bf16.msrb.mxu1 %v1130_v51  ;;  %v894_v49 = vld [vmem:[%s1617_s0 + $0xb4] sm:$0xf0]  ;;  %v1113_v51 = vld [vmem:[%s1617_s0 + $0xb8] sm:$0xf0] }
  0x38   :  { %728 = vmatpush.bf16.msrb.mxu0 %v1154_v52  ;;  %v905_v52 = vor.u32 %v1111_v46, %v902_v47 }
  0x3a   :  { %643 = vmatpush.bf16.msrb.mxu2 %v1137_v54  ;;  %v1114_v54 = vld [vmem:[%s1617_s0 + $0xc0] sm:$0xf0] }
  0x3b   :  { %686 = vmatpush.bf16.msrb.mxu3 %v1145_v53  ;;  %600 = vmatpush.bf16.msrb.mxu1 %v1129_v55  ;;  %v908_v53 = vld [vmem:[%s1617_s0 + $0xb0] sm:$0xf]  ;;  %v897_v55 = vor.u32 %v1110_v48, %v894_v49 }
  0x3c   :  { %729 = vmatpush.bf16.msrb.mxu0 %v1153_v57  ;;  %v909_v57 = vor.u32 %v1114_v54, %v908_v53 }
  0x3e   :  { %644 = vmatpush.bf16.msrb.mxu2 %v1136_v58  ;;  %v1116_v58 = vld [vmem:[%s1617_s0 + $0xd4] sm:$0xf] }
  0x3f   :  { %687 = vmatpush.bf16.msrb.mxu3 %v1144_v56  ;;  %601 = vmatpush.bf16.msrb.mxu1 %v1128_v61  ;;  %v901_v56 = vor.u32 %v1113_v51, %v900_v50  ;;  %v914_v61 = vld [vmem:[%s1617_s0 + $0xdc] sm:$0xf0]  ;;  %v925_v0 = vor.u32 %v1116_v58, %v922_v59 }
  0x40   :  { %730 = vmatpush.bf16.msrb.mxu0 %v1152_v3  ;;  %v917_v3 = vor.u32 %v1115_v60, %v914_v61 }
  0x41   :  { %645 = vmatmul.bf16.vlgmr.msrb.gmra.mxu2 %v821_v8 }
  0x42   :  { %688 = vmatmul.bf16.vlgmr.msrb.gmra.mxu3 %v825_v2  ;;  %602 = vmatmul.bf16.vlgmr.msrb.gmra.mxu1 %v817_v6  ;;  %v1119_v2 = vld [vmem:[%s1617_s0 + $0xe8] sm:$0xf0]  ;;  %v51_v6 = vld [vmem:[%s1617_s0 + $0xf8] sm:$0xff] }
  0x43   :  { %731 = vmatmul.bf16.vlgmr.msrb.gmra.mxu0 %v829_v9  ;;  %v929_v5 = vor.u32 %v1119_v2, %v928_v1  ;;  %v239_v8 = vunpack.c.h.b16 %v51_v6  ;;  %v52_v9 = vld [vmem:[%s1617_s0 + $0x100] sm:$0xf]  ;;  %v238_v11 = vunpack.c.l.b16 %v51_v6 }
  0x44   :  { %v240_v12 = vunpack.c.l.b16 %v52_v9 }
  0x45   :  { %v274_v13 = vpack.c.b16 %v239_v8, %v239_v8  ;;  %v273_v15 = vpack.c.b16 %v238_v11, %v238_v11 }
  0x46   :  { %v275_v17 = vpack.c.b16 %v240_v12, %v240_v12 }
  0x51   :  { %650 = vmatmul.bf16.gmra.mxu2 %v841_v20 }
  0x52   :  { %693 = vmatmul.bf16.gmra.mxu3 %v845_v16  ;;  %607 = vmatmul.bf16.gmra.mxu1 %v837_v19  ;;  %v1523_v19 = vld [vmem:[%s1616_s2] ss:$0 sm:$0xff] }
  0x53   :  { %736 = vmatmul.bf16.gmra.mxu0 %v849_v21 }
  0x61   :  { %655 = vmatmul.bf16.gmra.mxu2 %v861_v32 }
  0x62   :  { %698 = vmatmul.bf16.gmra.mxu3 %v865_v28  ;;  %612 = vmatmul.bf16.gmra.mxu1 %v857_v31 }
  0x63   :  { %741 = vmatmul.bf16.gmra.mxu0 %v869_v33 }
  0x71   :  { %660 = vmatmul.bf16.gmra.mxu2 %v881_v44 }
  0x72   :  { %703 = vmatmul.bf16.gmra.mxu3 %v885_v40  ;;  %617 = vmatmul.bf16.gmra.mxu1 %v877_v43 }
  0x73   :  { %746 = vmatmul.bf16.gmra.mxu0 %v889_v45 }
  0x81   :  { %665 = vmatmul.bf16.gmra.mxu2 %v901_v56 }
  0x82   :  { %708 = vmatmul.bf16.gmra.mxu3 %v905_v52  ;;  %622 = vmatmul.bf16.gmra.mxu1 %v897_v55 }
  0x83   :  { %751 = vmatmul.bf16.gmra.mxu0 %v909_v57 }
  0x91   :  { %670 = vmatmul.bf16.gmra.mxu2 %v921_v4 }
  0x92   :  { %713 = vmatmul.bf16.gmra.mxu3 %v925_v0  ;;  %627 = vmatmul.bf16.gmra.mxu1 %v917_v3 }
  0x93   :  { %756 = vmatmul.bf16.gmra.mxu0 %v929_v5 }
  0x9e   :  { %v1518_v16 = vpop.f32.mrf.mxu1 }
  0x9f   :  { %v560_v18 = vpop.f32.mrf.mxu0 }
  0xa0   :  { %v561_v38 = vadd.f32 %v1523_v19, %v560_v18 }
  0xa1   :  { %675 = vmatmul.bf16.gmra.mxu2 %v273_v15 }
  0xa2   :  { %718 = vmatmul.bf16.gmra.mxu3 %v274_v13  ;;  %632 = vmatmul.bf16.gmra.mxu1 %v272_v14 }
  0xa3   :  { %761 = vmatmul.bf16.gmra.mxu0 %v275_v17  ;;  %v571_v17 = vadd.f32 %v1523_v19, %v1518_v16 }
  0xa4   :  { %v580_v20 = vpop.f32.mrf.mxu2 }
  0xa5   :  { %v1526_v7 = vadd.f32 %v1523_v19, %v580_v20 }
  0xa6   :  { %v1528_v21 = vpop.f32.mrf.mxu1 }
  0xa7   :  { %v590_v22 = vpop.f32.mrf.mxu3  ;;  %v562_v23 = vpop.f32.mrf.mxu0 }
  0xa8   :  { %v1531_v24 = vadd.f32 %v1523_v19, %v590_v22  ;;  %v563_v46 = vadd.f32 %v1523_v19, %v562_v23 }
  0xac   :  { %v582_v25 = vpop.f32.mrf.mxu2 }
  0xad   :  { %v1534_v26 = vadd.f32 %v1523_v19, %v582_v25 }
  0xae   :  { %v1536_v27 = vpop.f32.mrf.mxu1 }
  0xaf   :  { %v592_v28 = vpop.f32.mrf.mxu3  ;;  %v565_v29 = vpop.f32.mrf.mxu0 }
  0xb0   :  { %v566_v57 = vadd.f32 %v1523_v19, %v565_v29 }
  0xb4   :  { %v585_v30 = vpop.f32.mrf.mxu2 }
  0xb5   :  { %v1539_v31 = vadd.f32 %v1523_v19, %v585_v30 }
  0xb6   :  { %v1541_v32 = vpop.f32.mrf.mxu1 }
  0xb7   :  { %v567_v33 = vpop.f32.mrf.mxu0 }
  0xb8   :  { %v568_v4 = vadd.f32 %v1523_v19, %v567_v33 }
  0xbc   :  { %v587_v34 = vpop.f32.mrf.mxu2 }
  0xbd   :  { %v1544_v35 = vadd.f32 %v1523_v19, %v587_v34 }
  0xbf   :  { %v603_v36 = vpop.f32.mrf.mxu1 }
  0xc0   :  { %v732_v37 = vpop.f32.mrf.mxu0  ;;  %v604_v40 = vadd.f32 %v603_v36, %v561_v38  ;;  %v573_v36 = vadd.f32 %v1523_v19, %v1528_v21 }
  0xc4   :  { %v646_v41 = vpop.f32.mrf.mxu2 }
  0xc5   :  { %v689_v39 = vpop.f32.mrf.mxu3  ;;  %v647_v42 = vadd.f32 %v646_v41, %v604_v40 }
  0xc7   :  { %v605_v43 = vpop.f32.mrf.mxu1  ;;  %v690_v44 = vadd.f32 %v689_v39, %v647_v42 }
  0xc8   :  { %v734_v45 = vpop.f32.mrf.mxu0  ;;  %v606_v50 = vadd.f32 %v605_v43, %v563_v46  ;;  %v576_v46 = vadd.f32 %v1523_v19, %v1536_v27 }
  0xc9   :  { %v733_v47 = vadd.f32 %v732_v37, %v690_v44 }
  0xcb   :  { %v766_v49 = vmax.f32 %v733_v47, 0.0 }
  0xcc   :  { %v648_v51 = vpop.f32.mrf.mxu2 }
  0xcd   :  { %v691_v48 = vpop.f32.mrf.mxu3  ;;  %v779_v52 = vpack.c.bf16 %v766_v49, %v766_v49  ;;  %v649_v53 = vadd.f32 %v648_v51, %v606_v50 }
  0xcf   :  { %v608_v54 = vpop.f32.mrf.mxu1  ;;  %793 = vst.msk [vmem:[%s1618_s3] sm:$0xf] %vm792_vm0, %v779_v52  ;;  %v692_v55 = vadd.f32 %v691_v48, %v649_v53 }
  0xd0   :  { %v737_v56 = vpop.f32.mrf.mxu0  ;;  %v609_v61 = vadd.f32 %v608_v54, %v566_v57 }
  0xd1   :  { %v735_v58 = vadd.f32 %v734_v45, %v692_v55 }
  0xd3   :  { %v767_v60 = vmax.f32 %v735_v58, 0.0 }
  0xd4   :  { %v651_v62 = vpop.f32.mrf.mxu2 }
  0xd5   :  { %v694_v59 = vpop.f32.mrf.mxu3  ;;  %v780_v63 = vpack.c.bf16 %v767_v60, %v767_v60  ;;  %v652_v0 = vadd.f32 %v651_v62, %v609_v61 }
  0xd7   :  { %v610_v1 = vpop.f32.mrf.mxu1  ;;  %794 = vst.msk [vmem:[%s1618_s3 + $0x4] sm:$0xf] %vm792_vm0, %v780_v63  ;;  %v695_v2 = vadd.f32 %v694_v59, %v652_v0 }
  0xd8   :  { %v739_v3 = vpop.f32.mrf.mxu0  ;;  %v611_v9 = vadd.f32 %v610_v1, %v568_v4 }
  0xd9   :  { %v738_v5 = vadd.f32 %v737_v56, %v695_v2  ;;  %v578_v56 = vadd.f32 %v1523_v19, %v1541_v32 }
  0xdb   :  { %v768_v8 = vmax.f32 %v738_v5, 0.0 }
  0xdc   :  { %v653_v10 = vpop.f32.mrf.mxu2 }
  0xdd   :  { %v696_v6 = vpop.f32.mrf.mxu3  ;;  %v781_v11 = vpack.c.bf16 %v768_v8, %v768_v8  ;;  %v654_v12 = vadd.f32 %v653_v10, %v611_v9 }
  0xdf   :  { %v613_v13 = vpop.f32.mrf.mxu1  ;;  %795 = vst.msk [vmem:[%s1618_s3 + $0x8] sm:$0xf] %vm792_vm0, %v781_v11  ;;  %v697_v14 = vadd.f32 %v696_v6, %v654_v12 }
  0xe0   :  { %v742_v15 = vpop.f32.mrf.mxu0  ;;  %v614_v23 = vadd.f32 %v613_v13, %v571_v17 }
  0xe1   :  { %v740_v18 = vadd.f32 %v739_v3, %v697_v14 }
  0xe3   :  { %v769_v22 = vmax.f32 %v740_v18, 0.0 }
  0xe4   :  { %v656_v25 = vpop.f32.mrf.mxu2 }
  0xe5   :  { %v699_v20 = vpop.f32.mrf.mxu3  ;;  %v782_v28 = vpack.c.bf16 %v769_v22, %v769_v22  ;;  %v657_v29 = vadd.f32 %v656_v25, %v614_v23 }
  0xe7   :  { %v615_v30 = vpop.f32.mrf.mxu1  ;;  %796 = vst.msk [vmem:[%s1618_s3 + $0xc] sm:$0xf] %vm792_vm0, %v782_v28  ;;  %v700_v33 = vadd.f32 %v699_v20, %v657_v29 }
  0xe8   :  { %v744_v34 = vpop.f32.mrf.mxu0  ;;  %v616_v39 = vadd.f32 %v615_v30, %v573_v36 }
  0xe9   :  { %v743_v37 = vadd.f32 %v742_v15, %v700_v33 }
  0xeb   :  { %v770_v38 = vmax.f32 %v743_v37, 0.0 }
  0xec   :  { %v658_v40 = vpop.f32.mrf.mxu2 }
  0xed   :  { %v701_v16 = vpop.f32.mrf.mxu3  ;;  %v783_v41 = vpack.c.bf16 %v770_v38, %v770_v38  ;;  %v659_v42 = vadd.f32 %v658_v40, %v616_v39 }
  0xef   :  { %v618_v43 = vpop.f32.mrf.mxu1  ;;  %797 = vst.msk [vmem:[%s1618_s3 + $0x10] sm:$0xf] %vm792_vm0, %v783_v41  ;;  %v702_v44 = vadd.f32 %v701_v16, %v659_v42 }
  0xf0   :  { %v747_v45 = vpop.f32.mrf.mxu0  ;;  %v619_v49 = vadd.f32 %v618_v43, %v576_v46 }
  0xf1   :  { %v745_v47 = vadd.f32 %v744_v34, %v702_v44 }
  0xf3   :  { %v771_v48 = vmax.f32 %v745_v47, 0.0 }
  0xf4   :  { %v661_v50 = vpop.f32.mrf.mxu2 }
  0xf5   :  { %v704_v21 = vpop.f32.mrf.mxu3  ;;  %v784_v51 = vpack.c.bf16 %v771_v48, %v771_v48  ;;  %v662_v52 = vadd.f32 %v661_v50, %v619_v49 }
  0xf7   :  { %v620_v53 = vpop.f32.mrf.mxu1  ;;  %798 = vst.msk [vmem:[%s1618_s3 + $0x14] sm:$0xf] %vm792_vm0, %v784_v51  ;;  %v705_v54 = vadd.f32 %v704_v21, %v662_v52 }
  0xf8   :  { %v749_v55 = vpop.f32.mrf.mxu0  ;;  %v621_v59 = vadd.f32 %v620_v53, %v578_v56 }
  0xf9   :  { %v748_v57 = vadd.f32 %v747_v45, %v705_v54 }
  0xfb   :  { %v772_v58 = vmax.f32 %v748_v57, 0.0 }
  0xfc   :  { %v663_v60 = vpop.f32.mrf.mxu2 }
  0xfd   :  { %v706_v27 = vpop.f32.mrf.mxu3  ;;  %v785_v61 = vpack.c.bf16 %v772_v58, %v772_v58  ;;  %v664_v62 = vadd.f32 %v663_v60, %v621_v59 }
  0xff   :  { %v623_v63 = vpop.f32.mrf.mxu1  ;;  %799 = vst.msk [vmem:[%s1618_s3 + $0x18] sm:$0xf] %vm792_vm0, %v785_v61  ;;  %v707_v0 = vadd.f32 %v706_v27, %v664_v62 }
 0x100   :  { %v752_v1 = vpop.f32.mrf.mxu0  ;;  %v624_v19 = vadd.f32 %v623_v63, %v1526_v7 }
 0x101   :  { %v750_v2 = vadd.f32 %v749_v55, %v707_v0 }
 0x103   :  { %v773_v4 = vmax.f32 %v750_v2, 0.0 }
 0x104   :  { %v666_v32 = vpop.f32.mrf.mxu2 }
 0x105   :  { %v709_v3 = vpop.f32.mrf.mxu3  ;;  %v786_v5 = vpack.c.bf16 %v773_v4, %v773_v4  ;;  %v667_v6 = vadd.f32 %v666_v32, %v624_v19 }
 0x107   :  { %v625_v8 = vpop.f32.mrf.mxu1  ;;  %800 = vst.msk [vmem:[%s1618_s3 + $0x1c] sm:$0xf] %vm792_vm0, %v786_v5  ;;  %v710_v9 = vadd.f32 %v709_v3, %v667_v6 }
 0x108   :  { %v754_v10 = vpop.f32.mrf.mxu0  ;;  %v626_v14 = vadd.f32 %v625_v8, %v1534_v26 }
 0x109   :  { %v753_v11 = vadd.f32 %v752_v1, %v710_v9 }
 0x10b   :  { %v774_v13 = vmax.f32 %v753_v11, 0.0 }
 0x10c   :  { %v668_v15 = vpop.f32.mrf.mxu2 }
 0x10d   :  { %v711_v12 = vpop.f32.mrf.mxu3  ;;  %v787_v17 = vpack.c.bf16 %v774_v13, %v774_v13  ;;  %v669_v18 = vadd.f32 %v668_v15, %v626_v14 }
 0x10f   :  { %v628_v7 = vpop.f32.mrf.mxu1  ;;  %801 = vst.msk [vmem:[%s1618_s3 + $0x20] sm:$0xf] %vm792_vm0, %v787_v17  ;;  %v712_v20 = vadd.f32 %v711_v12, %v669_v18 }
 0x110   :  { %v757_v22 = vpop.f32.mrf.mxu0  ;;  %v629_v29 = vadd.f32 %v628_v7, %v1539_v31 }
 0x111   :  { %v755_v23 = vadd.f32 %v754_v10, %v712_v20 }
 0x113   :  { %v775_v28 = vmax.f32 %v755_v23, 0.0 }
 0x114   :  { %v671_v30 = vpop.f32.mrf.mxu2 }
 0x115   :  { %v714_v25 = vpop.f32.mrf.mxu3  ;;  %v788_v33 = vpack.c.bf16 %v775_v28, %v775_v28  ;;  %v672_v34 = vadd.f32 %v671_v30, %v629_v29 }
 0x117   :  { %v630_v26 = vpop.f32.mrf.mxu1  ;;  %802 = vst.msk [vmem:[%s1618_s3 + $0x24] sm:$0xf] %vm792_vm0, %v788_v33  ;;  %v715_v36 = vadd.f32 %v714_v25, %v672_v34 }
 0x118   :  { %v759_v37 = vpop.f32.mrf.mxu0  ;;  %v631_v40 = vadd.f32 %v630_v26, %v1544_v35 }
 0x119   :  { %v758_v16 = vadd.f32 %v757_v22, %v715_v36 }
 0x11b   :  { %v776_v39 = vmax.f32 %v758_v16, 0.0 }
 0x11c   :  { %v673_v41 = vpop.f32.mrf.mxu2 }
 0x11d   :  { %v716_v38 = vpop.f32.mrf.mxu3  ;;  %v789_v42 = vpack.c.bf16 %v776_v39, %v776_v39  ;;  %v674_v43 = vadd.f32 %v673_v41, %v631_v40 }
 0x11f   :  { %v633_v31 = vpop.f32.mrf.mxu1  ;;  %803 = vst.msk [vmem:[%s1618_s3 + $0x28] sm:$0xf] %vm792_vm0, %v789_v42  ;;  %v717_v44 = vadd.f32 %v716_v38, %v674_v43 }
 0x120   :  { %v762_v45 = vpop.f32.mrf.mxu0  ;;  %v634_v48 = vadd.f32 %v633_v31, %v1531_v24 }
 0x121   :  { %v760_v46 = vadd.f32 %v759_v37, %v717_v44 }
 0x123   :  { %v777_v21 = vmax.f32 %v760_v46, 0.0 }
 0x124   :  { %v676_v49 = vpop.f32.mrf.mxu2 }
 0x125   :  { %v719_v47 = vpop.f32.mrf.mxu3  ;;  %v790_v50 = vpack.c.bf16 %v777_v21, %v777_v21  ;;  %v677_v51 = vadd.f32 %v676_v49, %v634_v48 }
 0x127   :  { %v635_v35 = vpop.f32.mrf.mxu1  ;;  %804 = vst.msk [vmem:[%s1618_s3 + $0x2c] sm:$0xf] %vm792_vm0, %v790_v50  ;;  %v720_v52 = vadd.f32 %v719_v47, %v677_v51 }
 0x128   :  { %v764_v53 = vpop.f32.mrf.mxu0 }
 0x129   :  { %v763_v54 = vadd.f32 %v762_v45, %v720_v52 }
 0x12b   :  { %v778_v56 = vmax.f32 %v763_v54, 0.0 }
 0x12c   :  { %v678_v57 = vpop.f32.mrf.mxu2 }
 0x12d   :  { %v721_v55 = vpop.f32.mrf.mxu3  ;;  %v791_v27 = vpack.c.bf16 %v778_v56, %v778_v56 }
 0x12f   :  { %805 = vst.msk [vmem:[%s1618_s3 + $0x30] sm:$0xf] %vm792_vm0, %v791_v27 }

// kernel: dueling_forward.7
= control target key start
LH: loop header
LB: loop body
LE: loop exit
PB: predicated region body
PF: predicated region fallthrough
CT: control target
= control target key end

     0   :  { %s2604_s18 = smov 0   ;;  %s2606_s19 = smov 0   ;;  %s3034_s0 = inlined_call_operand.vmem [shape: bf16[8,3584], index: 0, kind: input, shape index: {}]   ;;  %s3035_s1 = inlined_call_operand.vmem [shape: bf16[3584,512], index: 1, kind: input, shape index: {}]   ;;  %s3036_s2 = inlined_call_operand.vmem [shape: f32[1,512], index: 2, kind: input, shape index: {}]   ;;  %s3037_s3 = inlined_call_operand.vmem [shape: bf16[512,128], index: 3, kind: input, shape index: {}]   ;;  %s3038_s4 = inlined_call_operand.vmem [shape: f32[1,128], index: 4, kind: input, shape index: {}]   ;;  %s3039_s5 = inlined_call_operand.vmem [shape: f32[8,128], index: 5, kind: output, shape index: {}]  }
   0x1   :  { %s2608_s20 = smov 0  }
   0x2 LB: > { %s24_s21 = sadd.s32 1, %s2567_s19  ;;  %p1711_p0 = scmp.ge.s32.totalorder %s2571_s20, 1  ;;  %s2571_s20 = sphi %s2608_s20, %s15_s20   ;;  %s2567_s19 = sphi %s2606_s19, %s3041_s19   ;;  %s2563_s18 = sphi %s2604_s18, %s3040_s18  }
   0x3   : > { %p25_p1 = scmp.ge.s32.totalorder %s24_s21, 7  ;;  %p218_p2 = scmp.lt.s32.totalorder %s2571_s20, 8 }
   0x5   : > { %s3043_s21 = smov (%p25_p1, %s24_s21), 0  ;;  %p219_p3 = pnand %p1711_p0, %p218_p2 }
   0x6   : > { %s1712_s22 = sshll.u32 (!%p219_p3), %s2563_s18, 2  ;;  %s1714_s23 = sshll.u32 (!%p219_p3), %s2563_s18, 6 }
   0x7   : > { %222 = sbr.rel (%p219_p3) target bundleno = 473 (0x1d9), region = 40  ;;  %p258_p4 = scmp.lt.s32.totalorder (!%p219_p3), %s1712_s22, 27 }
   0x8   : > { %p266_p5 = scmp.lt.s32.totalorder (!%p219_p3), %s1714_s23, 447  ;;  %p1717_p6 = scmp.ne.s32.totalorder (!%p219_p3), %s2563_s18, 0 }
   0xc   : > { %s3045_s22 = smov (!%p258_p4, %s1712_s22), 27  ;;  %s3047_s23 = smov (!%p266_p5, %s1714_s23), 447 }
   0xd   : > { %s1713_s24 = sshll.u32 %s3045_s22, 2  ;;  %s2362_s28 = sshll.u32 %s3047_s23, 4 }
   0xe   : > { %s2629_s27 = scalar_lea.vmem %s3034_s0, %s1713_s24  ;;  %s2634_s6 = scalar_lea.vmem %s3035_s1, %s2362_s28 }
   0xf   : > { %279 = sbr.rel (%p1717_p6) target bundleno = 25 (0x19), region = 44 }
  0x14   : > { %v2573_v0 = vmov 0.0  }
  0x15   : > { %280 = vst [vmem:[#allocation2 + $0x10] sm:$0xff] %v2573_v0 }
  0x16   : > { %281 = vst [vmem:[#allocation2] sm:$0xff] %v2573_v0 }
  0x17   : > { %282 = vst [vmem:[#allocation2 + $0x18] sm:$0xff] %v2573_v0 }
  0x18   : > { %283 = vst [vmem:[#allocation2 + $0x8] sm:$0xff] %v2573_v0 }
  0x19 PF: > { %v1832_v1 = vld [vmem:[%s2634_s6 + $0xe0] sm:$0xf]  ;;  %v2393_v2 = vld [vmem:[%s2634_s6 + $0xec] sm:$0xf0]  ;;  %p2230_p7 = scmp.ne.s32.totalorder %s2563_s18, 6 }
  0x1a   : > { %v1960_v3 = vld [vmem:[%s2634_s6 + $0x1e0] sm:$0xf]  ;;  %v1833_v4 = vor.u32 %v2393_v2, %v1832_v1  ;;  %v2425_v5 = vld [vmem:[%s2634_s6 + $0x1ec] sm:$0xf0] }
  0x1b   : > { %v2088_v6 = vld [vmem:[%s2634_s6 + $0x2e0] sm:$0xf]  ;;  %v2457_v7 = vld [vmem:[%s2634_s6 + $0x2ec] sm:$0xf0]  ;;  %v1961_v8 = vor.u32 %v2425_v5, %v1960_v3 }
  0x1c   : > { %v2089_v9 = vor.u32 %v2457_v7, %v2088_v6  ;;  %v2216_v10 = vld [vmem:[%s2634_s6 + $0x3e0] sm:$0xf]  ;;  %v2489_v11 = vld [vmem:[%s2634_s6 + $0x3ec] sm:$0xf0]  ;;  %1072 = vmatpush.bf16.msra.mxu0 %v1833_v4 }
  0x1d   : > { %v1816_v12 = vld [vmem:[%s2634_s6 + $0xc0] sm:$0xf]  ;;  %v2217_v13 = vor.u32 %v2489_v11, %v2216_v10  ;;  %v2389_v14 = vld [vmem:[%s2634_s6 + $0xcc] sm:$0xf0]  ;;  %1085 = vmatpush.bf16.msra.mxu1 %v1961_v8 }
  0x1e   : > { %v1944_v15 = vld [vmem:[%s2634_s6 + $0x1c0] sm:$0xf]  ;;  %v2421_v16 = vld [vmem:[%s2634_s6 + $0x1cc] sm:$0xf0]  ;;  %1098 = vmatpush.bf16.msra.mxu2 %v2089_v9  ;;  %v1817_v17 = vor.u32 %v2389_v14, %v1816_v12 }
  0x1f   : > { %v1945_v18 = vor.u32 %v2421_v16, %v1944_v15  ;;  %v2072_v19 = vld [vmem:[%s2634_s6 + $0x2c0] sm:$0xf]  ;;  %v2453_v20 = vld [vmem:[%s2634_s6 + $0x2cc] sm:$0xf0]  ;;  %1111 = vmatpush.bf16.msra.mxu3 %v2217_v13 }
  0x20   : > { %v2200_v21 = vld [vmem:[%s2634_s6 + $0x3c0] sm:$0xf]  ;;  %v2073_v22 = vor.u32 %v2453_v20, %v2072_v19  ;;  %v2485_v23 = vld [vmem:[%s2634_s6 + $0x3cc] sm:$0xf0]  ;;  %1073 = vmatpush.bf16.msra.mxu0 %v1817_v17 }
  0x21   : > { %v1800_v24 = vld [vmem:[%s2634_s6 + $0xa0] sm:$0xf]  ;;  %v2385_v25 = vld [vmem:[%s2634_s6 + $0xac] sm:$0xf0]  ;;  %v2201_v26 = vor.u32 %v2485_v23, %v2200_v21  ;;  %1086 = vmatpush.bf16.msra.mxu1 %v1945_v18 }
  0x22   : > { %v1928_v27 = vld [vmem:[%s2634_s6 + $0x1a0] sm:$0xf]  ;;  %v2417_v28 = vld [vmem:[%s2634_s6 + $0x1ac] sm:$0xf0]  ;;  %v1801_v30 = vor.u32 %v2385_v25, %v1800_v24  ;;  %1099 = vmatpush.bf16.msra.mxu2 %v2073_v22 }
  0x23   : > { %v2056_v29 = vld [vmem:[%s2634_s6 + $0x2a0] sm:$0xf]  ;;  %v2449_v31 = vld [vmem:[%s2634_s6 + $0x2ac] sm:$0xf0]  ;;  %v1929_v34 = vor.u32 %v2417_v28, %v1928_v27  ;;  %1112 = vmatpush.bf16.msra.mxu3 %v2201_v26 }
  0x24   : > { %v2184_v32 = vld [vmem:[%s2634_s6 + $0x3a0] sm:$0xf]  ;;  %v2481_v33 = vld [vmem:[%s2634_s6 + $0x3ac] sm:$0xf0]  ;;  %v2057_v35 = vor.u32 %v2449_v31, %v2056_v29  ;;  %1074 = vmatpush.bf16.msra.mxu0 %v1801_v30  ;;  %v2391_v29 = vld [vmem:[%s2634_s6 + $0xe4] sm:$0xf] }
  0x25   : > { %v1784_v36 = vld [vmem:[%s2634_s6 + $0x80] sm:$0xf]  ;;  %v2381_v37 = vld [vmem:[%s2634_s6 + $0x8c] sm:$0xf0]  ;;  %v2185_v39 = vor.u32 %v2481_v33, %v2184_v32  ;;  %1087 = vmatpush.bf16.msra.mxu1 %v1929_v34  ;;  %v1834_v30 = vld [vmem:[%s2634_s6 + $0xf0] sm:$0xf0] }
  0x26   : > { %v1912_v38 = vld [vmem:[%s2634_s6 + $0x180] sm:$0xf]  ;;  %v2413_v40 = vld [vmem:[%s2634_s6 + $0x18c] sm:$0xf0]  ;;  %v1785_v45 = vor.u32 %v2381_v37, %v1784_v36  ;;  %1100 = vmatpush.bf16.msra.mxu2 %v2057_v35  ;;  %v2423_v31 = vld [vmem:[%s2634_s6 + $0x1e4] sm:$0xf] }
  0x27   : > { %v2040_v41 = vld [vmem:[%s2634_s6 + $0x280] sm:$0xf]  ;;  %v2445_v42 = vld [vmem:[%s2634_s6 + $0x28c] sm:$0xf0]  ;;  %v1913_v46 = vor.u32 %v2413_v40, %v1912_v38  ;;  %1113 = vmatpush.bf16.msra.mxu3 %v2185_v39  ;;  %v1962_v33 = vld [vmem:[%s2634_s6 + $0x1f0] sm:$0xf0] }
  0x28   : > { %v2168_v43 = vld [vmem:[%s2634_s6 + $0x380] sm:$0xf]  ;;  %v2477_v44 = vld [vmem:[%s2634_s6 + $0x38c] sm:$0xf0]  ;;  %v2041_v47 = vor.u32 %v2445_v42, %v2040_v41  ;;  %1075 = vmatpush.bf16.msra.mxu0 %v1785_v45  ;;  %v2455_v34 = vld [vmem:[%s2634_s6 + $0x2e4] sm:$0xf]  ;;  %v1837_v41 = vor.u32 %v2391_v29, %v1834_v30  ;;  %v1965_v42 = vor.u32 %v2423_v31, %v1962_v33 }
  0x29   : > { %v1768_v48 = vld [vmem:[%s2634_s6 + $0x60] sm:$0xf]  ;;  %v2377_v49 = vld [vmem:[%s2634_s6 + $0x6c] sm:$0xf0]  ;;  %v2169_v51 = vor.u32 %v2477_v44, %v2168_v43  ;;  %1088 = vmatpush.bf16.msra.mxu1 %v1913_v46  ;;  %v2090_v35 = vld [vmem:[%s2634_s6 + $0x2f0] sm:$0xf0] }
  0x2a   : > { %v1896_v50 = vld [vmem:[%s2634_s6 + $0x160] sm:$0xf]  ;;  %v2409_v52 = vld [vmem:[%s2634_s6 + $0x16c] sm:$0xf0]  ;;  %v1769_v57 = vor.u32 %v2377_v49, %v1768_v48  ;;  %1101 = vmatpush.bf16.msra.mxu2 %v2041_v47  ;;  %v2487_v38 = vld [vmem:[%s2634_s6 + $0x3e4] sm:$0xf]  ;;  %v2093_v43 = vor.u32 %v2455_v34, %v2090_v35 }
  0x2b   : > { %v2024_v53 = vld [vmem:[%s2634_s6 + $0x260] sm:$0xf]  ;;  %v2441_v54 = vld [vmem:[%s2634_s6 + $0x26c] sm:$0xf0]  ;;  %v1897_v58 = vor.u32 %v2409_v52, %v1896_v50  ;;  %1114 = vmatpush.bf16.msra.mxu3 %v2169_v51  ;;  %v2218_v39 = vld [vmem:[%s2634_s6 + $0x3f0] sm:$0xf0] }
  0x2c   : > { %v2152_v55 = vld [vmem:[%s2634_s6 + $0x360] sm:$0xf]  ;;  %v2473_v56 = vld [vmem:[%s2634_s6 + $0x36c] sm:$0xf0]  ;;  %v2025_v59 = vor.u32 %v2441_v54, %v2024_v53  ;;  %1076 = vmatpush.bf16.msra.mxu0 %v1769_v57  ;;  %v2387_v44 = vld [vmem:[%s2634_s6 + $0xc4] sm:$0xf]  ;;  %v2221_v47 = vor.u32 %v2487_v38, %v2218_v39 }
  0x2d   : > { %v1752_v60 = vld [vmem:[%s2634_s6 + $0x40] sm:$0xf]  ;;  %v2373_v61 = vld [vmem:[%s2634_s6 + $0x4c] sm:$0xf0]  ;;  %v2153_v63 = vor.u32 %v2473_v56, %v2152_v55  ;;  %1089 = vmatpush.bf16.msra.mxu1 %v1897_v58  ;;  %v1818_v45 = vld [vmem:[%s2634_s6 + $0xd0] sm:$0xf0] }
  0x2e   : > { %v1880_v62 = vld [vmem:[%s2634_s6 + $0x140] sm:$0xf]  ;;  %v2405_v0 = vld [vmem:[%s2634_s6 + $0x14c] sm:$0xf0]  ;;  %v1753_v5 = vor.u32 %v2373_v61, %v1752_v60  ;;  %1102 = vmatpush.bf16.msra.mxu2 %v2025_v59  ;;  %v2419_v46 = vld [vmem:[%s2634_s6 + $0x1c4] sm:$0xf]  ;;  %v1821_v53 = vor.u32 %v2387_v44, %v1818_v45 }
  0x2f   : > { %v2008_v1 = vld [vmem:[%s2634_s6 + $0x240] sm:$0xf]  ;;  %v2437_v2 = vld [vmem:[%s2634_s6 + $0x24c] sm:$0xf0]  ;;  %v1881_v6 = vor.u32 %v2405_v0, %v1880_v62  ;;  %1115 = vmatpush.bf16.msra.mxu3 %v2153_v63  ;;  %v1946_v48 = vld [vmem:[%s2634_s6 + $0x1d0] sm:$0xf0] }
  0x30   : > { %v2136_v3 = vld [vmem:[%s2634_s6 + $0x340] sm:$0xf]  ;;  %v2469_v4 = vld [vmem:[%s2634_s6 + $0x34c] sm:$0xf0]  ;;  %v2009_v7 = vor.u32 %v2437_v2, %v2008_v1  ;;  %1077 = vmatpush.bf16.msra.mxu0 %v1753_v5  ;;  %v2451_v49 = vld [vmem:[%s2634_s6 + $0x2c4] sm:$0xf]  ;;  %v1949_v54 = vor.u32 %v2419_v46, %v1946_v48 }
  0x31   : > { %v1736_v8 = vld [vmem:[%s2634_s6 + $0x20] sm:$0xf]  ;;  %v2369_v9 = vld [vmem:[%s2634_s6 + $0x2c] sm:$0xf0]  ;;  %v2137_v11 = vor.u32 %v2469_v4, %v2136_v3  ;;  %1090 = vmatpush.bf16.msra.mxu1 %v1881_v6  ;;  %v2074_v50 = vld [vmem:[%s2634_s6 + $0x2d0] sm:$0xf0] }
  0x32   : > { %v1864_v10 = vld [vmem:[%s2634_s6 + $0x120] sm:$0xf]  ;;  %v2401_v12 = vld [vmem:[%s2634_s6 + $0x12c] sm:$0xf0]  ;;  %v1737_v17 = vor.u32 %v2369_v9, %v1736_v8  ;;  %1103 = vmatpush.bf16.msra.mxu2 %v2009_v7  ;;  %v2483_v51 = vld [vmem:[%s2634_s6 + $0x3c4] sm:$0xf]  ;;  %v2077_v55 = vor.u32 %v2451_v49, %v2074_v50 }
  0x33   : > { %v1992_v13 = vld [vmem:[%s2634_s6 + $0x220] sm:$0xf]  ;;  %v2433_v14 = vld [vmem:[%s2634_s6 + $0x22c] sm:$0xf0]  ;;  %v1865_v20 = vor.u32 %v2401_v12, %v1864_v10  ;;  %1116 = vmatpush.bf16.msra.mxu3 %v2137_v11  ;;  %v2202_v52 = vld [vmem:[%s2634_s6 + $0x3d0] sm:$0xf0] }
  0x34   : > { %v2120_v15 = vld [vmem:[%s2634_s6 + $0x320] sm:$0xf]  ;;  %v2465_v16 = vld [vmem:[%s2634_s6 + $0x32c] sm:$0xf0]  ;;  %v1993_v21 = vor.u32 %v2433_v14, %v1992_v13  ;;  %1078 = vmatpush.bf16.msra.mxu0 %v1737_v17  ;;  %v2383_v56 = vld [vmem:[%s2634_s6 + $0xa4] sm:$0xf]  ;;  %v2205_v59 = vor.u32 %v2483_v51, %v2202_v52 }
  0x35   : > { %v1720_v18 = vld [vmem:[%s2634_s6] sm:$0xf]  ;;  %v2365_v19 = vld [vmem:[%s2634_s6 + $0xc] sm:$0xf0]  ;;  %v2121_v25 = vor.u32 %v2465_v16, %v2120_v15  ;;  %1091 = vmatpush.bf16.msra.mxu1 %v1865_v20  ;;  %v1802_v57 = vld [vmem:[%s2634_s6 + $0xb0] sm:$0xf0] }
  0x36   : > { %v1848_v22 = vld [vmem:[%s2634_s6 + $0x100] sm:$0xf]  ;;  %v2397_v23 = vld [vmem:[%s2634_s6 + $0x10c] sm:$0xf0]  ;;  %v1721_v32 = vor.u32 %v2365_v19, %v1720_v18  ;;  %1104 = vmatpush.bf16.msra.mxu2 %v1993_v21  ;;  %v2415_v58 = vld [vmem:[%s2634_s6 + $0x1a4] sm:$0xf]  ;;  %v1805_v1 = vor.u32 %v2383_v56, %v1802_v57 }
  0x37   : > { %v1976_v24 = vld [vmem:[%s2634_s6 + $0x200] sm:$0xf]  ;;  %v2429_v26 = vld [vmem:[%s2634_s6 + $0x20c] sm:$0xf0]  ;;  %v1849_v36 = vor.u32 %v2397_v23, %v1848_v22  ;;  %1117 = vmatpush.bf16.msra.mxu3 %v2121_v25  ;;  %v1930_v60 = vld [vmem:[%s2634_s6 + $0x1b0] sm:$0xf0] }
  0x38   : > { %v2104_v27 = vld [vmem:[%s2634_s6 + $0x300] sm:$0xf]  ;;  %v2461_v28 = vld [vmem:[%s2634_s6 + $0x30c] sm:$0xf0]  ;;  %v1977_v37 = vor.u32 %v2429_v26, %v1976_v24  ;;  %1079 = vmatpush.bf16.msra.mxu0 %v1721_v32  ;;  %v2447_v61 = vld [vmem:[%s2634_s6 + $0x2a4] sm:$0xf]  ;;  %v1933_v3 = vor.u32 %v2415_v58, %v1930_v60 }
  0x39   : > { %v2105_v40 = vor.u32 %v2461_v28, %v2104_v27  ;;  %1092 = vmatpush.bf16.msra.mxu1 %v1849_v36  ;;  %v2058_v62 = vld [vmem:[%s2634_s6 + $0x2b0] sm:$0xf0]  ;;  %v2479_v63 = vld [vmem:[%s2634_s6 + $0x3a4] sm:$0xf]  ;;  %v289_v2 = vld [vmem:[%s2629_s27 + $0x8] sm:$0xff] }
  0x3a   : > { %1105 = vmatpush.bf16.msra.mxu2 %v1977_v37  ;;  %v2186_v0 = vld [vmem:[%s2634_s6 + $0x3b0] sm:$0xf0]  ;;  %v2061_v4 = vor.u32 %v2447_v61, %v2058_v62  ;;  %v2379_v5 = vld [vmem:[%s2634_s6 + $0x84] sm:$0xf]  ;;  %v422_v8 = vunpack.c.l.b16 %v289_v2  ;;  %v423_v9 = vunpack.c.h.b16 %v289_v2 }
  0x3b   : > { %1118 = vmatpush.bf16.msra.mxu3 %v2105_v40  ;;  %v1786_v6 = vld [vmem:[%s2634_s6 + $0x90] sm:$0xf0]  ;;  %v2411_v7 = vld [vmem:[%s2634_s6 + $0x184] sm:$0xf]  ;;  %v2189_v10 = vor.u32 %v2479_v63, %v2186_v0 }
  0x3c   : > { %1124 = vmatpush.bf16.msrb.mxu0 %v1837_v41  ;;  %v1914_v11 = vld [vmem:[%s2634_s6 + $0x190] sm:$0xf0]  ;;  %v2443_v12 = vld [vmem:[%s2634_s6 + $0x284] sm:$0xf]  ;;  %v2734_v16 = vpack.c.b16 %v422_v8, %v422_v8  ;;  %v2736_v17 = vpack.c.b16 %v423_v9, %v423_v9  ;;  %v1789_v19 = vor.u32 %v2379_v5, %v1786_v6  ;;  %v2394_v8 = vld [vmem:[%s2634_s6 + $0xf4] sm:$0xf0] }
  0x3d   : > { %1137 = vmatpush.bf16.msrb.mxu1 %v1965_v42  ;;  %v2042_v13 = vld [vmem:[%s2634_s6 + $0x290] sm:$0xf0]  ;;  %v2475_v14 = vld [vmem:[%s2634_s6 + $0x384] sm:$0xf]  ;;  %v1917_v22 = vor.u32 %v2411_v7, %v1914_v11  ;;  %v1840_v7 = vld [vmem:[%s2634_s6 + $0xe8] sm:$0xf] }
  0x3e   : > { %1150 = vmatpush.bf16.msrb.mxu2 %v2093_v43  ;;  %v2170_v15 = vld [vmem:[%s2634_s6 + $0x390] sm:$0xf0]  ;;  %v288_v18 = vld [vmem:[%s2629_s27] sm:$0xff]  ;;  %v2045_v23 = vor.u32 %v2443_v12, %v2042_v13  ;;  %1119 = vmatmul.bf16.vlgmr.msra.gmra.mxu3 %v2736_v17  ;;  %v1968_v9 = vld [vmem:[%s2634_s6 + $0x1e8] sm:$0xf] }
  0x3f   : > { %1163 = vmatpush.bf16.msrb.mxu3 %v2221_v47  ;;  %v420_v20 = vunpack.c.l.b16 %v288_v18  ;;  %v421_v21 = vunpack.c.h.b16 %v288_v18  ;;  %v2375_v24 = vld [vmem:[%s2634_s6 + $0x64] sm:$0xf]  ;;  %v1770_v25 = vld [vmem:[%s2634_s6 + $0x70] sm:$0xf0]  ;;  %v2173_v27 = vor.u32 %v2475_v14, %v2170_v15  ;;  %1106 = vmatmul.bf16.vlgmr.msra.gmra.mxu2 %v2734_v16  ;;  %v2426_v11 = vld [vmem:[%s2634_s6 + $0x1f4] sm:$0xf0] }
  0x40   : > { %1125 = vmatpush.bf16.msrb.mxu0 %v1821_v53  ;;  %v2407_v26 = vld [vmem:[%s2634_s6 + $0x164] sm:$0xf]  ;;  %v1898_v28 = vld [vmem:[%s2634_s6 + $0x170] sm:$0xf0]  ;;  %v1773_v35 = vor.u32 %v2375_v24, %v1770_v25  ;;  %v2096_v12 = vld [vmem:[%s2634_s6 + $0x2e8] sm:$0xf] }
  0x41   : > { %1138 = vmatpush.bf16.msrb.mxu1 %v1949_v54  ;;  %v2439_v29 = vld [vmem:[%s2634_s6 + $0x264] sm:$0xf]  ;;  %v2026_v30 = vld [vmem:[%s2634_s6 + $0x270] sm:$0xf0]  ;;  %v2746_v31 = vpack.c.b16 %v420_v20, %v420_v20  ;;  %v2748_v32 = vpack.c.b16 %v421_v21, %v421_v21  ;;  %v1901_v36 = vor.u32 %v2407_v26, %v1898_v28  ;;  %v2458_v13 = vld [vmem:[%s2634_s6 + $0x2f4] sm:$0xf0]  ;;  %v1841_v21 = vor.u32 %v2394_v8, %v1840_v7 }
  0x42   : > { %1151 = vmatpush.bf16.msrb.mxu2 %v2077_v55  ;;  %v2471_v33 = vld [vmem:[%s2634_s6 + $0x364] sm:$0xf]  ;;  %v2154_v34 = vld [vmem:[%s2634_s6 + $0x370] sm:$0xf0]  ;;  %v2029_v37 = vor.u32 %v2439_v29, %v2026_v30  ;;  %v2224_v18 = vld [vmem:[%s2634_s6 + $0x3e8] sm:$0xf] }
  0x43   : > { %1164 = vmatpush.bf16.msrb.mxu3 %v2205_v59  ;;  %1093 = vmatmul.bf16.vlgmr.msra.gmra.mxu1 %v2748_v32  ;;  %v2371_v38 = vld [vmem:[%s2634_s6 + $0x44] sm:$0xf]  ;;  %v1754_v39 = vld [vmem:[%s2634_s6 + $0x50] sm:$0xf0]  ;;  %v2157_v41 = vor.u32 %v2471_v33, %v2154_v34  ;;  %v1824_v24 = vld [vmem:[%s2634_s6 + $0xc8] sm:$0xf] }
  0x44   : > { %1126 = vmatpush.bf16.msrb.mxu0 %v1805_v1  ;;  %v2403_v40 = vld [vmem:[%s2634_s6 + $0x144] sm:$0xf]  ;;  %v1882_v42 = vld [vmem:[%s2634_s6 + $0x150] sm:$0xf0]  ;;  %v1757_v47 = vor.u32 %v2371_v38, %v1754_v39  ;;  %v2390_v25 = vld [vmem:[%s2634_s6 + $0xd4] sm:$0xf0] }
  0x45   : > { %1139 = vmatpush.bf16.msrb.mxu1 %v1933_v3  ;;  %v2435_v43 = vld [vmem:[%s2634_s6 + $0x244] sm:$0xf]  ;;  %v2010_v44 = vld [vmem:[%s2634_s6 + $0x250] sm:$0xf0]  ;;  %1080 = vmatmul.bf16.vlgmr.msra.gmra.mxu0 %v2746_v31  ;;  %v1885_v48 = vor.u32 %v2403_v40, %v1882_v42  ;;  %v1952_v26 = vld [vmem:[%s2634_s6 + $0x1c8] sm:$0xf] }
  0x46   : > { %1152 = vmatpush.bf16.msrb.mxu2 %v2061_v4  ;;  %v2467_v45 = vld [vmem:[%s2634_s6 + $0x344] sm:$0xf]  ;;  %v2138_v46 = vld [vmem:[%s2634_s6 + $0x350] sm:$0xf0]  ;;  %v2013_v49 = vor.u32 %v2435_v43, %v2010_v44  ;;  %v2422_v28 = vld [vmem:[%s2634_s6 + $0x1d4] sm:$0xf0] }
  0x47   : > { %1165 = vmatpush.bf16.msrb.mxu3 %v2189_v10  ;;  %v2367_v50 = vld [vmem:[%s2634_s6 + $0x24] sm:$0xf]  ;;  %v1738_v51 = vld [vmem:[%s2634_s6 + $0x30] sm:$0xf0]  ;;  %v2141_v53 = vor.u32 %v2467_v45, %v2138_v46  ;;  %v2080_v29 = vld [vmem:[%s2634_s6 + $0x2c8] sm:$0xf] }
  0x48   : > { %1127 = vmatpush.bf16.msrb.mxu0 %v1789_v19  ;;  %v2399_v52 = vld [vmem:[%s2634_s6 + $0x124] sm:$0xf]  ;;  %v1866_v54 = vld [vmem:[%s2634_s6 + $0x130] sm:$0xf0]  ;;  %v1741_v59 = vor.u32 %v2367_v50, %v1738_v51  ;;  %v2490_v19 = vld [vmem:[%s2634_s6 + $0x3f4] sm:$0xf0] }
  0x49   : > { %1140 = vmatpush.bf16.msrb.mxu1 %v1917_v22  ;;  %v2431_v55 = vld [vmem:[%s2634_s6 + $0x224] sm:$0xf]  ;;  %v1994_v56 = vld [vmem:[%s2634_s6 + $0x230] sm:$0xf0]  ;;  %v1869_v62 = vor.u32 %v2399_v52, %v1866_v54  ;;  %v1969_v22 = vor.u32 %v2426_v11, %v1968_v9  ;;  %v2454_v30 = vld [vmem:[%s2634_s6 + $0x2d4] sm:$0xf0] }
  0x4a   : > { %1153 = vmatpush.bf16.msrb.mxu2 %v2045_v23  ;;  %v2463_v57 = vld [vmem:[%s2634_s6 + $0x324] sm:$0xf]  ;;  %v2122_v58 = vld [vmem:[%s2634_s6 + $0x330] sm:$0xf0]  ;;  %v1997_v63 = vor.u32 %v2431_v55, %v1994_v56  ;;  %v2097_v23 = vor.u32 %v2458_v13, %v2096_v12  ;;  %v2208_v33 = vld [vmem:[%s2634_s6 + $0x3c8] sm:$0xf] }
  0x4b   : > { %1166 = vmatpush.bf16.msrb.mxu3 %v2173_v27  ;;  %v2363_v60 = vld [vmem:[%s2634_s6 + $0x4] sm:$0xf]  ;;  %v1722_v61 = vld [vmem:[%s2634_s6 + $0x10] sm:$0xf0]  ;;  %v2125_v3 = vor.u32 %v2463_v57, %v2122_v58  ;;  %v2225_v27 = vor.u32 %v2490_v19, %v2224_v18  ;;  %v2486_v34 = vld [vmem:[%s2634_s6 + $0x3d4] sm:$0xf0] }
  0x4c   : > { %1128 = vmatpush.bf16.msrb.mxu0 %v1773_v35  ;;  %v2395_v0 = vld [vmem:[%s2634_s6 + $0x104] sm:$0xf]  ;;  %v1850_v1 = vld [vmem:[%s2634_s6 + $0x110] sm:$0xf0]  ;;  %v1725_v10 = vor.u32 %v2363_v60, %v1722_v61  ;;  %v1825_v35 = vor.u32 %v2390_v25, %v1824_v24  ;;  %v1808_v38 = vld [vmem:[%s2634_s6 + $0xa8] sm:$0xf] }
  0x4d   : > { %1141 = vmatpush.bf16.msrb.mxu1 %v1901_v36  ;;  %v2427_v2 = vld [vmem:[%s2634_s6 + $0x204] sm:$0xf]  ;;  %v1978_v4 = vld [vmem:[%s2634_s6 + $0x210] sm:$0xf0]  ;;  %v1853_v14 = vor.u32 %v2395_v0, %v1850_v1  ;;  %v1953_v36 = vor.u32 %v2422_v28, %v1952_v26  ;;  %v2386_v39 = vld [vmem:[%s2634_s6 + $0xb4] sm:$0xf0] }
  0x4e   : > { %1154 = vmatpush.bf16.msrb.mxu2 %v2029_v37  ;;  %v2459_v5 = vld [vmem:[%s2634_s6 + $0x304] sm:$0xf]  ;;  %v2106_v6 = vld [vmem:[%s2634_s6 + $0x310] sm:$0xf0]  ;;  %v1981_v15 = vor.u32 %v2427_v2, %v1978_v4  ;;  %v2081_v37 = vor.u32 %v2454_v30, %v2080_v29  ;;  %v1936_v40 = vld [vmem:[%s2634_s6 + $0x1a8] sm:$0xf] }
  0x4f   : > { %1167 = vmatpush.bf16.msrb.mxu3 %v2157_v41  ;;  %v2109_v20 = vor.u32 %v2459_v5, %v2106_v6  ;;  %v2209_v41 = vor.u32 %v2486_v34, %v2208_v33  ;;  %v2418_v42 = vld [vmem:[%s2634_s6 + $0x1b4] sm:$0xf0]  ;;  %v2064_v43 = vld [vmem:[%s2634_s6 + $0x2a8] sm:$0xf] }
  0x50   : > { %1129 = vmatpush.bf16.msrb.mxu0 %v1757_v47  ;;  %v2450_v44 = vld [vmem:[%s2634_s6 + $0x2b4] sm:$0xf0]  ;;  %v2192_v45 = vld [vmem:[%s2634_s6 + $0x3a8] sm:$0xf]  ;;  %v1809_v47 = vor.u32 %v2386_v39, %v1808_v38 }
  0x51   : > { %1142 = vmatpush.bf16.msrb.mxu1 %v1885_v48  ;;  %v2482_v46 = vld [vmem:[%s2634_s6 + $0x3b4] sm:$0xf0]  ;;  %v1937_v48 = vor.u32 %v2418_v42, %v1936_v40  ;;  %v1792_v50 = vld [vmem:[%s2634_s6 + $0x88] sm:$0xf] }
  0x52   : > { %1155 = vmatpush.bf16.msrb.mxu2 %v2013_v49  ;;  %v2065_v49 = vor.u32 %v2450_v44, %v2064_v43  ;;  %v2382_v51 = vld [vmem:[%s2634_s6 + $0x94] sm:$0xf0]  ;;  %v1920_v52 = vld [vmem:[%s2634_s6 + $0x188] sm:$0xf] }
  0x53   : > { %1168 = vmatpush.bf16.msrb.mxu3 %v2141_v53  ;;  %v2193_v53 = vor.u32 %v2482_v46, %v2192_v45  ;;  %v2414_v54 = vld [vmem:[%s2634_s6 + $0x194] sm:$0xf0]  ;;  %v2048_v55 = vld [vmem:[%s2634_s6 + $0x288] sm:$0xf] }
  0x54   : > { %1130 = vmatpush.bf16.msrb.mxu0 %v1741_v59  ;;  %v2446_v56 = vld [vmem:[%s2634_s6 + $0x294] sm:$0xf0]  ;;  %v2176_v57 = vld [vmem:[%s2634_s6 + $0x388] sm:$0xf]  ;;  %v1793_v59 = vor.u32 %v2382_v51, %v1792_v50  ;;  %v1921_v60 = vor.u32 %v2414_v54, %v1920_v52  ;;  %v1970_v51 = vld [vmem:[%s2634_s6 + $0x1f8] sm:$0xf0] }
  0x55   : > { %1143 = vmatpush.bf16.msrb.mxu1 %v1869_v62  ;;  %v2478_v58 = vld [vmem:[%s2634_s6 + $0x394] sm:$0xf0]  ;;  %v2049_v61 = vor.u32 %v2446_v56, %v2048_v55  ;;  %v1776_v62 = vld [vmem:[%s2634_s6 + $0x68] sm:$0xf]  ;;  %v2456_v52 = vld [vmem:[%s2634_s6 + $0x2ec] sm:$0xf] }
  0x56   : > { %1156 = vmatpush.bf16.msrb.mxu2 %v1997_v63  ;;  %v2378_v63 = vld [vmem:[%s2634_s6 + $0x74] sm:$0xf0]  ;;  %v1904_v0 = vld [vmem:[%s2634_s6 + $0x168] sm:$0xf]  ;;  %v2177_v1 = vor.u32 %v2478_v58, %v2176_v57  ;;  %v2488_v56 = vld [vmem:[%s2634_s6 + $0x3ec] sm:$0xf] }
  0x57   : > { %1169 = vmatpush.bf16.msrb.mxu3 %v2125_v3  ;;  %v2410_v2 = vld [vmem:[%s2634_s6 + $0x174] sm:$0xf0]  ;;  %v2032_v3 = vld [vmem:[%s2634_s6 + $0x268] sm:$0xf]  ;;  %v1777_v7 = vor.u32 %v2378_v63, %v1776_v62  ;;  %v2226_v57 = vld [vmem:[%s2634_s6 + $0x3f8] sm:$0xf0] }
  0x58   : > { %1131 = vmatpush.bf16.msrb.mxu0 %v1725_v10  ;;  %v2442_v4 = vld [vmem:[%s2634_s6 + $0x274] sm:$0xf0]  ;;  %v2160_v5 = vld [vmem:[%s2634_s6 + $0x368] sm:$0xf]  ;;  %v1905_v8 = vor.u32 %v2410_v2, %v1904_v0  ;;  %v2388_v62 = vld [vmem:[%s2634_s6 + $0xcc] sm:$0xf] }
  0x59   : > { %1144 = vmatpush.bf16.msrb.mxu1 %v1853_v14  ;;  %v2474_v6 = vld [vmem:[%s2634_s6 + $0x374] sm:$0xf0]  ;;  %v2033_v9 = vor.u32 %v2442_v4, %v2032_v3  ;;  %v1760_v10 = vld [vmem:[%s2634_s6 + $0x48] sm:$0xf]  ;;  %v1826_v63 = vld [vmem:[%s2634_s6 + $0xd8] sm:$0xf0] }
  0x5a   : > { %1157 = vmatpush.bf16.msrb.mxu2 %v1981_v15  ;;  %v2374_v11 = vld [vmem:[%s2634_s6 + $0x54] sm:$0xf0]  ;;  %v1888_v12 = vld [vmem:[%s2634_s6 + $0x148] sm:$0xf]  ;;  %v2161_v13 = vor.u32 %v2474_v6, %v2160_v5  ;;  %v2420_v0 = vld [vmem:[%s2634_s6 + $0x1cc] sm:$0xf] }
  0x5b   : > { %1170 = vmatpush.bf16.msrb.mxu3 %v2109_v20  ;;  %1132 = vmatmul.bf16.vlgmr.msrb.gmra.mxu0 %v2746_v31  ;;  %v2406_v14 = vld [vmem:[%s2634_s6 + $0x154] sm:$0xf0]  ;;  %v2016_v15 = vld [vmem:[%s2634_s6 + $0x248] sm:$0xf]  ;;  %v1954_v2 = vld [vmem:[%s2634_s6 + $0x1d8] sm:$0xf0] }
  0x5c   : > { %1176 = vmatpush.bf16.msra.mxu0 %v1841_v21  ;;  %1145 = vmatmul.bf16.vlgmr.msrb.gmra.mxu1 %v2748_v32  ;;  %v2438_v18 = vld [vmem:[%s2634_s6 + $0x254] sm:$0xf0]  ;;  %v2144_v19 = vld [vmem:[%s2634_s6 + $0x348] sm:$0xf]  ;;  %v1761_v21 = vor.u32 %v2374_v11, %v1760_v10  ;;  %v2452_v3 = vld [vmem:[%s2634_s6 + $0x2cc] sm:$0xf] }
  0x5d   : > { %1189 = vmatpush.bf16.msra.mxu1 %v1969_v22  ;;  %1158 = vmatmul.bf16.vlgmr.msrb.gmra.mxu2 %v2734_v16  ;;  %v2470_v20 = vld [vmem:[%s2634_s6 + $0x354] sm:$0xf0]  ;;  %v1889_v22 = vor.u32 %v2406_v14, %v1888_v12  ;;  %v1744_v24 = vld [vmem:[%s2634_s6 + $0x28] sm:$0xf]  ;;  %v2082_v4 = vld [vmem:[%s2634_s6 + $0x2d8] sm:$0xf0] }
  0x5e   : > { %1202 = vmatpush.bf16.msra.mxu2 %v2097_v23  ;;  %1171 = vmatmul.bf16.vlgmr.msrb.gmra.mxu3 %v2736_v17  ;;  %v2017_v23 = vor.u32 %v2438_v18, %v2016_v15  ;;  %v2370_v25 = vld [vmem:[%s2634_s6 + $0x34] sm:$0xf0]  ;;  %v1872_v26 = vld [vmem:[%s2634_s6 + $0x128] sm:$0xf]  ;;  %v2484_v5 = vld [vmem:[%s2634_s6 + $0x3cc] sm:$0xf] }
  0x5f   : > { %1215 = vmatpush.bf16.msra.mxu3 %v2225_v27  ;;  %v2145_v27 = vor.u32 %v2470_v20, %v2144_v19  ;;  %v2402_v28 = vld [vmem:[%s2634_s6 + $0x134] sm:$0xf0]  ;;  %v2000_v29 = vld [vmem:[%s2634_s6 + $0x228] sm:$0xf]  ;;  %v2210_v6 = vld [vmem:[%s2634_s6 + $0x3d8] sm:$0xf0] }
  0x60   : > { %1177 = vmatpush.bf16.msra.mxu0 %v1825_v35  ;;  %v2434_v30 = vld [vmem:[%s2634_s6 + $0x234] sm:$0xf0]  ;;  %v2128_v33 = vld [vmem:[%s2634_s6 + $0x328] sm:$0xf]  ;;  %v1745_v35 = vor.u32 %v2370_v25, %v1744_v24  ;;  %v1873_v38 = vor.u32 %v2402_v28, %v1872_v26  ;;  %v2384_v10 = vld [vmem:[%s2634_s6 + $0xac] sm:$0xf] }
  0x61   : > { %1190 = vmatpush.bf16.msra.mxu1 %v1953_v36  ;;  %v2466_v34 = vld [vmem:[%s2634_s6 + $0x334] sm:$0xf0]  ;;  %v1728_v36 = vld [vmem:[%s2634_s6 + $0x8] sm:$0xf]  ;;  %v2001_v39 = vor.u32 %v2434_v30, %v2000_v29  ;;  %v1810_v11 = vld [vmem:[%s2634_s6 + $0xb8] sm:$0xf0] }
  0x62   : > { %1203 = vmatpush.bf16.msra.mxu2 %v2081_v37  ;;  %v2366_v37 = vld [vmem:[%s2634_s6 + $0x14] sm:$0xf0]  ;;  %v1856_v40 = vld [vmem:[%s2634_s6 + $0x108] sm:$0xf]  ;;  %v2129_v43 = vor.u32 %v2466_v34, %v2128_v33  ;;  %v2416_v12 = vld [vmem:[%s2634_s6 + $0x1ac] sm:$0xf] }
  0x63   : > { %1216 = vmatpush.bf16.msra.mxu3 %v2209_v41  ;;  %v2398_v41 = vld [vmem:[%s2634_s6 + $0x114] sm:$0xf0]  ;;  %v1984_v42 = vld [vmem:[%s2634_s6 + $0x208] sm:$0xf]  ;;  %v1729_v50 = vor.u32 %v2366_v37, %v1728_v36  ;;  %v1938_v14 = vld [vmem:[%s2634_s6 + $0x1b8] sm:$0xf0] }
  0x64   : > { %1178 = vmatpush.bf16.msra.mxu0 %v1809_v47  ;;  %v2430_v44 = vld [vmem:[%s2634_s6 + $0x214] sm:$0xf0]  ;;  %v2112_v45 = vld [vmem:[%s2634_s6 + $0x308] sm:$0xf]  ;;  %v2392_v47 = vld [vmem:[%s2634_s6 + $0xec] sm:$0xf]  ;;  %v1857_v54 = vor.u32 %v2398_v41, %v1856_v40 }
  0x65   : > { %1191 = vmatpush.bf16.msra.mxu1 %v1937_v48  ;;  %v2462_v46 = vld [vmem:[%s2634_s6 + $0x314] sm:$0xf0]  ;;  %v1842_v48 = vld [vmem:[%s2634_s6 + $0xf8] sm:$0xf0]  ;;  %v1985_v55 = vor.u32 %v2430_v44, %v1984_v42  ;;  %v2448_v15 = vld [vmem:[%s2634_s6 + $0x2ac] sm:$0xf] }
  0x66   : > { %1204 = vmatpush.bf16.msra.mxu2 %v2065_v49  ;;  %v2424_v49 = vld [vmem:[%s2634_s6 + $0x1ec] sm:$0xf]  ;;  %v2113_v58 = vor.u32 %v2462_v46, %v2112_v45  ;;  %v2066_v18 = vld [vmem:[%s2634_s6 + $0x2b8] sm:$0xf0] }
  0x67   : > { %1217 = vmatpush.bf16.msra.mxu3 %v2193_v53  ;;  %v2098_v53 = vld [vmem:[%s2634_s6 + $0x2f8] sm:$0xf0]  ;;  %v2480_v19 = vld [vmem:[%s2634_s6 + $0x3ac] sm:$0xf] }
  0x68   : > { %1179 = vmatpush.bf16.msra.mxu0 %v1793_v59  ;;  %v1845_v59 = vor.u32 %v2392_v47, %v1842_v48  ;;  %v2194_v20 = vld [vmem:[%s2634_s6 + $0x3b8] sm:$0xf0]  ;;  %v2380_v24 = vld [vmem:[%s2634_s6 + $0x8c] sm:$0xf] }
  0x69   : > { %1192 = vmatpush.bf16.msra.mxu1 %v1921_v60  ;;  %v1973_v60 = vor.u32 %v2424_v49, %v1970_v51  ;;  %v1794_v25 = vld [vmem:[%s2634_s6 + $0x98] sm:$0xf0]  ;;  %v2412_v26 = vld [vmem:[%s2634_s6 + $0x18c] sm:$0xf] }
  0x6a   : > { %1205 = vmatpush.bf16.msra.mxu2 %v2049_v61  ;;  %v2101_v61 = vor.u32 %v2456_v52, %v2098_v53  ;;  %v1922_v28 = vld [vmem:[%s2634_s6 + $0x198] sm:$0xf0]  ;;  %v2444_v29 = vld [vmem:[%s2634_s6 + $0x28c] sm:$0xf] }
  0x6b   : > { %1218 = vmatpush.bf16.msra.mxu3 %v2177_v1  ;;  %v2229_v1 = vor.u32 %v2488_v56, %v2226_v57  ;;  %v2050_v30 = vld [vmem:[%s2634_s6 + $0x298] sm:$0xf0]  ;;  %v2476_v33 = vld [vmem:[%s2634_s6 + $0x38c] sm:$0xf]  ;;  %v1925_v36 = vor.u32 %v2412_v26, %v1922_v28 }
  0x6c   : > { %1180 = vmatpush.bf16.msra.mxu0 %v1777_v7  ;;  %v1829_v7 = vor.u32 %v2388_v62, %v1826_v63  ;;  %v2178_v34 = vld [vmem:[%s2634_s6 + $0x398] sm:$0xf0]  ;;  %v2053_v37 = vor.u32 %v2444_v29, %v2050_v30  ;;  %v2408_v40 = vld [vmem:[%s2634_s6 + $0x16c] sm:$0xf] }
  0x6d   : > { %1193 = vmatpush.bf16.msra.mxu1 %v1905_v8  ;;  %v1957_v8 = vor.u32 %v2420_v0, %v1954_v2  ;;  %v2181_v41 = vor.u32 %v2476_v33, %v2178_v34  ;;  %v1906_v42 = vld [vmem:[%s2634_s6 + $0x178] sm:$0xf0]  ;;  %v2472_v45 = vld [vmem:[%s2634_s6 + $0x36c] sm:$0xf]  ;;  %v284_v33 = vld [vmem:[#allocation2 + $0x10] sm:$0xff] }
  0x6e   : > { %1206 = vmatpush.bf16.msra.mxu2 %v2033_v9  ;;  %v2085_v9 = vor.u32 %v2452_v3, %v2082_v4  ;;  %v2034_v44 = vld [vmem:[%s2634_s6 + $0x278] sm:$0xf0]  ;;  %v1909_v48 = vor.u32 %v2408_v40, %v1906_v42  ;;  %v2404_v52 = vld [vmem:[%s2634_s6 + $0x14c] sm:$0xf]  ;;  %v285_v42 = vld [vmem:[#allocation2] sm:$0xff] }
  0x6f   : > { %1219 = vmatpush.bf16.msra.mxu3 %v2161_v13  ;;  %v2213_v13 = vor.u32 %v2484_v5, %v2210_v6  ;;  %v2162_v46 = vld [vmem:[%s2634_s6 + $0x378] sm:$0xf0]  ;;  %v2468_v57 = vld [vmem:[%s2634_s6 + $0x34c] sm:$0xf] }
  0x70   : > { %1181 = vmatpush.bf16.msra.mxu0 %v1761_v21  ;;  %v1813_v21 = vor.u32 %v2384_v10, %v1810_v11  ;;  %v1762_v51 = vld [vmem:[%s2634_s6 + $0x58] sm:$0xf0]  ;;  %v2165_v53 = vor.u32 %v2472_v45, %v2162_v46  ;;  %v2368_v62 = vld [vmem:[%s2634_s6 + $0x2c] sm:$0xf] }
  0x71   : > { %1194 = vmatpush.bf16.msra.mxu1 %v1889_v22  ;;  %v1941_v22 = vor.u32 %v2416_v12, %v1938_v14  ;;  %v2018_v56 = vld [vmem:[%s2634_s6 + $0x258] sm:$0xf0]  ;;  %v2400_v0 = vld [vmem:[%s2634_s6 + $0x12c] sm:$0xf] }
  0x72   : > { %1207 = vmatpush.bf16.msra.mxu2 %v2017_v23  ;;  %v2069_v23 = vor.u32 %v2448_v15, %v2066_v18  ;;  %v1746_v63 = vld [vmem:[%s2634_s6 + $0x38] sm:$0xf0]  ;;  %v2432_v3 = vld [vmem:[%s2634_s6 + $0x22c] sm:$0xf] }
  0x73   : > { %1220 = vmatpush.bf16.msra.mxu3 %v2145_v27  ;;  %v2197_v27 = vor.u32 %v2480_v19, %v2194_v20  ;;  %v1874_v2 = vld [vmem:[%s2634_s6 + $0x138] sm:$0xf0]  ;;  %v2464_v5 = vld [vmem:[%s2634_s6 + $0x32c] sm:$0xf] }
  0x74   : > { %1182 = vmatpush.bf16.msra.mxu0 %v1745_v35  ;;  %v1797_v35 = vor.u32 %v2380_v24, %v1794_v25  ;;  %v2002_v4 = vld [vmem:[%s2634_s6 + $0x238] sm:$0xf0]  ;;  %v2364_v10 = vld [vmem:[%s2634_s6 + $0xc] sm:$0xf] }
  0x75   : > { %1195 = vmatpush.bf16.msra.mxu1 %v1873_v38  ;;  %v2376_v38 = vld [vmem:[%s2634_s6 + $0x6c] sm:$0xf]  ;;  %v2130_v6 = vld [vmem:[%s2634_s6 + $0x338] sm:$0xf0] }
  0x76   : > { %1208 = vmatpush.bf16.msra.mxu2 %v2001_v39  ;;  %v1778_v39 = vld [vmem:[%s2634_s6 + $0x78] sm:$0xf0]  ;;  %v2396_v12 = vld [vmem:[%s2634_s6 + $0x10c] sm:$0xf] }
  0x77   : > { %1221 = vmatpush.bf16.msra.mxu3 %v2129_v43  ;;  %v2440_v43 = vld [vmem:[%s2634_s6 + $0x26c] sm:$0xf]  ;;  %v1781_v47 = vor.u32 %v2376_v38, %v1778_v39  ;;  %v1730_v11 = vld [vmem:[%s2634_s6 + $0x18] sm:$0xf0] }
  0x78   : > { %1183 = vmatpush.bf16.msra.mxu0 %v1729_v50  ;;  %v2037_v49 = vor.u32 %v2440_v43, %v2034_v44  ;;  %v2372_v50 = vld [vmem:[%s2634_s6 + $0x4c] sm:$0xf]  ;;  %v1858_v14 = vld [vmem:[%s2634_s6 + $0x118] sm:$0xf0] }
  0x79   : > { %1196 = vmatpush.bf16.msra.mxu1 %v1857_v54  ;;  %v1890_v54 = vld [vmem:[%s2634_s6 + $0x158] sm:$0xf0]  ;;  %v2428_v15 = vld [vmem:[%s2634_s6 + $0x20c] sm:$0xf] }
  0x7a   : > { %1209 = vmatpush.bf16.msra.mxu2 %v1985_v55  ;;  %v2436_v55 = vld [vmem:[%s2634_s6 + $0x24c] sm:$0xf]  ;;  %v1986_v18 = vld [vmem:[%s2634_s6 + $0x218] sm:$0xf0] }
  0x7b   : > { %1222 = vmatpush.bf16.msra.mxu3 %v2113_v58  ;;  %1184 = vmatmul.bf16.vlgmr.msra.gmra.mxu0 %v2746_v31  ;;  %v2146_v58 = vld [vmem:[%s2634_s6 + $0x358] sm:$0xf0]  ;;  %v2460_v19 = vld [vmem:[%s2634_s6 + $0x30c] sm:$0xf] }
  0x7c   : > { %1228 = vmatpush.bf16.msrb.mxu0 %v1845_v59  ;;  %1197 = vmatmul.bf16.vlgmr.msra.gmra.mxu1 %v2748_v32  ;;  %v1765_v59 = vor.u32 %v2372_v50, %v1762_v51  ;;  %v2114_v20 = vld [vmem:[%s2634_s6 + $0x318] sm:$0xf0] }
  0x7d   : > { %1241 = vmatpush.bf16.msrb.mxu1 %v1973_v60  ;;  %1210 = vmatmul.bf16.vlgmr.msra.gmra.mxu2 %v2734_v16  ;;  %v1893_v60 = vor.u32 %v2404_v52, %v1890_v54  ;;  %v2117_v24 = vor.u32 %v2460_v19, %v2114_v20 }
  0x7e   : > { %1254 = vmatpush.bf16.msrb.mxu2 %v2101_v61  ;;  %1223 = vmatmul.bf16.vlgmr.msra.gmra.mxu3 %v2736_v17  ;;  %v2021_v61 = vor.u32 %v2436_v55, %v2018_v56  ;;  %v286_v55 = vld [vmem:[#allocation2 + $0x18] sm:$0xff] }
  0x7f   : > { %1267 = vmatpush.bf16.msrb.mxu3 %v2229_v1  ;;  %v2149_v1 = vor.u32 %v2468_v57, %v2146_v58 }
  0x80   : > { %1229 = vmatpush.bf16.msrb.mxu0 %v1829_v7  ;;  %v1749_v7 = vor.u32 %v2368_v62, %v1746_v63 }
  0x81   : > { %1242 = vmatpush.bf16.msrb.mxu1 %v1957_v8  ;;  %v1877_v8 = vor.u32 %v2400_v0, %v1874_v2 }
  0x82   : > { %1255 = vmatpush.bf16.msrb.mxu2 %v2085_v9  ;;  %v2005_v9 = vor.u32 %v2432_v3, %v2002_v4 }
  0x83   : > { %1268 = vmatpush.bf16.msrb.mxu3 %v2213_v13  ;;  %v2133_v13 = vor.u32 %v2464_v5, %v2130_v6  ;;  %v287_v5 = vld [vmem:[#allocation2 + $0x8] sm:$0xff] }
  0x84   : > { %1230 = vmatpush.bf16.msrb.mxu0 %v1813_v21  ;;  %v1733_v21 = vor.u32 %v2364_v10, %v1730_v11 }
  0x85   : > { %1243 = vmatpush.bf16.msrb.mxu1 %v1941_v22  ;;  %v1861_v22 = vor.u32 %v2396_v12, %v1858_v14 }
  0x86   : > { %1256 = vmatpush.bf16.msrb.mxu2 %v2069_v23  ;;  %v1989_v23 = vor.u32 %v2428_v15, %v1986_v18 }
  0x87   : > { %1269 = vmatpush.bf16.msrb.mxu3 %v2197_v27 }
  0x88   : > { %1231 = vmatpush.bf16.msrb.mxu0 %v1797_v35 }
  0x89   : > { %1244 = vmatpush.bf16.msrb.mxu1 %v1925_v36 }
  0x8a   : > { %1257 = vmatpush.bf16.msrb.mxu2 %v2053_v37 }
  0x8b   : > { %1270 = vmatpush.bf16.msrb.mxu3 %v2181_v41 }
  0x8c   : > { %1232 = vmatpush.bf16.msrb.mxu0 %v1781_v47 }
  0x8d   : > { %1245 = vmatpush.bf16.msrb.mxu1 %v1909_v48 }
  0x8e   : > { %1258 = vmatpush.bf16.msrb.mxu2 %v2037_v49 }
  0x8f   : > { %1271 = vmatpush.bf16.msrb.mxu3 %v2165_v53 }
  0x90   : > { %1233 = vmatpush.bf16.msrb.mxu0 %v1765_v59 }
  0x91   : > { %1246 = vmatpush.bf16.msrb.mxu1 %v1893_v60 }
  0x92   : > { %1259 = vmatpush.bf16.msrb.mxu2 %v2021_v61 }
  0x93   : > { %1272 = vmatpush.bf16.msrb.mxu3 %v2149_v1 }
  0x94   : > { %1234 = vmatpush.bf16.msrb.mxu0 %v1749_v7 }
  0x95   : > { %1247 = vmatpush.bf16.msrb.mxu1 %v1877_v8 }
  0x96   : > { %1260 = vmatpush.bf16.msrb.mxu2 %v2005_v9 }
  0x97   : > { %1273 = vmatpush.bf16.msrb.mxu3 %v2133_v13 }
  0x98   : > { %1235 = vmatpush.bf16.msrb.mxu0 %v1733_v21 }
  0x99   : > { %1248 = vmatpush.bf16.msrb.mxu1 %v1861_v22 }
  0x9a   : > { %1261 = vmatpush.bf16.msrb.mxu2 %v1989_v23 }
  0x9b   : > { %1274 = vmatpush.bf16.msrb.mxu3 %v2117_v24  ;;  %1236 = vmatmul.bf16.vlgmr.msrb.gmra.mxu0 %v2746_v31 }
  0x9c   : > { %1249 = vmatmul.bf16.vlgmr.msrb.gmra.mxu1 %v2748_v32 }
  0x9d   : > { %1262 = vmatmul.bf16.vlgmr.msrb.gmra.mxu2 %v2734_v16 }
  0x9e   : > { %1275 = vmatmul.bf16.vlgmr.msrb.gmra.mxu3 %v2736_v17 }
  0xc0   : > { %v1094_v25 = vpop.f32.mrf.mxu1 }
  0xc1   : > { %v1120_v30 = vpop.f32.mrf.mxu3 }
  0xc2   : > { %v1081_v26 = vpop.f32.mrf.mxu0  ;;  %v1107_v28 = vpop.f32.mrf.mxu2 }
  0xc3   : > { %v1095_v27 = vadd.f32 %v1094_v25, %v1081_v26 }
  0xc5   : > { %v1108_v29 = vadd.f32 %v1107_v28, %v1095_v27 }
  0xc7   : > { %v1121_v34 = vadd.f32 %v1120_v30, %v1108_v29 }
  0xc8   : > { %v1096_v35 = vpop.f32.mrf.mxu1 }
  0xc9   : > { %v1280_v36 = vadd.f32 %v1121_v34, %v284_v33  ;;  %v1122_v31 = vpop.f32.mrf.mxu3 }
  0xca   : > { %v1083_v37 = vpop.f32.mrf.mxu0  ;;  %v1109_v38 = vpop.f32.mrf.mxu2 }
  0xcb   : > { %1284 = vst [vmem:[#allocation2 + $0x10] sm:$0xff] %v1280_v36 }
  0xd8   : > { %v1133_v39 = vpop.f32.mrf.mxu0 }
  0xd9   : > { %v1146_v32 = vpop.f32.mrf.mxu1 }
  0xda   : > { %v1147_v40 = vadd.f32 %v1146_v32, %v1133_v39 }
  0xe0   : > { %v1159_v16 = vpop.f32.mrf.mxu2  ;;  %v1135_v44 = vpop.f32.mrf.mxu0 }
  0xe1   : > { %v1160_v41 = vadd.f32 %v1159_v16, %v1147_v40  ;;  %v1172_v17 = vpop.f32.mrf.mxu3  ;;  %v1148_v45 = vpop.f32.mrf.mxu1 }
  0xe3   : > { %v1173_v43 = vadd.f32 %v1172_v17, %v1160_v41 }
  0xe5   : > { %v1281_v46 = vadd.f32 %v1173_v43, %v285_v42 }
  0xe7   : > { %1285 = vst [vmem:[#allocation2] sm:$0xff] %v1281_v46 }
  0xe8   : > { %v1161_v47 = vpop.f32.mrf.mxu2 }
  0xe9   : > { %v1174_v48 = vpop.f32.mrf.mxu3 }
  0xf8   : > { %v1185_v49 = vpop.f32.mrf.mxu0 }
  0xf9   : > { %v1198_v50 = vpop.f32.mrf.mxu1 }
  0xfa   : > { %v1199_v51 = vadd.f32 %v1198_v50, %v1185_v49 }
 0x100   : > { %v1211_v52 = vpop.f32.mrf.mxu2  ;;  %v1187_v57 = vpop.f32.mrf.mxu0 }
 0x101   : > { %v1212_v53 = vadd.f32 %v1211_v52, %v1199_v51  ;;  %v1224_v54 = vpop.f32.mrf.mxu3  ;;  %v1200_v58 = vpop.f32.mrf.mxu1 }
 0x103   : > { %v1225_v56 = vadd.f32 %v1224_v54, %v1212_v53 }
 0x105   : > { %v1282_v59 = vadd.f32 %v1225_v56, %v286_v55 }
 0x107   : > { %1286 = vst [vmem:[#allocation2 + $0x18] sm:$0xff] %v1282_v59 }
 0x108   : > { %v1213_v60 = vpop.f32.mrf.mxu2 }
 0x109   : > { %v1226_v61 = vpop.f32.mrf.mxu3 }
 0x118   : > { %v1237_v62 = vpop.f32.mrf.mxu0 }
 0x119   : > { %v1250_v63 = vpop.f32.mrf.mxu1 }
 0x11a   : > { %v1251_v0 = vadd.f32 %v1250_v63, %v1237_v62 }
 0x120   : > { %v1263_v1 = vpop.f32.mrf.mxu2  ;;  %v1239_v4 = vpop.f32.mrf.mxu0 }
 0x121   : > { %v1264_v2 = vadd.f32 %v1263_v1, %v1251_v0  ;;  %v1276_v3 = vpop.f32.mrf.mxu3  ;;  %v1252_v6 = vpop.f32.mrf.mxu1 }
 0x123   : > { %v1277_v7 = vadd.f32 %v1276_v3, %v1264_v2 }
 0x125   : > { %v1283_v8 = vadd.f32 %v1277_v7, %v287_v5  ;;  %1291 = sbr.rel (%p2230_p7) target bundleno = 473 (0x1d9), region = 48 }
 0x127   : > { %1287 = vst [vmem:[#allocation2 + $0x8] sm:$0xff] %v1283_v8 }
 0x128   : > { %v1265_v9 = vpop.f32.mrf.mxu2 }
 0x129   : > { %v1278_v10 = vpop.f32.mrf.mxu3 }
 0x12a   : > { %v2498_v11 = vld [vmem:[%s3037_s3 + $0x38] sm:$0xff]  ;;  %v2497_v15 = vld [vmem:[%s3037_s3 + $0x30] sm:$0xff]  ;;  %v2496_v21 = vld [vmem:[%s3037_s3 + $0x28] sm:$0xff] }
 0x12b   : > { %v2506_v12 = vld [vmem:[%s3037_s3 + $0x78] sm:$0xff]  ;;  %1578 = vmatpush.bf16.msra.mxu0 %v2498_v11  ;;  %v2505_v18 = vld [vmem:[%s3037_s3 + $0x70] sm:$0xff]  ;;  %v2504_v22 = vld [vmem:[%s3037_s3 + $0x68] sm:$0xff] }
 0x12c   : > { %v2514_v13 = vld [vmem:[%s3037_s3 + $0xb8] sm:$0xff]  ;;  %1591 = vmatpush.bf16.msra.mxu1 %v2506_v12  ;;  %v2513_v19 = vld [vmem:[%s3037_s3 + $0xb0] sm:$0xff]  ;;  %v2512_v23 = vld [vmem:[%s3037_s3 + $0xa8] sm:$0xff] }
 0x12d   : > { %v2522_v14 = vld [vmem:[%s3037_s3 + $0xf8] sm:$0xff]  ;;  %1604 = vmatpush.bf16.msra.mxu2 %v2514_v13  ;;  %v2521_v20 = vld [vmem:[%s3037_s3 + $0xf0] sm:$0xff]  ;;  %v2520_v24 = vld [vmem:[%s3037_s3 + $0xe8] sm:$0xff] }
 0x12e   : > { %1617 = vmatpush.bf16.msra.mxu3 %v2522_v14  ;;  %v2495_v25 = vld [vmem:[%s3037_s3 + $0x20] sm:$0xff]  ;;  %v2494_v29 = vld [vmem:[%s3037_s3 + $0x18] sm:$0xff]  ;;  %v2493_v36 = vld [vmem:[%s3037_s3 + $0x10] sm:$0xff] }
 0x12f   : > { %1579 = vmatpush.bf16.msra.mxu0 %v2497_v15  ;;  %v2503_v26 = vld [vmem:[%s3037_s3 + $0x60] sm:$0xff]  ;;  %v2502_v30 = vld [vmem:[%s3037_s3 + $0x58] sm:$0xff]  ;;  %v2501_v37 = vld [vmem:[%s3037_s3 + $0x50] sm:$0xff] }
 0x130   : > { %1592 = vmatpush.bf16.msra.mxu1 %v2505_v18  ;;  %v2511_v27 = vld [vmem:[%s3037_s3 + $0xa0] sm:$0xff]  ;;  %v2510_v34 = vld [vmem:[%s3037_s3 + $0x98] sm:$0xff]  ;;  %v2509_v39 = vld [vmem:[%s3037_s3 + $0x90] sm:$0xff] }
 0x131   : > { %1605 = vmatpush.bf16.msra.mxu2 %v2513_v19  ;;  %v2519_v28 = vld [vmem:[%s3037_s3 + $0xe0] sm:$0xff]  ;;  %v2518_v35 = vld [vmem:[%s3037_s3 + $0xd8] sm:$0xff]  ;;  %v1292_v32 = vld [vmem:[#allocation2 + $0x10] sm:$0xff] }
 0x132   : > { %1618 = vmatpush.bf16.msra.mxu3 %v2521_v20  ;;  %v1296_v33 = vld [vmem:[%s3036_s2] sm:$0xf]  ;;  %v2517_v17 = vld [vmem:[%s3037_s3 + $0xd0] sm:$0xff]  ;;  %v1294_v42 = vld [vmem:[#allocation2 + $0x18] sm:$0xff] }
 0x133   : > { %1580 = vmatpush.bf16.msra.mxu0 %v2496_v21  ;;  %v1298_v38 = vperm.slane %v1296_v33, 0  ;;  %v1299_v31 = vperm.slane %v1296_v33, 1  ;;  %v1293_v40 = vld [vmem:[#allocation2] sm:$0xff]  ;;  %v1300_v16 = vperm.slane %v1296_v33, 2  ;;  %v1301_v41 = vperm.slane %v1296_v33, 3  ;;  %v1295_v43 = vld [vmem:[#allocation2 + $0x8] sm:$0xff] }
 0x134   : > { %1593 = vmatpush.bf16.msra.mxu1 %v2504_v22  ;;  %v2492_v46 = vld [vmem:[%s3037_s3 + $0x8] sm:$0xff]  ;;  %v2491_v54 = vld [vmem:[%s3037_s3] sm:$0xff] }
 0x135   : > { %1606 = vmatpush.bf16.msra.mxu2 %v2512_v23  ;;  %v1306_v44 = vadd.f32 %v1298_v38, %v1292_v32  ;;  %v1307_v45 = vadd.f32 %v1299_v31, %v1293_v40  ;;  %v2500_v47 = vld [vmem:[%s3037_s3 + $0x48] sm:$0xff]  ;;  %v1308_v48 = vadd.f32 %v1300_v16, %v1294_v42  ;;  %v1309_v49 = vadd.f32 %v1301_v41, %v1295_v43  ;;  %v2499_v55 = vld [vmem:[%s3037_s3 + $0x40] sm:$0xff] }
 0x136   : > { %1619 = vmatpush.bf16.msra.mxu3 %v2520_v24  ;;  %v2508_v50 = vld [vmem:[%s3037_s3 + $0x88] sm:$0xff]  ;;  %v2507_v58 = vld [vmem:[%s3037_s3 + $0x80] sm:$0xff] }
 0x137   : > { %1581 = vmatpush.bf16.msra.mxu0 %v2495_v25  ;;  %v2516_v51 = vld [vmem:[%s3037_s3 + $0xc8] sm:$0xff]  ;;  %v1310_v52 = vmax.f32 %v1306_v44, 0.0  ;;  %v1311_v53 = vmax.f32 %v1307_v45, 0.0  ;;  %v1312_v56 = vmax.f32 %v1308_v48, 0.0  ;;  %v1313_v57 = vmax.f32 %v1309_v49, 0.0  ;;  %v2515_v59 = vld [vmem:[%s3037_s3 + $0xc0] sm:$0xff] }
 0x138   : > { %1594 = vmatpush.bf16.msra.mxu1 %v2503_v26  ;;  %v2548_v0 = vld [vmem:[%s3038_s4] ss:$0 sm:$0xff] }
 0x139   : > { %1607 = vmatpush.bf16.msra.mxu2 %v2511_v27  ;;  %v1314_v60 = vpack.c.bf16 %v1310_v52, %v1310_v52  ;;  %v1315_v61 = vpack.c.bf16 %v1311_v53, %v1311_v53  ;;  %v1316_v62 = vpack.c.bf16 %v1312_v56, %v1312_v56  ;;  %v1317_v63 = vpack.c.bf16 %v1313_v57, %v1313_v57 }
 0x13a   : > { %1620 = vmatpush.bf16.msra.mxu3 %v2519_v28 }
 0x13b   : > { %1582 = vmatpush.bf16.msra.mxu0 %v2494_v29 }
 0x13c   : > { %1595 = vmatpush.bf16.msra.mxu1 %v2502_v30 }
 0x13d   : > { %1608 = vmatpush.bf16.msra.mxu2 %v2510_v34 }
 0x13e   : > { %1621 = vmatpush.bf16.msra.mxu3 %v2518_v35 }
 0x13f   : > { %1583 = vmatpush.bf16.msra.mxu0 %v2493_v36 }
 0x140   : > { %1596 = vmatpush.bf16.msra.mxu1 %v2501_v37 }
 0x141   : > { %1609 = vmatpush.bf16.msra.mxu2 %v2509_v39 }
 0x142   : > { %1622 = vmatpush.bf16.msra.mxu3 %v2517_v17 }
 0x143   : > { %1584 = vmatpush.bf16.msra.mxu0 %v2492_v46 }
 0x144   : > { %1597 = vmatpush.bf16.msra.mxu1 %v2500_v47 }
 0x145   : > { %1610 = vmatpush.bf16.msra.mxu2 %v2508_v50 }
 0x146   : > { %1623 = vmatpush.bf16.msra.mxu3 %v2516_v51 }
 0x147   : > { %1585 = vmatpush.bf16.msra.mxu0 %v2491_v54 }
 0x148   : > { %1598 = vmatpush.bf16.msra.mxu1 %v2499_v55 }
 0x149   : > { %1611 = vmatpush.bf16.msra.mxu2 %v2507_v58 }
 0x14a   : > { %1624 = vmatpush.bf16.msra.mxu3 %v2515_v59  ;;  %1586 = vmatmul.bf16.vlgmr.msra.gmra.mxu0 %v1314_v60 }
 0x14b   : > { %1599 = vmatmul.bf16.vlgmr.msra.gmra.mxu1 %v1315_v61 }
 0x14c   : > { %1612 = vmatmul.bf16.vlgmr.msra.gmra.mxu2 %v1316_v62 }
 0x14d   : > { %1625 = vmatmul.bf16.vlgmr.msra.gmra.mxu3 %v1317_v63 }
 0x1c7   : > { %v1587_v1 = vpop.f32.mrf.mxu0 }
 0x1c8   : > { %v1600_v2 = vpop.f32.mrf.mxu1  ;;  %v1588_v3 = vadd.f32 %v2548_v0, %v1587_v1 }
 0x1ca   : > { %v1601_v4 = vadd.f32 %v1600_v2, %v1588_v3 }
 0x1cf   : > { %v1613_v5 = vpop.f32.mrf.mxu2  ;;  %v1589_v8 = vpop.f32.mrf.mxu0 }
 0x1d0   : > { %v1626_v6 = vpop.f32.mrf.mxu3  ;;  %v1614_v7 = vadd.f32 %v1613_v5, %v1601_v4  ;;  %v1602_v9 = vpop.f32.mrf.mxu1 }
 0x1d2   : > { %v1627_v10 = vadd.f32 %v1626_v6, %v1614_v7 }
 0x1d4   : > { %1630 = vst [vmem:[%s3039_s5] sm:$0xff] %v1627_v10 }
 0x1d7   : > { %v1615_v11 = vpop.f32.mrf.mxu2 }
 0x1d8   : > { %v1628_v12 = vpop.f32.mrf.mxu3 }
 0x1d9 PF: > { %s15_s20 = sadd.s32 1, %s2571_s20   ;;  %s3040_s18 = smov %s2567_s19 }
 0x1da   : > { %p12_p8 = scmp.ge.s32.totalorder %s15_s20, 9   ;;  %s3041_s19 = smov %s3043_s21 }
 0x1dc   :  { %14 = sbr.rel (!%p12_p8) target bundleno = 2 (0x2), region = 81 }

</bundles_post_ra>
